<compile_context>
chip_gen: v5e
topology: v5e:2x2
jax: 0.10.0
libtpu: 0.0.40
codegen_flags: <defaults>
</compile_context>

<pallas_src>
import functools

import jax
import jax.numpy as jnp
from jax.experimental import pallas as pl
from jax.experimental.pallas import tpu as pltpu


# ---------------------------------------------------------------------------
# Fused Pallas kernel
# ---------------------------------------------------------------------------
def _gru_step(gi_t, h, whh, bhn, H):
    """One GRU step with gate layout [r | z | n], each block of width H.

    For the fused bidirectional stage-1, H = 2*H1 and each gate block is
    itself [fwd | bwd]; whh is block-diagonal so the two directions never mix.
    gi_t already contains x@W_i + (b_ir+b_hr, b_iz+b_hz, b_in); b_hn is added
    here, inside the reset-gate product (PyTorch GRU semantics).
    h is None on the first step (h == 0  =>  h@whh == 0, z*h == 0)."""
    if h is None:
        rz = jax.nn.sigmoid(gi_t[:, :2 * H])            # one EUP slab (r|z)
        gh_n = bhn
    else:
        gh = jnp.dot(h, whh, preferred_element_type=jnp.float32)
        rz = jax.nn.sigmoid(gi_t[:, :2 * H] + gh[:, :2 * H])
        gh_n = gh[:, 2 * H:] + bhn
    r = rz[:, :H]
    z = rz[:, H:]
    n = jnp.tanh(gi_t[:, 2 * H:] + r * gh_n)
    return (1.0 - z) * n if h is None else (1.0 - z) * n + z * h


def two_stage_kernel(xp_ref,                                   # (T*N, 2E) time-major pairs
                     wih1_ref, gib1_ref, whh1_ref, bhn1_ref,
                     wih2_ref, gib2_ref, whh2_ref, bhn2_ref,
                     clsw_ref, clsb_ref,
                     emb_ref, logits_ref,
                     *, T, N, B, H1, H2):
    # -------- stage 1: bidirectional GRU, fwd+bwd fused into one chain -----
    # Hoisted input projection: ONE (T*N, 2E) @ (2E, 6*H1) matmul; biases
    # already folded into gib1.  Row t*N+row carries [x[t] | x[T-1-t]] so the
    # same slice feeds both directions of step t.
    gi1 = (jnp.dot(xp_ref[...], wih1_ref[...], preferred_element_type=jnp.float32)
           + gib1_ref[...])                                  # (T*N, 6*H1)
    whh1 = whh1_ref[...]                                     # block-diag (2H1, 6H1)
    bhn1 = jnp.broadcast_to(bhn1_ref[...], (N, 2 * H1))      # hoisted broadcast

    h1 = None
    for t in range(T):                                       # static unroll (T=8)
        h1 = _gru_step(gi1[t * N:(t + 1) * N, :], h1, whh1, bhn1, 2 * H1)
    # h1 row (step*B + b) == [h_fwd(t=T-1) | h_bwd(t=0)]
    # == torch.cat((output[:, -1, 0, :], output[:, 0, 1, :]), 1).

    # -------- stage 2: unidirectional GRU over the 6 step features ---------
    # h1 already IS output1 (lane-concat [fwd|bwd]) -> one hoisted projection.
    gi2 = (jnp.dot(h1, wih2_ref[...], preferred_element_type=jnp.float32)
           + gib2_ref[...])                                  # (N, 3*H2)
    whh2 = whh2_ref[...]
    bhn2 = jnp.broadcast_to(bhn2_ref[...], (B, H2))

    S = N // B                                               # = 6 steps
    h2 = None
    for s in range(S):                                       # static unroll (S=6)
        h2 = _gru_step(gi2[s * B:(s + 1) * B, :], h2, whh2, bhn2, H2)

    # -------- classifiers: all heads as a single matmul --------------------
    emb_ref[...] = h2
    logits_ref[...] = (jnp.dot(h2, clsw_ref[...],
                               preferred_element_type=jnp.float32)
                       + clsb_ref[...])


# ---------------------------------------------------------------------------
# pallas_call wrapper + parameter packing
# ---------------------------------------------------------------------------
_VMEM = pl.BlockSpec(memory_space=pltpu.MemorySpace.VMEM)


def _pack_params(params):
    """Build the fused/block-diagonal weights and pre-combined biases.

    Fused stage-1 gate layout along lanes: [r_f | r_b | z_f | z_b | n_f | n_b].
    """
    p1, p2 = params["rnn1"], params["rnn2"]
    E = p1["wih_f"].shape[0]
    H1 = p1["whh_f"].shape[0]
    H2 = p2["whh"].shape[0]
    z_eh = jnp.zeros((E, H1), jnp.float32)
    z_hh = jnp.zeros((H1, H1), jnp.float32)

    def split3(w, H):
        return w[:, :H], w[:, H:2 * H], w[:, 2 * H:]

    wfr, wfz, wfn = split3(p1["wih_f"], H1)
    wbr, wbz, wbn = split3(p1["wih_b"], H1)
    ufr, ufz, ufn = split3(p1["whh_f"], H1)
    ubr, ubz, ubn = split3(p1["whh_b"], H1)

    # Rows 0:E act on x[t] (forward), rows E:2E act on x[T-1-t] (backward).
    wih1 = jnp.concatenate([
        jnp.concatenate([wfr, z_eh, wfz, z_eh, wfn, z_eh], axis=1),
        jnp.concatenate([z_eh, wbr, z_eh, wbz, z_eh, wbn], axis=1),
    ], axis=0)                                                        # (2E, 6H1)
    # Rows 0:H1 act on h_f, rows H1:2H1 act on h_b (block-diagonal recurrence).
    whh1 = jnp.concatenate([
        jnp.concatenate([ufr, z_hh, ufz, z_hh, ufn, z_hh], axis=1),
        jnp.concatenate([z_hh, ubr, z_hh, ubz, z_hh, ubn], axis=1),
    ], axis=0)                                                        # (2H1, 6H1)

    bif, bhf = p1["bih_f"], p1["bhh_f"]
    bib, bhb = p1["bih_b"], p1["bhh_b"]
    gib1 = jnp.concatenate([
        bif[:, :H1] + bhf[:, :H1],               bib[:, :H1] + bhb[:, :H1],
        bif[:, H1:2 * H1] + bhf[:, H1:2 * H1],   bib[:, H1:2 * H1] + bhb[:, H1:2 * H1],
        bif[:, 2 * H1:],                         bib[:, 2 * H1:],
    ], axis=1)                                                        # (1, 6H1)
    bhn1 = jnp.concatenate([bhf[:, 2 * H1:], bhb[:, 2 * H1:]], axis=1)  # (1, 2H1)

    bi2, bh2 = p2["bih"], p2["bhh"]
    gib2 = jnp.concatenate([bi2[:, :2 * H2] + bh2[:, :2 * H2],
                            bi2[:, 2 * H2:]], axis=1)                 # (1, 3H2)
    bhn2 = bh2[:, 2 * H2:]                                            # (1, H2)

    num_tasks, _, C = params["cls_w"].shape
    return {
        "wih1": wih1, "gib1": gib1, "whh1": whh1, "bhn1": bhn1,
        "wih2": p2["wih"], "gib2": gib2, "whh2": p2["whh"], "bhn2": bhn2,
        "clsw": jnp.transpose(params["cls_w"], (1, 0, 2)).reshape(H2, num_tasks * C),
        "clsb": params["cls_b"].reshape(1, num_tasks * C),
    }


def run_fused(x_pair, pk, *, T, N, B, H1, H2, num_tasks, C):
    kernel = functools.partial(two_stage_kernel, T=T, N=N, B=B, H1=H1, H2=H2)
    return pl.pallas_call(
        kernel,
        out_shape=(jax.ShapeDtypeStruct((B, H2), jnp.float32),
                   jax.ShapeDtypeStruct((B, num_tasks * C), jnp.float32)),
        in_specs=[_VMEM] * 11,
        out_specs=(_VMEM, _VMEM),
    )(x_pair,
      pk["wih1"], pk["gib1"], pk["whh1"], pk["bhn1"],
      pk["wih2"], pk["gib2"], pk["whh2"], pk["bhn2"],
      pk["clsw"], pk["clsb"])


# ---------------------------------------------------------------------------
# Full forward (mirrors two_stage_RNN.forward)
# ---------------------------------------------------------------------------
def two_stage_rnn_forward(params, steps_tokens, lengths):
    # steps_tokens: int32 [6, B, T] (the `steps` list, stacked).
    # lengths: unused by the PyTorch forward (no pack_padded_sequence) —
    # padded timesteps influence the hidden state, as in the original.
    del lengths
    num_steps, B, T = steps_tokens.shape
    E = params["embedding"].shape[1]
    H1 = params["rnn1"]["whh_f"].shape[0]
    H2 = params["rnn2"]["whh"].shape[0]
    num_tasks, _, C = params["cls_w"].shape

    # Pad batch to a sublane multiple (8) so every per-step row slice inside
    # the kernel lands on an (8,128) tile boundary (no per-step sublane
    # shuffles on the serial chain).  Padded rows compute independent garbage
    # and are sliced off below.
    B_pad = max(8, ((B + 7) // 8) * 8)
    if B_pad != B:
        steps_tokens = jnp.pad(steps_tokens, ((0, 0), (0, B_pad - B), (0, 0)))
    N = num_steps * B_pad

    # Transpose the tiny int token ids (not activations) to time-major, then
    # the frozen-embedding gather (plain-JAX glue) already yields the layout
    # the kernel wants: rows ordered (t, step, batch).
    tok_tm = jnp.transpose(steps_tokens, (2, 0, 1)).reshape(T, N)
    x_tm = params["embedding"][tok_tm]                                # (T, N, E)
    # Pair each time slice with its time-reversed twin so the fwd+bwd input
    # projections become ONE matmul against the fused 2E-row weight.
    x_pair = jnp.concatenate([x_tm, x_tm[::-1]], axis=-1).reshape(T * N, 2 * E)

    pk = _pack_params(params)
    emb_pad, logits_pad = run_fused(x_pair, pk, T=T, N=N, B=B_pad,
                                    H1=H1, H2=H2, num_tasks=num_tasks, C=C)
    emb_recipe = emb_pad[:B]
    logits = {i: logits_pad[:B, i * C:(i + 1) * C] for i in range(num_tasks)}
    return logits, emb_recipe


# ---------------------------------------------------------------------------
# Pure-JAX reference (for correctness check)
# ---------------------------------------------------------------------------
def _ref_gru_seq(x, wih, whh, bih, bhh):
    H = whh.shape[0]
    h = jnp.zeros((x.shape[1], H), jnp.float32)
    for t in range(x.shape[0]):
        gi = x[t] @ wih + bih
        gh = h @ whh + bhh
        r = jax.nn.sigmoid(gi[:, :H] + gh[:, :H])
        z = jax.nn.sigmoid(gi[:, H:2 * H] + gh[:, H:2 * H])
        n = jnp.tanh(gi[:, 2 * H:] + r * gh[:, 2 * H:])
        h = (1.0 - z) * n + z * h
    return h


def ref_forward(params, steps_tokens, lengths):
    del lengths
    num_steps, B, T = steps_tokens.shape
    emb = params["embedding"][steps_tokens]
    E = emb.shape[-1]
    p1 = params["rnn1"]
    H1 = p1["whh_f"].shape[0]
    x1 = jnp.transpose(emb.reshape(num_steps * B, T, E), (1, 0, 2))
    h_f = _ref_gru_seq(x1, p1["wih_f"], p1["whh_f"], p1["bih_f"], p1["bhh_f"])
    h_b = _ref_gru_seq(x1[::-1], p1["wih_b"], p1["whh_b"], p1["bih_b"], p1["bhh_b"])
    output1 = jnp.concatenate([h_f, h_b], axis=-1).reshape(num_steps, B, 2 * H1)
    p2 = params["rnn2"]
    emb_recipe = _ref_gru_seq(output1, p2["wih"], p2["whh"], p2["bih"], p2["bhh"])
    logits = {i: emb_recipe @ params["cls_w"][i] + params["cls_b"][i]
              for i in range(params["cls_w"].shape[0])}
    return logits, emb_recipe


# ---------------------------------------------------------------------------
# Deterministic parameter init
# ---------------------------------------------------------------------------
def init_params(key, vocab, E, H1, H2, num_tasks, num_classes):
    ks = jax.random.split(key, 16)
    u = lambda k, shape, bound: jax.random.uniform(k, shape, jnp.float32, -bound, bound)
    b1 = 1.0 / jnp.sqrt(H1)
    b2 = 1.0 / jnp.sqrt(H2)
    return {
        "embedding": jax.random.normal(ks[0], (vocab, E), jnp.float32),
        "rnn1": {  # bidirectional GRU, weights stored pre-transposed (in, 3H)
            "wih_f": u(ks[1], (E, 3 * H1), b1), "whh_f": u(ks[2], (H1, 3 * H1), b1),
            "bih_f": u(ks[3], (1, 3 * H1), b1), "bhh_f": u(ks[4], (1, 3 * H1), b1),
            "wih_b": u(ks[5], (E, 3 * H1), b1), "whh_b": u(ks[6], (H1, 3 * H1), b1),
            "bih_b": u(ks[7], (1, 3 * H1), b1), "bhh_b": u(ks[8], (1, 3 * H1), b1),
        },
        "rnn2": {  # unidirectional GRU over the 6 step features
            "wih": u(ks[9], (2 * H1, 3 * H2), b2), "whh": u(ks[10], (H2, 3 * H2), b2),
            "bih": u(ks[11], (1, 3 * H2), b2), "bhh": u(ks[12], (1, 3 * H2), b2),
        },
        "cls_w": u(ks[13], (num_tasks, H2, num_classes), b2),
        "cls_b": u(ks[14], (num_tasks, num_classes), b2),
    }


# ---------------------------------------------------------------------------
if __name__ == "__main__":
    key = jax.random.PRNGKey(0)
    kp, kt = jax.random.split(key)

    vocab, E, H1, H2 = 64, 32, 32, 32
    B, T = 2, 8
    num_tasks, num_classes = 3, 4

    params = init_params(kp, vocab, E, H1, H2, num_tasks, num_classes)
    steps_tokens = jax.random.randint(kt, (6, B, T), 0, vocab, dtype=jnp.int32)
    lengths = jnp.full((6, B), T, dtype=jnp.int32)  # unused by forward (as in PyTorch)

    fwd = jax.jit(two_stage_rnn_forward)
    logits, emb_recipe = fwd(params, steps_tokens, lengths)
    jax.block_until_ready(emb_recipe)
    jax.block_until_ready(logits)

    # Correctness check against a pure-JAX reference of the same math.
    ref_logits, ref_emb = ref_forward(params, steps_tokens, lengths)
    assert emb_recipe.shape == (B, H2)
    assert jnp.allclose(emb_recipe, ref_emb, atol=1e-3, rtol=1e-3)
    for i in range(num_tasks):
        assert logits[i].shape == (B, num_classes)
        assert jnp.allclose(logits[i], ref_logits[i], atol=1e-3, rtol=1e-3)

    print("KERNEL_OK")
</pallas_src>

<mosaic_0001>
module attributes {stable_mosaic.version = 11 : i64} {
  func.func @two_stage_kernel(%arg0: memref<384x64xf32, #tpu.memory_space<vmem>>, %arg1: memref<64x192xf32, #tpu.memory_space<vmem>>, %arg2: memref<1x192xf32, #tpu.memory_space<vmem>>, %arg3: memref<64x192xf32, #tpu.memory_space<vmem>>, %arg4: memref<1x64xf32, #tpu.memory_space<vmem>>, %arg5: memref<64x96xf32, #tpu.memory_space<vmem>>, %arg6: memref<1x96xf32, #tpu.memory_space<vmem>>, %arg7: memref<32x96xf32, #tpu.memory_space<vmem>>, %arg8: memref<1x32xf32, #tpu.memory_space<vmem>>, %arg9: memref<32x12xf32, #tpu.memory_space<vmem>>, %arg10: memref<1x12xf32, #tpu.memory_space<vmem>>, %arg11: memref<8x32xf32, #tpu.memory_space<vmem>>, %arg12: memref<8x12xf32, #tpu.memory_space<vmem>>) attributes {dimension_semantics = [], scalar_prefetch = 0 : i64, scratch_operands = 0 : i64, tpu.core_type = #tpu.core_type<tc>} {
    %c0 = arith.constant 0 : index
    %c0_0 = arith.constant 0 : index
    %0 = vector.load %arg0[%c0, %c0_0] : memref<384x64xf32, #tpu.memory_space<vmem>>, vector<384x64xf32>
    %c0_1 = arith.constant 0 : index
    %c0_2 = arith.constant 0 : index
    %1 = vector.load %arg1[%c0_1, %c0_2] : memref<64x192xf32, #tpu.memory_space<vmem>>, vector<64x192xf32>
    %cst = arith.constant dense<0.000000e+00> : vector<384x192xf32>
    %2 = tpu.matmul %0, %1, %cst {dimension_numbers = #tpu.dot_dimension_numbers<[1], [0], [0], [1], [0, 0, 1, 1], [], []>} : vector<384x64xf32>, vector<64x192xf32>, vector<384x192xf32> -> vector<384x192xf32>
    %c0_3 = arith.constant 0 : index
    %c0_4 = arith.constant 0 : index
    %3 = vector.load %arg2[%c0_3, %c0_4] : memref<1x192xf32, #tpu.memory_space<vmem>>, vector<1x192xf32>
    %4 = vector.broadcast %3 : vector<1x192xf32> to vector<384x192xf32>
    %5 = arith.addf %2, %4 : vector<384x192xf32>
    %c0_5 = arith.constant 0 : index
    %c0_6 = arith.constant 0 : index
    %6 = vector.load %arg3[%c0_5, %c0_6] : memref<64x192xf32, #tpu.memory_space<vmem>>, vector<64x192xf32>
    %c0_7 = arith.constant 0 : index
    %c0_8 = arith.constant 0 : index
    %7 = vector.load %arg4[%c0_7, %c0_8] : memref<1x64xf32, #tpu.memory_space<vmem>>, vector<1x64xf32>
    %8 = vector.shape_cast %7 : vector<1x64xf32> to vector<1x64xf32>
    %9 = vector.broadcast %8 : vector<1x64xf32> to vector<48x64xf32>
    %10 = vector.extract_strided_slice %5 {offsets = [0, 0], sizes = [48, 192], strides = [1, 1]} : vector<384x192xf32> to vector<48x192xf32>
    %11 = vector.extract_strided_slice %10 {offsets = [0, 0], sizes = [48, 128], strides = [1, 1]} : vector<48x192xf32> to vector<48x128xf32>
    %12 = arith.negf %11 : vector<48x128xf32>
    %13 = math.exp %12 : vector<48x128xf32>
    %cst_9 = arith.constant 1.000000e+00 : f32
    %14 = vector.broadcast %cst_9 : f32 to vector<48x128xf32>
    %15 = arith.addf %14, %13 : vector<48x128xf32>
    %16 = arith.divf %14, %15 : vector<48x128xf32>
    %17 = vector.extract_strided_slice %16 {offsets = [0, 0], sizes = [48, 64], strides = [1, 1]} : vector<48x128xf32> to vector<48x64xf32>
    %18 = vector.extract_strided_slice %16 {offsets = [0, 64], sizes = [48, 64], strides = [1, 1]} : vector<48x128xf32> to vector<48x64xf32>
    %19 = vector.extract_strided_slice %10 {offsets = [0, 128], sizes = [48, 64], strides = [1, 1]} : vector<48x192xf32> to vector<48x64xf32>
    %20 = arith.mulf %17, %9 : vector<48x64xf32>
    %21 = arith.addf %19, %20 : vector<48x64xf32>
    %22 = math.tanh %21 : vector<48x64xf32>
    %cst_10 = arith.constant 1.000000e+00 : f32
    %23 = vector.broadcast %cst_10 : f32 to vector<48x64xf32>
    %24 = arith.subf %23, %18 : vector<48x64xf32>
    %25 = arith.mulf %24, %22 : vector<48x64xf32>
    %26 = vector.extract_strided_slice %5 {offsets = [48, 0], sizes = [48, 192], strides = [1, 1]} : vector<384x192xf32> to vector<48x192xf32>
    %cst_11 = arith.constant dense<0.000000e+00> : vector<48x192xf32>
    %27 = tpu.matmul %25, %6, %cst_11 {dimension_numbers = #tpu.dot_dimension_numbers<[1], [0], [0], [1], [0, 0, 1, 1], [], []>} : vector<48x64xf32>, vector<64x192xf32>, vector<48x192xf32> -> vector<48x192xf32>
    %28 = vector.extract_strided_slice %26 {offsets = [0, 0], sizes = [48, 128], strides = [1, 1]} : vector<48x192xf32> to vector<48x128xf32>
    %29 = vector.extract_strided_slice %27 {offsets = [0, 0], sizes = [48, 128], strides = [1, 1]} : vector<48x192xf32> to vector<48x128xf32>
    %30 = arith.addf %28, %29 : vector<48x128xf32>
    %31 = arith.negf %30 : vector<48x128xf32>
    %32 = math.exp %31 : vector<48x128xf32>
    %cst_12 = arith.constant 1.000000e+00 : f32
    %33 = vector.broadcast %cst_12 : f32 to vector<48x128xf32>
    %34 = arith.addf %33, %32 : vector<48x128xf32>
    %35 = arith.divf %33, %34 : vector<48x128xf32>
    %36 = vector.extract_strided_slice %27 {offsets = [0, 128], sizes = [48, 64], strides = [1, 1]} : vector<48x192xf32> to vector<48x64xf32>
    %37 = arith.addf %36, %9 : vector<48x64xf32>
    %38 = vector.extract_strided_slice %35 {offsets = [0, 0], sizes = [48, 64], strides = [1, 1]} : vector<48x128xf32> to vector<48x64xf32>
    %39 = vector.extract_strided_slice %35 {offsets = [0, 64], sizes = [48, 64], strides = [1, 1]} : vector<48x128xf32> to vector<48x64xf32>
    %40 = vector.extract_strided_slice %26 {offsets = [0, 128], sizes = [48, 64], strides = [1, 1]} : vector<48x192xf32> to vector<48x64xf32>
    %41 = arith.mulf %38, %37 : vector<48x64xf32>
    %42 = arith.addf %40, %41 : vector<48x64xf32>
    %43 = math.tanh %42 : vector<48x64xf32>
    %cst_13 = arith.constant 1.000000e+00 : f32
    %44 = vector.broadcast %cst_13 : f32 to vector<48x64xf32>
    %45 = arith.subf %44, %39 : vector<48x64xf32>
    %46 = arith.mulf %45, %43 : vector<48x64xf32>
    %47 = arith.mulf %39, %25 : vector<48x64xf32>
    %48 = arith.addf %46, %47 : vector<48x64xf32>
    %49 = vector.extract_strided_slice %5 {offsets = [96, 0], sizes = [48, 192], strides = [1, 1]} : vector<384x192xf32> to vector<48x192xf32>
    %cst_14 = arith.constant dense<0.000000e+00> : vector<48x192xf32>
    %50 = tpu.matmul %48, %6, %cst_14 {dimension_numbers = #tpu.dot_dimension_numbers<[1], [0], [0], [1], [0, 0, 1, 1], [], []>} : vector<48x64xf32>, vector<64x192xf32>, vector<48x192xf32> -> vector<48x192xf32>
    %51 = vector.extract_strided_slice %49 {offsets = [0, 0], sizes = [48, 128], strides = [1, 1]} : vector<48x192xf32> to vector<48x128xf32>
    %52 = vector.extract_strided_slice %50 {offsets = [0, 0], sizes = [48, 128], strides = [1, 1]} : vector<48x192xf32> to vector<48x128xf32>
    %53 = arith.addf %51, %52 : vector<48x128xf32>
    %54 = arith.negf %53 : vector<48x128xf32>
    %55 = math.exp %54 : vector<48x128xf32>
    %cst_15 = arith.constant 1.000000e+00 : f32
    %56 = vector.broadcast %cst_15 : f32 to vector<48x128xf32>
    %57 = arith.addf %56, %55 : vector<48x128xf32>
    %58 = arith.divf %56, %57 : vector<48x128xf32>
    %59 = vector.extract_strided_slice %50 {offsets = [0, 128], sizes = [48, 64], strides = [1, 1]} : vector<48x192xf32> to vector<48x64xf32>
    %60 = arith.addf %59, %9 : vector<48x64xf32>
    %61 = vector.extract_strided_slice %58 {offsets = [0, 0], sizes = [48, 64], strides = [1, 1]} : vector<48x128xf32> to vector<48x64xf32>
    %62 = vector.extract_strided_slice %58 {offsets = [0, 64], sizes = [48, 64], strides = [1, 1]} : vector<48x128xf32> to vector<48x64xf32>
    %63 = vector.extract_strided_slice %49 {offsets = [0, 128], sizes = [48, 64], strides = [1, 1]} : vector<48x192xf32> to vector<48x64xf32>
    %64 = arith.mulf %61, %60 : vector<48x64xf32>
    %65 = arith.addf %63, %64 : vector<48x64xf32>
    %66 = math.tanh %65 : vector<48x64xf32>
    %cst_16 = arith.constant 1.000000e+00 : f32
    %67 = vector.broadcast %cst_16 : f32 to vector<48x64xf32>
    %68 = arith.subf %67, %62 : vector<48x64xf32>
    %69 = arith.mulf %68, %66 : vector<48x64xf32>
    %70 = arith.mulf %62, %48 : vector<48x64xf32>
    %71 = arith.addf %69, %70 : vector<48x64xf32>
    %72 = vector.extract_strided_slice %5 {offsets = [144, 0], sizes = [48, 192], strides = [1, 1]} : vector<384x192xf32> to vector<48x192xf32>
    %cst_17 = arith.constant dense<0.000000e+00> : vector<48x192xf32>
    %73 = tpu.matmul %71, %6, %cst_17 {dimension_numbers = #tpu.dot_dimension_numbers<[1], [0], [0], [1], [0, 0, 1, 1], [], []>} : vector<48x64xf32>, vector<64x192xf32>, vector<48x192xf32> -> vector<48x192xf32>
    %74 = vector.extract_strided_slice %72 {offsets = [0, 0], sizes = [48, 128], strides = [1, 1]} : vector<48x192xf32> to vector<48x128xf32>
    %75 = vector.extract_strided_slice %73 {offsets = [0, 0], sizes = [48, 128], strides = [1, 1]} : vector<48x192xf32> to vector<48x128xf32>
    %76 = arith.addf %74, %75 : vector<48x128xf32>
    %77 = arith.negf %76 : vector<48x128xf32>
    %78 = math.exp %77 : vector<48x128xf32>
    %cst_18 = arith.constant 1.000000e+00 : f32
    %79 = vector.broadcast %cst_18 : f32 to vector<48x128xf32>
    %80 = arith.addf %79, %78 : vector<48x128xf32>
    %81 = arith.divf %79, %80 : vector<48x128xf32>
    %82 = vector.extract_strided_slice %73 {offsets = [0, 128], sizes = [48, 64], strides = [1, 1]} : vector<48x192xf32> to vector<48x64xf32>
    %83 = arith.addf %82, %9 : vector<48x64xf32>
    %84 = vector.extract_strided_slice %81 {offsets = [0, 0], sizes = [48, 64], strides = [1, 1]} : vector<48x128xf32> to vector<48x64xf32>
    %85 = vector.extract_strided_slice %81 {offsets = [0, 64], sizes = [48, 64], strides = [1, 1]} : vector<48x128xf32> to vector<48x64xf32>
    %86 = vector.extract_strided_slice %72 {offsets = [0, 128], sizes = [48, 64], strides = [1, 1]} : vector<48x192xf32> to vector<48x64xf32>
    %87 = arith.mulf %84, %83 : vector<48x64xf32>
    %88 = arith.addf %86, %87 : vector<48x64xf32>
    %89 = math.tanh %88 : vector<48x64xf32>
    %cst_19 = arith.constant 1.000000e+00 : f32
    %90 = vector.broadcast %cst_19 : f32 to vector<48x64xf32>
    %91 = arith.subf %90, %85 : vector<48x64xf32>
    %92 = arith.mulf %91, %89 : vector<48x64xf32>
    %93 = arith.mulf %85, %71 : vector<48x64xf32>
    %94 = arith.addf %92, %93 : vector<48x64xf32>
    %95 = vector.extract_strided_slice %5 {offsets = [192, 0], sizes = [48, 192], strides = [1, 1]} : vector<384x192xf32> to vector<48x192xf32>
    %cst_20 = arith.constant dense<0.000000e+00> : vector<48x192xf32>
    %96 = tpu.matmul %94, %6, %cst_20 {dimension_numbers = #tpu.dot_dimension_numbers<[1], [0], [0], [1], [0, 0, 1, 1], [], []>} : vector<48x64xf32>, vector<64x192xf32>, vector<48x192xf32> -> vector<48x192xf32>
    %97 = vector.extract_strided_slice %95 {offsets = [0, 0], sizes = [48, 128], strides = [1, 1]} : vector<48x192xf32> to vector<48x128xf32>
    %98 = vector.extract_strided_slice %96 {offsets = [0, 0], sizes = [48, 128], strides = [1, 1]} : vector<48x192xf32> to vector<48x128xf32>
    %99 = arith.addf %97, %98 : vector<48x128xf32>
    %100 = arith.negf %99 : vector<48x128xf32>
    %101 = math.exp %100 : vector<48x128xf32>
    %cst_21 = arith.constant 1.000000e+00 : f32
    %102 = vector.broadcast %cst_21 : f32 to vector<48x128xf32>
    %103 = arith.addf %102, %101 : vector<48x128xf32>
    %104 = arith.divf %102, %103 : vector<48x128xf32>
    %105 = vector.extract_strided_slice %96 {offsets = [0, 128], sizes = [48, 64], strides = [1, 1]} : vector<48x192xf32> to vector<48x64xf32>
    %106 = arith.addf %105, %9 : vector<48x64xf32>
    %107 = vector.extract_strided_slice %104 {offsets = [0, 0], sizes = [48, 64], strides = [1, 1]} : vector<48x128xf32> to vector<48x64xf32>
    %108 = vector.extract_strided_slice %104 {offsets = [0, 64], sizes = [48, 64], strides = [1, 1]} : vector<48x128xf32> to vector<48x64xf32>
    %109 = vector.extract_strided_slice %95 {offsets = [0, 128], sizes = [48, 64], strides = [1, 1]} : vector<48x192xf32> to vector<48x64xf32>
    %110 = arith.mulf %107, %106 : vector<48x64xf32>
    %111 = arith.addf %109, %110 : vector<48x64xf32>
    %112 = math.tanh %111 : vector<48x64xf32>
    %cst_22 = arith.constant 1.000000e+00 : f32
    %113 = vector.broadcast %cst_22 : f32 to vector<48x64xf32>
    %114 = arith.subf %113, %108 : vector<48x64xf32>
    %115 = arith.mulf %114, %112 : vector<48x64xf32>
    %116 = arith.mulf %108, %94 : vector<48x64xf32>
    %117 = arith.addf %115, %116 : vector<48x64xf32>
    %118 = vector.extract_strided_slice %5 {offsets = [240, 0], sizes = [48, 192], strides = [1, 1]} : vector<384x192xf32> to vector<48x192xf32>
    %cst_23 = arith.constant dense<0.000000e+00> : vector<48x192xf32>
    %119 = tpu.matmul %117, %6, %cst_23 {dimension_numbers = #tpu.dot_dimension_numbers<[1], [0], [0], [1], [0, 0, 1, 1], [], []>} : vector<48x64xf32>, vector<64x192xf32>, vector<48x192xf32> -> vector<48x192xf32>
    %120 = vector.extract_strided_slice %118 {offsets = [0, 0], sizes = [48, 128], strides = [1, 1]} : vector<48x192xf32> to vector<48x128xf32>
    %121 = vector.extract_strided_slice %119 {offsets = [0, 0], sizes = [48, 128], strides = [1, 1]} : vector<48x192xf32> to vector<48x128xf32>
    %122 = arith.addf %120, %121 : vector<48x128xf32>
    %123 = arith.negf %122 : vector<48x128xf32>
    %124 = math.exp %123 : vector<48x128xf32>
    %cst_24 = arith.constant 1.000000e+00 : f32
    %125 = vector.broadcast %cst_24 : f32 to vector<48x128xf32>
    %126 = arith.addf %125, %124 : vector<48x128xf32>
    %127 = arith.divf %125, %126 : vector<48x128xf32>
    %128 = vector.extract_strided_slice %119 {offsets = [0, 128], sizes = [48, 64], strides = [1, 1]} : vector<48x192xf32> to vector<48x64xf32>
    %129 = arith.addf %128, %9 : vector<48x64xf32>
    %130 = vector.extract_strided_slice %127 {offsets = [0, 0], sizes = [48, 64], strides = [1, 1]} : vector<48x128xf32> to vector<48x64xf32>
    %131 = vector.extract_strided_slice %127 {offsets = [0, 64], sizes = [48, 64], strides = [1, 1]} : vector<48x128xf32> to vector<48x64xf32>
    %132 = vector.extract_strided_slice %118 {offsets = [0, 128], sizes = [48, 64], strides = [1, 1]} : vector<48x192xf32> to vector<48x64xf32>
    %133 = arith.mulf %130, %129 : vector<48x64xf32>
    %134 = arith.addf %132, %133 : vector<48x64xf32>
    %135 = math.tanh %134 : vector<48x64xf32>
    %cst_25 = arith.constant 1.000000e+00 : f32
    %136 = vector.broadcast %cst_25 : f32 to vector<48x64xf32>
    %137 = arith.subf %136, %131 : vector<48x64xf32>
    %138 = arith.mulf %137, %135 : vector<48x64xf32>
    %139 = arith.mulf %131, %117 : vector<48x64xf32>
    %140 = arith.addf %138, %139 : vector<48x64xf32>
    %141 = vector.extract_strided_slice %5 {offsets = [288, 0], sizes = [48, 192], strides = [1, 1]} : vector<384x192xf32> to vector<48x192xf32>
    %cst_26 = arith.constant dense<0.000000e+00> : vector<48x192xf32>
    %142 = tpu.matmul %140, %6, %cst_26 {dimension_numbers = #tpu.dot_dimension_numbers<[1], [0], [0], [1], [0, 0, 1, 1], [], []>} : vector<48x64xf32>, vector<64x192xf32>, vector<48x192xf32> -> vector<48x192xf32>
    %143 = vector.extract_strided_slice %141 {offsets = [0, 0], sizes = [48, 128], strides = [1, 1]} : vector<48x192xf32> to vector<48x128xf32>
    %144 = vector.extract_strided_slice %142 {offsets = [0, 0], sizes = [48, 128], strides = [1, 1]} : vector<48x192xf32> to vector<48x128xf32>
    %145 = arith.addf %143, %144 : vector<48x128xf32>
    %146 = arith.negf %145 : vector<48x128xf32>
    %147 = math.exp %146 : vector<48x128xf32>
    %cst_27 = arith.constant 1.000000e+00 : f32
    %148 = vector.broadcast %cst_27 : f32 to vector<48x128xf32>
    %149 = arith.addf %148, %147 : vector<48x128xf32>
    %150 = arith.divf %148, %149 : vector<48x128xf32>
    %151 = vector.extract_strided_slice %142 {offsets = [0, 128], sizes = [48, 64], strides = [1, 1]} : vector<48x192xf32> to vector<48x64xf32>
    %152 = arith.addf %151, %9 : vector<48x64xf32>
    %153 = vector.extract_strided_slice %150 {offsets = [0, 0], sizes = [48, 64], strides = [1, 1]} : vector<48x128xf32> to vector<48x64xf32>
    %154 = vector.extract_strided_slice %150 {offsets = [0, 64], sizes = [48, 64], strides = [1, 1]} : vector<48x128xf32> to vector<48x64xf32>
    %155 = vector.extract_strided_slice %141 {offsets = [0, 128], sizes = [48, 64], strides = [1, 1]} : vector<48x192xf32> to vector<48x64xf32>
    %156 = arith.mulf %153, %152 : vector<48x64xf32>
    %157 = arith.addf %155, %156 : vector<48x64xf32>
    %158 = math.tanh %157 : vector<48x64xf32>
    %cst_28 = arith.constant 1.000000e+00 : f32
    %159 = vector.broadcast %cst_28 : f32 to vector<48x64xf32>
    %160 = arith.subf %159, %154 : vector<48x64xf32>
    %161 = arith.mulf %160, %158 : vector<48x64xf32>
    %162 = arith.mulf %154, %140 : vector<48x64xf32>
    %163 = arith.addf %161, %162 : vector<48x64xf32>
    %164 = vector.extract_strided_slice %5 {offsets = [336, 0], sizes = [48, 192], strides = [1, 1]} : vector<384x192xf32> to vector<48x192xf32>
    %cst_29 = arith.constant dense<0.000000e+00> : vector<48x192xf32>
    %165 = tpu.matmul %163, %6, %cst_29 {dimension_numbers = #tpu.dot_dimension_numbers<[1], [0], [0], [1], [0, 0, 1, 1], [], []>} : vector<48x64xf32>, vector<64x192xf32>, vector<48x192xf32> -> vector<48x192xf32>
    %166 = vector.extract_strided_slice %164 {offsets = [0, 0], sizes = [48, 128], strides = [1, 1]} : vector<48x192xf32> to vector<48x128xf32>
    %167 = vector.extract_strided_slice %165 {offsets = [0, 0], sizes = [48, 128], strides = [1, 1]} : vector<48x192xf32> to vector<48x128xf32>
    %168 = arith.addf %166, %167 : vector<48x128xf32>
    %169 = arith.negf %168 : vector<48x128xf32>
    %170 = math.exp %169 : vector<48x128xf32>
    %cst_30 = arith.constant 1.000000e+00 : f32
    %171 = vector.broadcast %cst_30 : f32 to vector<48x128xf32>
    %172 = arith.addf %171, %170 : vector<48x128xf32>
    %173 = arith.divf %171, %172 : vector<48x128xf32>
    %174 = vector.extract_strided_slice %165 {offsets = [0, 128], sizes = [48, 64], strides = [1, 1]} : vector<48x192xf32> to vector<48x64xf32>
    %175 = arith.addf %174, %9 : vector<48x64xf32>
    %176 = vector.extract_strided_slice %173 {offsets = [0, 0], sizes = [48, 64], strides = [1, 1]} : vector<48x128xf32> to vector<48x64xf32>
    %177 = vector.extract_strided_slice %173 {offsets = [0, 64], sizes = [48, 64], strides = [1, 1]} : vector<48x128xf32> to vector<48x64xf32>
    %178 = vector.extract_strided_slice %164 {offsets = [0, 128], sizes = [48, 64], strides = [1, 1]} : vector<48x192xf32> to vector<48x64xf32>
    %179 = arith.mulf %176, %175 : vector<48x64xf32>
    %180 = arith.addf %178, %179 : vector<48x64xf32>
    %181 = math.tanh %180 : vector<48x64xf32>
    %cst_31 = arith.constant 1.000000e+00 : f32
    %182 = vector.broadcast %cst_31 : f32 to vector<48x64xf32>
    %183 = arith.subf %182, %177 : vector<48x64xf32>
    %184 = arith.mulf %183, %181 : vector<48x64xf32>
    %185 = arith.mulf %177, %163 : vector<48x64xf32>
    %186 = arith.addf %184, %185 : vector<48x64xf32>
    %c0_32 = arith.constant 0 : index
    %c0_33 = arith.constant 0 : index
    %187 = vector.load %arg5[%c0_32, %c0_33] : memref<64x96xf32, #tpu.memory_space<vmem>>, vector<64x96xf32>
    %cst_34 = arith.constant dense<0.000000e+00> : vector<48x96xf32>
    %188 = tpu.matmul %186, %187, %cst_34 {dimension_numbers = #tpu.dot_dimension_numbers<[1], [0], [0], [1], [0, 0, 1, 1], [], []>} : vector<48x64xf32>, vector<64x96xf32>, vector<48x96xf32> -> vector<48x96xf32>
    %c0_35 = arith.constant 0 : index
    %c0_36 = arith.constant 0 : index
    %189 = vector.load %arg6[%c0_35, %c0_36] : memref<1x96xf32, #tpu.memory_space<vmem>>, vector<1x96xf32>
    %190 = vector.broadcast %189 : vector<1x96xf32> to vector<48x96xf32>
    %191 = arith.addf %188, %190 : vector<48x96xf32>
    %c0_37 = arith.constant 0 : index
    %c0_38 = arith.constant 0 : index
    %192 = vector.load %arg7[%c0_37, %c0_38] : memref<32x96xf32, #tpu.memory_space<vmem>>, vector<32x96xf32>
    %c0_39 = arith.constant 0 : index
    %c0_40 = arith.constant 0 : index
    %193 = vector.load %arg8[%c0_39, %c0_40] : memref<1x32xf32, #tpu.memory_space<vmem>>, vector<1x32xf32>
    %194 = vector.shape_cast %193 : vector<1x32xf32> to vector<1x32xf32>
    %195 = vector.broadcast %194 : vector<1x32xf32> to vector<8x32xf32>
    %196 = vector.extract_strided_slice %191 {offsets = [0, 0], sizes = [8, 96], strides = [1, 1]} : vector<48x96xf32> to vector<8x96xf32>
    %197 = vector.extract_strided_slice %196 {offsets = [0, 0], sizes = [8, 64], strides = [1, 1]} : vector<8x96xf32> to vector<8x64xf32>
    %198 = arith.negf %197 : vector<8x64xf32>
    %199 = math.exp %198 : vector<8x64xf32>
    %cst_41 = arith.constant 1.000000e+00 : f32
    %200 = vector.broadcast %cst_41 : f32 to vector<8x64xf32>
    %201 = arith.addf %200, %199 : vector<8x64xf32>
    %202 = arith.divf %200, %201 : vector<8x64xf32>
    %203 = vector.extract_strided_slice %202 {offsets = [0, 0], sizes = [8, 32], strides = [1, 1]} : vector<8x64xf32> to vector<8x32xf32>
    %204 = vector.extract_strided_slice %202 {offsets = [0, 32], sizes = [8, 32], strides = [1, 1]} : vector<8x64xf32> to vector<8x32xf32>
    %205 = vector.extract_strided_slice %196 {offsets = [0, 64], sizes = [8, 32], strides = [1, 1]} : vector<8x96xf32> to vector<8x32xf32>
    %206 = arith.mulf %203, %195 : vector<8x32xf32>
    %207 = arith.addf %205, %206 : vector<8x32xf32>
    %208 = math.tanh %207 : vector<8x32xf32>
    %cst_42 = arith.constant 1.000000e+00 : f32
    %209 = vector.broadcast %cst_42 : f32 to vector<8x32xf32>
    %210 = arith.subf %209, %204 : vector<8x32xf32>
    %211 = arith.mulf %210, %208 : vector<8x32xf32>
    %212 = vector.extract_strided_slice %191 {offsets = [8, 0], sizes = [8, 96], strides = [1, 1]} : vector<48x96xf32> to vector<8x96xf32>
    %cst_43 = arith.constant dense<0.000000e+00> : vector<8x96xf32>
    %213 = tpu.matmul %211, %192, %cst_43 {dimension_numbers = #tpu.dot_dimension_numbers<[1], [0], [0], [1], [0, 0, 1, 1], [], []>} : vector<8x32xf32>, vector<32x96xf32>, vector<8x96xf32> -> vector<8x96xf32>
    %214 = vector.extract_strided_slice %212 {offsets = [0, 0], sizes = [8, 64], strides = [1, 1]} : vector<8x96xf32> to vector<8x64xf32>
    %215 = vector.extract_strided_slice %213 {offsets = [0, 0], sizes = [8, 64], strides = [1, 1]} : vector<8x96xf32> to vector<8x64xf32>
    %216 = arith.addf %214, %215 : vector<8x64xf32>
    %217 = arith.negf %216 : vector<8x64xf32>
    %218 = math.exp %217 : vector<8x64xf32>
    %cst_44 = arith.constant 1.000000e+00 : f32
    %219 = vector.broadcast %cst_44 : f32 to vector<8x64xf32>
    %220 = arith.addf %219, %218 : vector<8x64xf32>
    %221 = arith.divf %219, %220 : vector<8x64xf32>
    %222 = vector.extract_strided_slice %213 {offsets = [0, 64], sizes = [8, 32], strides = [1, 1]} : vector<8x96xf32> to vector<8x32xf32>
    %223 = arith.addf %222, %195 : vector<8x32xf32>
    %224 = vector.extract_strided_slice %221 {offsets = [0, 0], sizes = [8, 32], strides = [1, 1]} : vector<8x64xf32> to vector<8x32xf32>
    %225 = vector.extract_strided_slice %221 {offsets = [0, 32], sizes = [8, 32], strides = [1, 1]} : vector<8x64xf32> to vector<8x32xf32>
    %226 = vector.extract_strided_slice %212 {offsets = [0, 64], sizes = [8, 32], strides = [1, 1]} : vector<8x96xf32> to vector<8x32xf32>
    %227 = arith.mulf %224, %223 : vector<8x32xf32>
    %228 = arith.addf %226, %227 : vector<8x32xf32>
    %229 = math.tanh %228 : vector<8x32xf32>
    %cst_45 = arith.constant 1.000000e+00 : f32
    %230 = vector.broadcast %cst_45 : f32 to vector<8x32xf32>
    %231 = arith.subf %230, %225 : vector<8x32xf32>
    %232 = arith.mulf %231, %229 : vector<8x32xf32>
    %233 = arith.mulf %225, %211 : vector<8x32xf32>
    %234 = arith.addf %232, %233 : vector<8x32xf32>
    %235 = vector.extract_strided_slice %191 {offsets = [16, 0], sizes = [8, 96], strides = [1, 1]} : vector<48x96xf32> to vector<8x96xf32>
    %cst_46 = arith.constant dense<0.000000e+00> : vector<8x96xf32>
    %236 = tpu.matmul %234, %192, %cst_46 {dimension_numbers = #tpu.dot_dimension_numbers<[1], [0], [0], [1], [0, 0, 1, 1], [], []>} : vector<8x32xf32>, vector<32x96xf32>, vector<8x96xf32> -> vector<8x96xf32>
    %237 = vector.extract_strided_slice %235 {offsets = [0, 0], sizes = [8, 64], strides = [1, 1]} : vector<8x96xf32> to vector<8x64xf32>
    %238 = vector.extract_strided_slice %236 {offsets = [0, 0], sizes = [8, 64], strides = [1, 1]} : vector<8x96xf32> to vector<8x64xf32>
    %239 = arith.addf %237, %238 : vector<8x64xf32>
    %240 = arith.negf %239 : vector<8x64xf32>
    %241 = math.exp %240 : vector<8x64xf32>
    %cst_47 = arith.constant 1.000000e+00 : f32
    %242 = vector.broadcast %cst_47 : f32 to vector<8x64xf32>
    %243 = arith.addf %242, %241 : vector<8x64xf32>
    %244 = arith.divf %242, %243 : vector<8x64xf32>
    %245 = vector.extract_strided_slice %236 {offsets = [0, 64], sizes = [8, 32], strides = [1, 1]} : vector<8x96xf32> to vector<8x32xf32>
    %246 = arith.addf %245, %195 : vector<8x32xf32>
    %247 = vector.extract_strided_slice %244 {offsets = [0, 0], sizes = [8, 32], strides = [1, 1]} : vector<8x64xf32> to vector<8x32xf32>
    %248 = vector.extract_strided_slice %244 {offsets = [0, 32], sizes = [8, 32], strides = [1, 1]} : vector<8x64xf32> to vector<8x32xf32>
    %249 = vector.extract_strided_slice %235 {offsets = [0, 64], sizes = [8, 32], strides = [1, 1]} : vector<8x96xf32> to vector<8x32xf32>
    %250 = arith.mulf %247, %246 : vector<8x32xf32>
    %251 = arith.addf %249, %250 : vector<8x32xf32>
    %252 = math.tanh %251 : vector<8x32xf32>
    %cst_48 = arith.constant 1.000000e+00 : f32
    %253 = vector.broadcast %cst_48 : f32 to vector<8x32xf32>
    %254 = arith.subf %253, %248 : vector<8x32xf32>
    %255 = arith.mulf %254, %252 : vector<8x32xf32>
    %256 = arith.mulf %248, %234 : vector<8x32xf32>
    %257 = arith.addf %255, %256 : vector<8x32xf32>
    %258 = vector.extract_strided_slice %191 {offsets = [24, 0], sizes = [8, 96], strides = [1, 1]} : vector<48x96xf32> to vector<8x96xf32>
    %cst_49 = arith.constant dense<0.000000e+00> : vector<8x96xf32>
    %259 = tpu.matmul %257, %192, %cst_49 {dimension_numbers = #tpu.dot_dimension_numbers<[1], [0], [0], [1], [0, 0, 1, 1], [], []>} : vector<8x32xf32>, vector<32x96xf32>, vector<8x96xf32> -> vector<8x96xf32>
    %260 = vector.extract_strided_slice %258 {offsets = [0, 0], sizes = [8, 64], strides = [1, 1]} : vector<8x96xf32> to vector<8x64xf32>
    %261 = vector.extract_strided_slice %259 {offsets = [0, 0], sizes = [8, 64], strides = [1, 1]} : vector<8x96xf32> to vector<8x64xf32>
    %262 = arith.addf %260, %261 : vector<8x64xf32>
    %263 = arith.negf %262 : vector<8x64xf32>
    %264 = math.exp %263 : vector<8x64xf32>
    %cst_50 = arith.constant 1.000000e+00 : f32
    %265 = vector.broadcast %cst_50 : f32 to vector<8x64xf32>
    %266 = arith.addf %265, %264 : vector<8x64xf32>
    %267 = arith.divf %265, %266 : vector<8x64xf32>
    %268 = vector.extract_strided_slice %259 {offsets = [0, 64], sizes = [8, 32], strides = [1, 1]} : vector<8x96xf32> to vector<8x32xf32>
    %269 = arith.addf %268, %195 : vector<8x32xf32>
    %270 = vector.extract_strided_slice %267 {offsets = [0, 0], sizes = [8, 32], strides = [1, 1]} : vector<8x64xf32> to vector<8x32xf32>
    %271 = vector.extract_strided_slice %267 {offsets = [0, 32], sizes = [8, 32], strides = [1, 1]} : vector<8x64xf32> to vector<8x32xf32>
    %272 = vector.extract_strided_slice %258 {offsets = [0, 64], sizes = [8, 32], strides = [1, 1]} : vector<8x96xf32> to vector<8x32xf32>
    %273 = arith.mulf %270, %269 : vector<8x32xf32>
    %274 = arith.addf %272, %273 : vector<8x32xf32>
    %275 = math.tanh %274 : vector<8x32xf32>
    %cst_51 = arith.constant 1.000000e+00 : f32
    %276 = vector.broadcast %cst_51 : f32 to vector<8x32xf32>
    %277 = arith.subf %276, %271 : vector<8x32xf32>
    %278 = arith.mulf %277, %275 : vector<8x32xf32>
    %279 = arith.mulf %271, %257 : vector<8x32xf32>
    %280 = arith.addf %278, %279 : vector<8x32xf32>
    %281 = vector.extract_strided_slice %191 {offsets = [32, 0], sizes = [8, 96], strides = [1, 1]} : vector<48x96xf32> to vector<8x96xf32>
    %cst_52 = arith.constant dense<0.000000e+00> : vector<8x96xf32>
    %282 = tpu.matmul %280, %192, %cst_52 {dimension_numbers = #tpu.dot_dimension_numbers<[1], [0], [0], [1], [0, 0, 1, 1], [], []>} : vector<8x32xf32>, vector<32x96xf32>, vector<8x96xf32> -> vector<8x96xf32>
    %283 = vector.extract_strided_slice %281 {offsets = [0, 0], sizes = [8, 64], strides = [1, 1]} : vector<8x96xf32> to vector<8x64xf32>
    %284 = vector.extract_strided_slice %282 {offsets = [0, 0], sizes = [8, 64], strides = [1, 1]} : vector<8x96xf32> to vector<8x64xf32>
    %285 = arith.addf %283, %284 : vector<8x64xf32>
    %286 = arith.negf %285 : vector<8x64xf32>
    %287 = math.exp %286 : vector<8x64xf32>
    %cst_53 = arith.constant 1.000000e+00 : f32
    %288 = vector.broadcast %cst_53 : f32 to vector<8x64xf32>
    %289 = arith.addf %288, %287 : vector<8x64xf32>
    %290 = arith.divf %288, %289 : vector<8x64xf32>
    %291 = vector.extract_strided_slice %282 {offsets = [0, 64], sizes = [8, 32], strides = [1, 1]} : vector<8x96xf32> to vector<8x32xf32>
    %292 = arith.addf %291, %195 : vector<8x32xf32>
    %293 = vector.extract_strided_slice %290 {offsets = [0, 0], sizes = [8, 32], strides = [1, 1]} : vector<8x64xf32> to vector<8x32xf32>
    %294 = vector.extract_strided_slice %290 {offsets = [0, 32], sizes = [8, 32], strides = [1, 1]} : vector<8x64xf32> to vector<8x32xf32>
    %295 = vector.extract_strided_slice %281 {offsets = [0, 64], sizes = [8, 32], strides = [1, 1]} : vector<8x96xf32> to vector<8x32xf32>
    %296 = arith.mulf %293, %292 : vector<8x32xf32>
    %297 = arith.addf %295, %296 : vector<8x32xf32>
    %298 = math.tanh %297 : vector<8x32xf32>
    %cst_54 = arith.constant 1.000000e+00 : f32
    %299 = vector.broadcast %cst_54 : f32 to vector<8x32xf32>
    %300 = arith.subf %299, %294 : vector<8x32xf32>
    %301 = arith.mulf %300, %298 : vector<8x32xf32>
    %302 = arith.mulf %294, %280 : vector<8x32xf32>
    %303 = arith.addf %301, %302 : vector<8x32xf32>
    %304 = vector.extract_strided_slice %191 {offsets = [40, 0], sizes = [8, 96], strides = [1, 1]} : vector<48x96xf32> to vector<8x96xf32>
    %cst_55 = arith.constant dense<0.000000e+00> : vector<8x96xf32>
    %305 = tpu.matmul %303, %192, %cst_55 {dimension_numbers = #tpu.dot_dimension_numbers<[1], [0], [0], [1], [0, 0, 1, 1], [], []>} : vector<8x32xf32>, vector<32x96xf32>, vector<8x96xf32> -> vector<8x96xf32>
    %306 = vector.extract_strided_slice %304 {offsets = [0, 0], sizes = [8, 64], strides = [1, 1]} : vector<8x96xf32> to vector<8x64xf32>
    %307 = vector.extract_strided_slice %305 {offsets = [0, 0], sizes = [8, 64], strides = [1, 1]} : vector<8x96xf32> to vector<8x64xf32>
    %308 = arith.addf %306, %307 : vector<8x64xf32>
    %309 = arith.negf %308 : vector<8x64xf32>
    %310 = math.exp %309 : vector<8x64xf32>
    %cst_56 = arith.constant 1.000000e+00 : f32
    %311 = vector.broadcast %cst_56 : f32 to vector<8x64xf32>
    %312 = arith.addf %311, %310 : vector<8x64xf32>
    %313 = arith.divf %311, %312 : vector<8x64xf32>
    %314 = vector.extract_strided_slice %305 {offsets = [0, 64], sizes = [8, 32], strides = [1, 1]} : vector<8x96xf32> to vector<8x32xf32>
    %315 = arith.addf %314, %195 : vector<8x32xf32>
    %316 = vector.extract_strided_slice %313 {offsets = [0, 0], sizes = [8, 32], strides = [1, 1]} : vector<8x64xf32> to vector<8x32xf32>
    %317 = vector.extract_strided_slice %313 {offsets = [0, 32], sizes = [8, 32], strides = [1, 1]} : vector<8x64xf32> to vector<8x32xf32>
    %318 = vector.extract_strided_slice %304 {offsets = [0, 64], sizes = [8, 32], strides = [1, 1]} : vector<8x96xf32> to vector<8x32xf32>
    %319 = arith.mulf %316, %315 : vector<8x32xf32>
    %320 = arith.addf %318, %319 : vector<8x32xf32>
    %321 = math.tanh %320 : vector<8x32xf32>
    %cst_57 = arith.constant 1.000000e+00 : f32
    %322 = vector.broadcast %cst_57 : f32 to vector<8x32xf32>
    %323 = arith.subf %322, %317 : vector<8x32xf32>
    %324 = arith.mulf %323, %321 : vector<8x32xf32>
    %325 = arith.mulf %317, %303 : vector<8x32xf32>
    %326 = arith.addf %324, %325 : vector<8x32xf32>
    %c0_58 = arith.constant 0 : index
    %c0_59 = arith.constant 0 : index
    %327 = vector.load %arg11[%c0_58, %c0_59] : memref<8x32xf32, #tpu.memory_space<vmem>>, vector<8x32xf32>
    tpu.vector_store %arg11[%c0_58, %c0_59], %326 {strides = array<i32>} : memref<8x32xf32, #tpu.memory_space<vmem>>, vector<8x32xf32>,
    %c0_60 = arith.constant 0 : index
    %c0_61 = arith.constant 0 : index
    %328 = vector.load %arg9[%c0_60, %c0_61] : memref<32x12xf32, #tpu.memory_space<vmem>>, vector<32x12xf32>
    %cst_62 = arith.constant dense<0.000000e+00> : vector<8x12xf32>
    %329 = tpu.matmul %326, %328, %cst_62 {dimension_numbers = #tpu.dot_dimension_numbers<[1], [0], [0], [1], [0, 0, 1, 1], [], []>} : vector<8x32xf32>, vector<32x12xf32>, vector<8x12xf32> -> vector<8x12xf32>
    %c0_63 = arith.constant 0 : index
    %c0_64 = arith.constant 0 : index
    %330 = vector.load %arg10[%c0_63, %c0_64] : memref<1x12xf32, #tpu.memory_space<vmem>>, vector<1x12xf32>
    %331 = vector.broadcast %330 : vector<1x12xf32> to vector<8x12xf32>
    %332 = arith.addf %329, %331 : vector<8x12xf32>
    %c0_65 = arith.constant 0 : index
    %c0_66 = arith.constant 0 : index
    %333 = vector.load %arg12[%c0_65, %c0_66] : memref<8x12xf32, #tpu.memory_space<vmem>>, vector<8x12xf32>
    tpu.vector_store %arg12[%c0_65, %c0_66], %332 {strides = array<i32>} : memref<8x12xf32, #tpu.memory_space<vmem>>, vector<8x12xf32>,
    return
  }
}

</mosaic_0001>

<bundles_post_ra>
// kernel: two_stage_rnn_forward.1
= control target key start
LH: loop header
LB: loop body
LE: loop exit
PB: predicated region body
PF: predicated region fallthrough
CT: control target
= control target key end

     0   :  { %vm110_vm0 = vcmask 523264   ;;  %s3904_s13 = smov 64   ;;  %s5443_s1 = inlined_call_operand.vmem [shape: f32[64,192], index: 1, kind: input, shape index: {}]   ;;  %s5444_s0 = inlined_call_operand.vmem [shape: f32[384,64], index: 0, kind: input, shape index: {}]   ;;  %s5445_s4 = inlined_call_operand.vmem [shape: f32[1,64], index: 4, kind: input, shape index: {}]   ;;  %s5446_s2 = inlined_call_operand.vmem [shape: f32[1,192], index: 2, kind: input, shape index: {}]   ;;  %s5447_s3 = inlined_call_operand.vmem [shape: f32[64,192], index: 3, kind: input, shape index: {}]   ;;  %s5448_s5 = inlined_call_operand.vmem [shape: f32[64,96], index: 5, kind: input, shape index: {}]   ;;  %s5449_s6 = inlined_call_operand.vmem [shape: f32[1,96], index: 6, kind: input, shape index: {}]   ;;  %s5450_s8 = inlined_call_operand.vmem [shape: f32[1,32], index: 8, kind: input, shape index: {}]   ;;  %s5451_s7 = inlined_call_operand.vmem [shape: f32[32,96], index: 7, kind: input, shape index: {}]   ;;  %s5452_s10 = inlined_call_operand.vmem [shape: f32[1,12], index: 10, kind: input, shape index: {}]   ;;  %s5453_s9 = inlined_call_operand.vmem [shape: f32[32,12], index: 9, kind: input, shape index: {}]   ;;  %s5454_s11 = inlined_call_operand.vmem [shape: f32[8,32], index: 11, kind: output, shape index: {0}]   ;;  %s5455_s12 = inlined_call_operand.vmem [shape: f32[8,12], index: 12, kind: output, shape index: {1}]  }
   0x1   :  { %v102_v0 = vld [vmem:[%s5443_s1 + $0x70] sm:$0xff]  ;;  %v100_v1 = vld [vmem:[%s5443_s1 + $0x60] sm:$0xff]  ;;  %v103_v3 = vld [vmem:[%s5443_s1 + $0x78] sm:$0xff] }
   0x2   :  { %263 = vmatpush.msra.mxu0 %v102_v0  ;;  %v98_v2 = vld [vmem:[%s5443_s1 + $0x50] sm:$0xff]  ;;  %v96_v4 = vld [vmem:[%s5443_s1 + $0x40] sm:$0xff]  ;;  %424 = vmatpush.msra.mxu1 %v103_v3  ;;  %v101_v5 = vld [vmem:[%s5443_s1 + $0x68] sm:$0xff] }
   0x3   :  { %v99_v6 = vld [vmem:[%s5443_s1 + $0x58] sm:$0xff]  ;;  %v94_v7 = vld [vmem:[%s5443_s1 + $0x30] sm:$0xff]  ;;  %v97_v8 = vld [vmem:[%s5443_s1 + $0x48] sm:$0xff] }
   0x4   :  { %264 = vmatpush.msra.mxu0 %v100_v1  ;;  %425 = vmatpush.msra.mxu1 %v101_v5  ;;  %v92_v9 = vld [vmem:[%s5443_s1 + $0x20] sm:$0xff]  ;;  %v95_v10 = vld [vmem:[%s5443_s1 + $0x38] sm:$0xff]  ;;  %v90_v11 = vld [vmem:[%s5443_s1 + $0x10] sm:$0xff] }
   0x5   :  { %v93_v12 = vld [vmem:[%s5443_s1 + $0x28] sm:$0xff]  ;;  %v88_v13 = vld [vmem:[%s5443_s1] sm:$0xff]  ;;  %v91_v15 = vld [vmem:[%s5443_s1 + $0x18] sm:$0xff] }
   0x6   :  { %265 = vmatpush.msra.mxu0 %v98_v2  ;;  %426 = vmatpush.msra.mxu1 %v99_v6  ;;  %v40_v14 = vld [vmem:[%s5444_s0] sm:$0xff]  ;;  %v89_v16 = vld [vmem:[%s5443_s1 + $0x8] sm:$0xff]  ;;  %v42_v18 = vld [vmem:[%s5444_s0 + $0x10] sm:$0xff] }
   0x7   :  { %v41_v17 = vld [vmem:[%s5444_s0 + $0x8] sm:$0xff]  ;;  %v43_v19 = vld [vmem:[%s5444_s0 + $0x18] sm:$0xff]  ;;  %v44_v20 = vld [vmem:[%s5444_s0 + $0x20] sm:$0xff] }
   0x8   :  { %266 = vmatpush.msra.mxu0 %v96_v4  ;;  %427 = vmatpush.msra.mxu1 %v97_v8  ;;  %v45_v21 = vld [vmem:[%s5444_s0 + $0x28] sm:$0xff]  ;;  %v104_v22 = vld [vmem:[%s5446_s2] sm:$0x3] }
   0x9   :  { %v4052_v23 = vperm.slane %v104_v22, 0  ;;  %v4057_v42 = vperm.slane %v104_v22, 1  ;;  %v4062_v46 = vld [vmem:[%s5445_s4] ss:$0 sm:$0xff] }
   0xa   :  { %267 = vmatpush.msra.mxu0 %v94_v7  ;;  %428 = vmatpush.msra.mxu1 %v95_v10 }
   0xc   :  { %268 = vmatpush.msra.mxu0 %v92_v9  ;;  %429 = vmatpush.msra.mxu1 %v93_v12 }
   0xe   :  { %269 = vmatpush.msra.mxu0 %v90_v11  ;;  %430 = vmatpush.msra.mxu1 %v91_v15 }
  0x10   :  { %270 = vmatpush.msra.mxu0 %v88_v13  ;;  %431 = vmatpush.msra.mxu1 %v89_v16 }
  0x11   :  { %3300 = vmatmul.msk.f32.vlgmr.msra.gmra.mxu0 %vm110_vm0, %v40_v14  ;;  %3348 = vmatmul.msk.f32.vlgmr.msra.gmra.mxu1 %vm110_vm0, %v40_v14 }
  0x19   :  { %3301 = vmatmul.msk.f32.gmra.mxu0 %vm110_vm0, %v41_v17  ;;  %3349 = vmatmul.msk.f32.gmra.mxu1 %vm110_vm0, %v41_v17 }
  0x21   :  { %3302 = vmatmul.msk.f32.gmra.mxu0 %vm110_vm0, %v42_v18  ;;  %3350 = vmatmul.msk.f32.gmra.mxu1 %vm110_vm0, %v42_v18 }
  0x29   :  { %3303 = vmatmul.msk.f32.gmra.mxu0 %vm110_vm0, %v43_v19  ;;  %3351 = vmatmul.msk.f32.gmra.mxu1 %vm110_vm0, %v43_v19 }
  0x31   :  { %3304 = vmatmul.msk.f32.gmra.mxu0 %vm110_vm0, %v44_v20  ;;  %3352 = vmatmul.msk.f32.gmra.mxu1 %vm110_vm0, %v44_v20 }
  0x39   :  { %3305 = vmatmul.msk.f32.gmra.mxu0 %vm110_vm0, %v45_v21  ;;  %3353 = vmatmul.msk.f32.gmra.mxu1 %vm110_vm0, %v45_v21 }
  0x8e   :  { %v272_v24 = vpop.f32.mrf.mxu0  ;;  %v433_v39 = vpop.f32.mrf.mxu1 }
  0x8f   :  { %v273_v25 = vadd.f32 %v272_v24, %v4052_v23  ;;  %v434_v52 = vadd.f32 %v433_v39, %v4057_v42 }
  0x91   :  { %v3396_v26 = vmul.f32 -1.442695, %v273_v25 }
  0x93   :  { %3552 = vpow2.f32 %v3396_v26 }
  0x96   :  { %v275_v27 = vpop.f32.mrf.mxu0  ;;  %v436_v59 = vpop.f32.mrf.mxu1 }
  0x97   :  { %v276_v28 = vadd.f32 %v275_v27, %v4052_v23  ;;  %v437_v2 = vadd.f32 %v436_v59, %v4057_v42 }
  0x99   :  { %v3553_v29 = vpop.eup %3552  ;;  %v3397_v30 = vmul.f32 -1.442695, %v276_v28 }
  0x9a   :  { %v615_v31 = vadd.f32 1.0, %v3553_v29 }
  0x9b   :  { %3554 = vpow2.f32 %v3397_v30 }
  0x9c   :  { %3556 = vrcp.f32 %v615_v31  ;;  %v632_v41 = vand.u32 2147483648, %v615_v31  ;;  %v630_v44 = vand.u32 2147483647, %v615_v31  ;;  %vm626_vm2 = vweird.f32 %v615_v31 }
  0x9e   :  { %v278_v32 = vpop.f32.mrf.mxu0  ;;  %v633_v50 = vor.u32 1.1754944e-38, %v632_v41  ;;  %vm631_vm4 = vcmp.eq.f32.partialorder %v630_v44, 8.507059e+37  ;;  %v439_v13 = vpop.f32.mrf.mxu1 }
  0x9f   :  { %v279_v33 = vadd.f32 %v278_v32, %v4052_v23  ;;  %v440_v16 = vadd.f32 %v439_v13, %v4057_v42 }
  0xa1   :  { %v3555_v34 = vpop.eup %3554  ;;  %v3398_v35 = vmul.f32 -1.442695, %v279_v33 }
  0xa2   :  { %v3557_v36 = vpop.eup %3556  ;;  %v616_v37 = vadd.f32 1.0, %v3555_v34 }
  0xa3   :  { %v622_v38 = vmul.f32 %v3557_v36, %v615_v31  ;;  %3558 = vpow2.f32 %v3398_v35  ;;  %vm627_vm1 = vweird.f32 %v3557_v36 }
  0xa4   :  { %3560 = vrcp.f32 %v616_v37  ;;  %vm628_vm3 = vmor %vm626_vm2, %vm627_vm1  ;;  %vm641_vm5 = vweird.f32 %v616_v37  ;;  %v647_v55 = vand.u32 2147483648, %v616_v37  ;;  %v645_v58 = vand.u32 2147483647, %v616_v37 }
  0xa5   :  { %v623_v40 = vsub.f32 1.0, %v622_v38 }
  0xa6   :  { %v648_v62 = vor.u32 1.1754944e-38, %v647_v55  ;;  %vm646_vm8 = vcmp.eq.f32.partialorder %v645_v58, 8.507059e+37  ;;  %v281_v6 = vpop.f32.mrf.mxu0 }
  0xa7   :  { %v624_v43 = vmul.f32 %v3557_v36, %v623_v40  ;;  %v282_v20 = vadd.f32 %v281_v6, %v4052_v23 }
  0xa9   :  { %v3559_v45 = vpop.eup %3558  ;;  %v625_v47 = vadd.f32 %v3557_v36, %v624_v43  ;;  %v3399_v26 = vmul.f32 -1.442695, %v282_v20  ;;  %v4114_v20 = vld [vmem:[%s5447_s3 + $0x60] sm:$0xff] }
  0xaa   :  { %v3561_v48 = vpop.eup %3560  ;;  %v617_v49 = vadd.f32 1.0, %v3559_v45 }
  0xab   :  { %v637_v51 = vmul.f32 %v3561_v48, %v616_v37  ;;  %v629_v53 = vsel %vm628_vm3, %v3557_v36, %v625_v47  ;;  %vm642_vm6 = vweird.f32 %v3561_v48  ;;  %v442_v37 = vpop.f32.mrf.mxu1 }
  0xac   :  { %3562 = vrcp.f32 %v617_v49  ;;  %v4065_v54 = vsel %vm631_vm4, %v633_v50, %v629_v53  ;;  %vm643_vm7 = vmor %vm641_vm5, %vm642_vm6  ;;  %vm656_vm9 = vweird.f32 %v617_v49  ;;  %v662_v5 = vand.u32 2147483648, %v617_v49 }
  0xad   :  { %v711_v56 = vmul.f32 %v4062_v46, %v4065_v54  ;;  %v638_v57 = vsub.f32 1.0, %v637_v51  ;;  %v660_v9 = vand.u32 2147483647, %v617_v49 }
  0xae   :  { %v663_v14 = vor.u32 1.1754944e-38, %v662_v5  ;;  %v284_v21 = vpop.f32.mrf.mxu0 }
  0xaf   :  { %v717_v60 = vadd.f32 %v711_v56, %v434_v52  ;;  %v639_v61 = vmul.f32 %v3561_v48, %v638_v57  ;;  %vm661_vm12 = vcmp.eq.f32.partialorder %v660_v9, 8.507059e+37  ;;  %v285_v25 = vadd.f32 %v284_v21, %v4052_v23 }
  0xb0   :  { %v443_v52 = vadd.f32 %v442_v37, %v4057_v42  ;;  %v4169_v37 = vld [vmem:[%s5447_s3 + $0x38] sm:$0xff] }
  0xb1   :  { %3564 = vtanh.f32 %v717_v60  ;;  %v640_v63 = vadd.f32 %v3561_v48, %v639_v61  ;;  %v3400_v27 = vmul.f32 -1.442695, %v285_v25  ;;  %v4133_v25 = vld [vmem:[%s5447_s3 + $0x58] sm:$0xff] }
  0xb2   :  { %v3563_v0 = vpop.eup %3562 }
  0xb3   :  { %v652_v1 = vmul.f32 %v3563_v0, %v617_v49  ;;  %v644_v3 = vsel %vm643_vm7, %v3561_v48, %v640_v63  ;;  %vm657_vm10 = vweird.f32 %v3563_v0  ;;  %v445_v59 = vpop.f32.mrf.mxu1 }
  0xb4   :  { %v4070_v4 = vsel %vm646_vm8, %v648_v62, %v644_v3  ;;  %vm658_vm11 = vmor %vm656_vm9, %vm657_vm10  ;;  %v446_v61 = vadd.f32 %v445_v59, %v4057_v42  ;;  %v46_v59 = vld [vmem:[%s5444_s0 + $0x30] sm:$0xff] }
  0xb5   :  { %v712_v7 = vmul.f32 %v4062_v46, %v4070_v4  ;;  %v653_v8 = vsub.f32 1.0, %v652_v1  ;;  %3306 = vmatmul.msk.f32.gmra.mxu0 %vm110_vm0, %v46_v59  ;;  %3354 = vmatmul.msk.f32.gmra.mxu1 %vm110_vm0, %v46_v59 }
  0xb6   :  { %v287_v63 = vpop.f32.mrf.mxu0 }
  0xb7   :  { %v3565_v10 = vpop.eup %3564  ;;  %v718_v11 = vadd.f32 %v712_v7, %v437_v2  ;;  %v654_v12 = vmul.f32 %v3563_v0, %v653_v8  ;;  %v288_v1 = vadd.f32 %v287_v63, %v4052_v23 }
  0xb8   :  { %741 = vrot.lane.b32.xlu0 %v3565_v10, %s3904_s13 }
  0xb9   :  { %3566 = vtanh.f32 %v718_v11  ;;  %v655_v15 = vadd.f32 %v3563_v0, %v654_v12  ;;  %v3401_v3 = vmul.f32 -1.442695, %v288_v1 }
  0xbb   :  { %v659_v17 = vsel %vm658_vm11, %v3563_v0, %v655_v15 }
  0xbc   :  { %v4076_v18 = vsel %vm661_vm12, %v663_v14, %v659_v17  ;;  %v4104_v17 = vld [vmem:[%s5447_s3 + $0x70] sm:$0xff] }
  0xbd   :  { %v713_v19 = vmul.f32 %v4062_v46, %v4076_v18  ;;  %803 = vmatpush.msra.mxu2 %v4104_v17 }
  0xbf   :  { %v3567_v22 = vpop.eup %3566  ;;  %v719_v24 = vadd.f32 %v713_v19, %v440_v16  ;;  %v4109_v19 = vld [vmem:[%s5447_s3 + $0x78] sm:$0xff]  ;;  %804 = vmatpush.msra.mxu2 %v4114_v20 }
  0xc0   :  { %743 = vrot.lane.b32.xlu1 %v3567_v22, %s3904_s13  ;;  %838 = vmatpush.msra.mxu3 %v4109_v19  ;;  %v4123_v22 = vld [vmem:[%s5447_s3 + $0x68] sm:$0xff] }
  0xc1   :  { %3568 = vtanh.f32 %v719_v24  ;;  %v4128_v24 = vld [vmem:[%s5447_s3 + $0x50] sm:$0xff] }
  0xc2   :  { %3570 = vpow2.f32 %v3399_v26  ;;  %839 = vmatpush.msra.mxu3 %v4123_v22  ;;  %v448_v26 = vpop.f32.mrf.mxu1  ;;  %805 = vmatpush.msra.mxu2 %v4128_v24 }
  0xc3   :  { %3572 = vpow2.f32 %v3400_v27 }
  0xc4   :  { %840 = vmatpush.msra.mxu3 %v4133_v25 }
  0xc7   :  { %v3569_v28 = vpop.eup %3568 }
  0xc8   :  { %745 = vrot.lane.b32.xlu1 %v3569_v28, %s3904_s13  ;;  %v3571_v29 = vpop.eup %3570  ;;  %v4142_v28 = vld [vmem:[%s5447_s3 + $0x40] sm:$0xff] }
  0xc9   :  { %v3573_v30 = vpop.eup %3572  ;;  %v618_v31 = vadd.f32 1.0, %v3571_v29  ;;  %v4147_v29 = vld [vmem:[%s5447_s3 + $0x48] sm:$0xff]  ;;  %806 = vmatpush.msra.mxu2 %v4142_v28 }
  0xca   :  { %v619_v32 = vadd.f32 1.0, %v3573_v30  ;;  %v449_v30 = vadd.f32 %v448_v26, %v4057_v42  ;;  %841 = vmatpush.msra.mxu3 %v4147_v29 }
  0xcb   :  { %3574 = vrcp.f32 %v618_v31  ;;  %vm671_vm13 = vweird.f32 %v618_v31  ;;  %v675_v39 = vand.u32 2147483647, %v618_v31  ;;  %v677_v40 = vand.u32 2147483648, %v618_v31 }
  0xcc   :  { %3576 = vrcp.f32 %v619_v32  ;;  %vm686_vm15 = vweird.f32 %v619_v32  ;;  %v690_v44 = vand.u32 2147483647, %v619_v32  ;;  %v692_v48 = vand.u32 2147483648, %v619_v32  ;;  %842 = vmatpush.msra.mxu3 %v4169_v37 }
  0xcd   :  { %v678_v45 = vor.u32 1.1754944e-38, %v677_v40  ;;  %vm676_vm3 = vcmp.eq.f32.partialorder %v675_v39, 8.507059e+37  ;;  %v4182_v39 = vld [vmem:[%s5447_s3 + $0x28] sm:$0xff]  ;;  %v4187_v40 = vld [vmem:[%s5447_s3 + $0x10] sm:$0xff] }
  0xce   :  { %vm691_vm5 = vcmp.eq.f32.partialorder %v690_v44, 8.507059e+37  ;;  %v693_v51 = vor.u32 1.1754944e-38, %v692_v48  ;;  %843 = vmatpush.msra.mxu3 %v4182_v39  ;;  %v731_v48 = vsub.f32 1.0, %v4076_v18 }
  0xd1   :  { %v3575_v33 = vpop.eup %3574 }
  0xd2   :  { %v3577_v34 = vpop.eup %3576  ;;  %v667_v35 = vmul.f32 %v3575_v33, %v618_v31  ;;  %vm672_vm14 = vweird.f32 %v3575_v33 }
  0xd3   :  { %v682_v36 = vmul.f32 %v3577_v34, %v619_v32  ;;  %vm687_vm1 = vweird.f32 %v3577_v34  ;;  %vm673_vm2 = vmor %vm671_vm13, %vm672_vm14 }
  0xd4   :  { %v668_v38 = vsub.f32 1.0, %v667_v35  ;;  %vm688_vm4 = vmor %vm686_vm15, %vm687_vm1 }
  0xd5   :  { %v683_v41 = vsub.f32 1.0, %v682_v36  ;;  %v4164_v36 = vld [vmem:[%s5447_s3 + $0x30] sm:$0xff] }
  0xd6   :  { %v669_v43 = vmul.f32 %v3575_v33, %v668_v38  ;;  %v730_v38 = vsub.f32 1.0, %v4070_v4  ;;  %807 = vmatpush.msra.mxu2 %v4164_v36 }
  0xd7   :  { %v684_v47 = vmul.f32 %v3577_v34, %v683_v41  ;;  %v4192_v41 = vld [vmem:[%s5447_s3 + $0x18] sm:$0xff] }
  0xd8   :  { %v670_v49 = vadd.f32 %v3575_v33, %v669_v43  ;;  %844 = vmatpush.msra.mxu3 %v4192_v41 }
  0xd9   :  { %v685_v50 = vadd.f32 %v3577_v34, %v684_v47  ;;  %v4208_v47 = vld [vmem:[%s5447_s3 + $0x8] sm:$0xff] }
  0xda   :  { %v674_v53 = vsel %vm673_vm2, %v3575_v33, %v670_v49  ;;  %v729_v33 = vsub.f32 1.0, %v4065_v54  ;;  %v4174_v54 = vld [vmem:[%s5447_s3 + $0x20] sm:$0xff]  ;;  %845 = vmatpush.msra.mxu3 %v4208_v47 }
  0xdb   :  { %v4085_v55 = vsel %vm676_vm3, %v678_v45, %v674_v53  ;;  %v689_v56 = vsel %vm688_vm4, %v3577_v34, %v685_v50  ;;  %808 = vmatpush.msra.mxu2 %v4174_v54  ;;  %v4203_v45 = vld [vmem:[%s5447_s3] sm:$0xff] }
  0xdc   :  { %v714_v57 = vmul.f32 %v4062_v46, %v4085_v55  ;;  %v4089_v58 = vsel %vm691_vm5, %v693_v51, %v689_v56  ;;  %1130 = vmatpush.msrb.mxu3 %v4109_v19  ;;  %v732_v18 = vsub.f32 1.0, %v4085_v55  ;;  %v47_v55 = vld [vmem:[%s5444_s0 + $0x38] sm:$0xff] }
  0xdd   :  { %v715_v62 = vmul.f32 %v4062_v46, %v4089_v58  ;;  %809 = vmatpush.msra.mxu2 %v4187_v40  ;;  %v733_v53 = vsub.f32 1.0, %v4089_v58  ;;  %3307 = vmatmul.msk.f32.gmra.mxu0 %vm110_vm0, %v47_v55  ;;  %v48_v58 = vld [vmem:[%s5444_s0 + $0x40] sm:$0xff] }
  0xde   :  { %v720_v60 = vadd.f32 %v714_v57, %v443_v52  ;;  %1131 = vmatpush.msrb.mxu3 %v4123_v22  ;;  %3355 = vmatmul.msk.f32.gmra.mxu1 %vm110_vm0, %v47_v55 }
  0xdf   :  { %v721_v0 = vadd.f32 %v715_v62, %v446_v61  ;;  %810 = vmatpush.msra.mxu2 %v4203_v45 }
  0xe0   :  { %3578 = vtanh.f32 %v720_v60  ;;  %1132 = vmatpush.msrb.mxu3 %v4133_v25 }
  0xe1   :  { %3580 = vtanh.f32 %v721_v0  ;;  %1095 = vmatpush.msrb.mxu2 %v4104_v17 }
  0xe2   :  { %3582 = vpow2.f32 %v3401_v3  ;;  %1133 = vmatpush.msrb.mxu3 %v4147_v29 }
  0xe3   :  { %1096 = vmatpush.msrb.mxu2 %v4114_v20 }
  0xe4   :  { %1134 = vmatpush.msrb.mxu3 %v4169_v37 }
  0xe5   :  { %1097 = vmatpush.msrb.mxu2 %v4128_v24  ;;  %3308 = vmatmul.msk.f32.gmra.mxu0 %vm110_vm0, %v48_v58 }
  0xe6   :  { %v3579_v2 = vpop.eup %3578  ;;  %1135 = vmatpush.msrb.mxu3 %v4182_v39  ;;  %3356 = vmatmul.msk.f32.gmra.mxu1 %vm110_vm0, %v48_v58 }
  0xe7   :  { %747 = vrot.lane.b32.xlu2 %v3579_v2, %s3904_s13  ;;  %v3581_v5 = vpop.eup %3580  ;;  %1098 = vmatpush.msrb.mxu2 %v4142_v28 }
  0xe8   :  { %v3583_v6 = vpop.eup %3582  ;;  %1136 = vmatpush.msrb.mxu3 %v4192_v41 }
  0xe9   :  { %v620_v7 = vadd.f32 1.0, %v3583_v6  ;;  %1099 = vmatpush.msrb.mxu2 %v4164_v36 }
  0xea   :  { %1137 = vmatpush.msrb.mxu3 %v4208_v47 }
  0xeb   :  { %3584 = vrcp.f32 %v620_v7  ;;  %vm701_vm6 = vweird.f32 %v620_v7  ;;  %v707_v12 = vand.u32 2147483648, %v620_v7  ;;  %v705_v14 = vand.u32 2147483647, %v620_v7  ;;  %1100 = vmatpush.msrb.mxu2 %v4174_v54 }
  0xed   :  { %v708_v16 = vor.u32 1.1754944e-38, %v707_v12  ;;  %vm706_vm9 = vcmp.eq.f32.partialorder %v705_v14, 8.507059e+37  ;;  %1101 = vmatpush.msrb.mxu2 %v4187_v40 }
  0xef   :  { %749 = vrot.lane.b32.xlu2 %v3581_v5, %s3904_s13  ;;  %1102 = vmatpush.msrb.mxu2 %v4203_v45 }
  0xf1   :  { %v3585_v8 = vpop.eup %3584 }
  0xf2   :  { %v697_v9 = vmul.f32 %v3585_v8, %v620_v7  ;;  %vm702_vm7 = vweird.f32 %v3585_v8 }
  0xf3   :  { %vm4097_vm8 = vmor %vm701_vm6, %vm702_vm7 }
  0xf4   :  { %v698_v10 = vsub.f32 1.0, %v697_v9 }
  0xf6   :  { %v699_v11 = vmul.f32 %v3585_v8, %v698_v10 }
  0xf8   :  { %v700_v13 = vadd.f32 %v3585_v8, %v699_v11 }
  0xfa   :  { %v704_v21 = vsel %vm4097_vm8, %v3585_v8, %v700_v13 }
  0xfb   :  { %v4137_v27 = vsel %vm706_vm9, %v708_v16, %v704_v21 }
  0xfc   :  { %v716_v31 = vmul.f32 %v4062_v46, %v4137_v27  ;;  %v734_v61 = vsub.f32 1.0, %v4137_v27 }
  0xfe   :  { %v722_v32 = vadd.f32 %v716_v31, %v449_v30 }
 0x100   :  { %3586 = vtanh.f32 %v722_v32 }
 0x106   :  { %v3587_v4 = vpop.eup %3586 }
 0x12a   :  { %v742_v34 = vpop.permute.xlu0 %741 }
 0x12b   :  { %v4157_v35 = vmul.f32 %v742_v34, %v729_v33 }
 0x12d   :  { %771 = vrot.lane.b32.xlu0 %v4157_v35, %s3904_s13 }
 0x132   :  { %v744_v43 = vpop.permute.xlu1 %743  ;;  %v290_v2 = vpop.f32.mrf.mxu0 }
 0x133   :  { %v4196_v44 = vmul.f32 %v744_v43, %v730_v38  ;;  %v291_v3 = vadd.f32 %v290_v2, %v4052_v23  ;;  %v451_v38 = vpop.f32.mrf.mxu1 }
 0x134   :  { %v452_v55 = vadd.f32 %v451_v38, %v4057_v42 }
 0x135   :  { %751 = vrot.lane.b32.xlu0 %v3587_v4, %s3904_s13  ;;  %773 = vrot.lane.b32.xlu2 %v4196_v44, %s3904_s13 }
 0x13a   :  { %v746_v49 = vpop.permute.xlu1 %745 }
 0x13b   :  { %v4220_v50 = vmul.f32 %v746_v49, %v731_v48 }
 0x13d   :  { %775 = vrot.lane.b32.xlu0 %v4220_v50, %s3904_s13 }
 0x141   :  { %v748_v51 = vpop.permute.xlu2 %747 }
 0x142   :  { %v4237_v52 = vmul.f32 %v748_v51, %v732_v18 }
 0x149   :  { %v750_v56 = vpop.permute.xlu2 %749 }
 0x14a   :  { %v4240_v57 = vmul.f32 %v750_v56, %v733_v53 }
 0x14c   :  { %779 = vrot.lane.b32.xlu2 %v4240_v57, %s3904_s13 }
 0x15a   :  { %v293_v6 = vpop.f32.mrf.mxu0 }
 0x15b   :  { %v294_v9 = vadd.f32 %v293_v6, %v4052_v23  ;;  %v454_v6 = vpop.f32.mrf.mxu1 }
 0x162   :  { %v296_v12 = vpop.f32.mrf.mxu0 }
 0x163   :  { %v297_v16 = vadd.f32 %v296_v12, %v4052_v23 }
 0x18f   :  { %v774_v62 = vpop.permute.xlu2 %773 }
 0x19f   :  { %v772_v60 = vpop.permute.xlu0 %771 }
 0x1a0   :  { %3402 = vmatmul.msk.f32.vlgmr.msra.gmra.mxu2 %vm110_vm0, %v772_v60  ;;  %3408 = vmatmul.msk.f32.vlgmr.msra.gmra.mxu3 %vm110_vm0, %v772_v60 }
 0x1a1   :  { %1387 = vmatpush.msra.mxu2 %v4104_v17  ;;  %1422 = vmatpush.msra.mxu3 %v4109_v19 }
 0x1a3   :  { %1388 = vmatpush.msra.mxu2 %v4114_v20  ;;  %1423 = vmatpush.msra.mxu3 %v4123_v22 }
 0x1a5   :  { %1389 = vmatpush.msra.mxu2 %v4128_v24  ;;  %1424 = vmatpush.msra.mxu3 %v4133_v25 }
 0x1a7   :  { %v752_v63 = vpop.permute.xlu0 %751  ;;  %1390 = vmatpush.msra.mxu2 %v4142_v28  ;;  %1425 = vmatpush.msra.mxu3 %v4147_v29 }
 0x1a8   :  { %v4270_v0 = vmul.f32 %v752_v63, %v734_v61  ;;  %3403 = vmatmul.msk.f32.gmra.mxu2 %vm110_vm0, %v774_v62  ;;  %3409 = vmatmul.msk.f32.gmra.mxu3 %vm110_vm0, %v774_v62 }
 0x1a9   :  { %1391 = vmatpush.msra.mxu2 %v4164_v36  ;;  %1426 = vmatpush.msra.mxu3 %v4169_v37 }
 0x1aa   :  { %781 = vrot.lane.b32.xlu0 %v4270_v0, %s3904_s13 }
 0x1ab   :  { %1392 = vmatpush.msra.mxu2 %v4174_v54  ;;  %1427 = vmatpush.msra.mxu3 %v4182_v39 }
 0x1ad   :  { %1393 = vmatpush.msra.mxu2 %v4187_v40  ;;  %1428 = vmatpush.msra.mxu3 %v4192_v41 }
 0x1af   :  { %v776_v1 = vpop.permute.xlu0 %775  ;;  %1394 = vmatpush.msra.mxu2 %v4203_v45  ;;  %1429 = vmatpush.msra.mxu3 %v4208_v47 }
 0x1b0   :  { %3404 = vmatmul.msk.f32.gmra.mxu2 %vm110_vm0, %v776_v1  ;;  %3410 = vmatmul.msk.f32.gmra.mxu3 %vm110_vm0, %v776_v1 }
 0x223   :  { %v812_v5 = vpop.f32.mrf.mxu2  ;;  %v847_v34 = vpop.f32.mrf.mxu3 }
 0x224   :  { %v865_v7 = vadd.f32 %v812_v5, %v291_v3  ;;  %v985_v60 = vadd.f32 %v4062_v46, %v847_v34 }
 0x226   :  { %v3414_v8 = vmul.f32 -1.442695, %v865_v7 }
 0x228   :  { %3588 = vpow2.f32 %v3414_v8 }
 0x22b   :  { %v815_v10 = vpop.f32.mrf.mxu2  ;;  %v850_v63 = vpop.f32.mrf.mxu3 }
 0x22c   :  { %v866_v11 = vadd.f32 %v815_v10, %v294_v9 }
 0x22e   :  { %v3589_v13 = vpop.eup %3588  ;;  %v3415_v14 = vmul.f32 -1.442695, %v866_v11  ;;  %v986_v11 = vadd.f32 %v4062_v46, %v850_v63 }
 0x22f   :  { %v889_v15 = vadd.f32 1.0, %v3589_v13 }
 0x230   :  { %3590 = vpow2.f32 %v3415_v14 }
 0x231   :  { %3592 = vrcp.f32 %v889_v15  ;;  %v906_v43 = vand.u32 2147483648, %v889_v15  ;;  %v904_v49 = vand.u32 2147483647, %v889_v15  ;;  %vm900_vm11 = vweird.f32 %v889_v15 }
 0x233   :  { %v818_v21 = vpop.f32.mrf.mxu2  ;;  %v907_v56 = vor.u32 1.1754944e-38, %v906_v43  ;;  %vm905_vm13 = vcmp.eq.f32.partialorder %v904_v49, 8.507059e+37 }
 0x234   :  { %v867_v26 = vadd.f32 %v818_v21, %v297_v16 }
 0x236   :  { %v3591_v27 = vpop.eup %3590  ;;  %v3416_v30 = vmul.f32 -1.442695, %v867_v26 }
 0x237   :  { %v3593_v31 = vpop.eup %3592  ;;  %v890_v32 = vadd.f32 1.0, %v3591_v27 }
 0x238   :  { %v896_v33 = vmul.f32 %v3593_v31, %v889_v15  ;;  %3594 = vpow2.f32 %v3416_v30  ;;  %vm901_vm10 = vweird.f32 %v3593_v31  ;;  %v455_v15 = vadd.f32 %v454_v6, %v4057_v42 }
 0x239   :  { %3596 = vrcp.f32 %v890_v32  ;;  %vm902_vm12 = vmor %vm900_vm11, %vm901_vm10  ;;  %vm915_vm14 = vweird.f32 %v890_v32  ;;  %v921_v1 = vand.u32 2147483648, %v890_v32  ;;  %v919_v5 = vand.u32 2147483647, %v890_v32 }
 0x23a   :  { %v897_v4 = vsub.f32 1.0, %v896_v33 }
 0x23b   :  { %v922_v9 = vor.u32 1.1754944e-38, %v921_v1  ;;  %vm920_vm2 = vcmp.eq.f32.partialorder %v919_v5, 8.507059e+37 }
 0x23c   :  { %v898_v48 = vmul.f32 %v3593_v31, %v897_v4  ;;  %v457_v4 = vpop.f32.mrf.mxu1 }
 0x23e   :  { %v3595_v18 = vpop.eup %3594  ;;  %v899_v51 = vadd.f32 %v3593_v31, %v898_v48 }
 0x23f   :  { %v3597_v53 = vpop.eup %3596  ;;  %v891_v59 = vadd.f32 1.0, %v3595_v18  ;;  %v458_v18 = vadd.f32 %v457_v4, %v4057_v42 }
 0x240   :  { %v903_v58 = vsel %vm902_vm12, %v3593_v31, %v899_v51  ;;  %v911_v61 = vmul.f32 %v3597_v53, %v890_v32  ;;  %vm916_vm15 = vweird.f32 %v3597_v53  ;;  %v853_v31 = vpop.f32.mrf.mxu3 }
 0x241   :  { %v4291_v62 = vsel %vm905_vm13, %v907_v56, %v903_v58  ;;  %3598 = vrcp.f32 %v891_v59  ;;  %vm917_vm1 = vmor %vm915_vm14, %vm916_vm15  ;;  %vm930_vm3 = vweird.f32 %v891_v59  ;;  %v936_v21 = vand.u32 2147483648, %v891_v59  ;;  %v49_v58 = vld [vmem:[%s5444_s0 + $0x48] sm:$0xff] }
 0x242   :  { %v991_v2 = vmul.f32 %v985_v60, %v4291_v62  ;;  %v912_v3 = vsub.f32 1.0, %v911_v61  ;;  %v934_v30 = vand.u32 2147483647, %v891_v59  ;;  %v987_v48 = vadd.f32 %v4062_v46, %v853_v31  ;;  %3309 = vmatmul.msk.f32.gmra.mxu0 %vm110_vm0, %v49_v58  ;;  %3357 = vmatmul.msk.f32.gmra.mxu1 %vm110_vm0, %v49_v58  ;;  %v50_v60 = vld [vmem:[%s5444_s0 + $0x50] sm:$0xff]  ;;  %v51_v61 = vld [vmem:[%s5444_s0 + $0x58] sm:$0xff] }
 0x243   :  { %v937_v38 = vor.u32 1.1754944e-38, %v936_v21  ;;  %v1009_v63 = vsub.f32 1.0, %v4291_v62 }
 0x244   :  { %v997_v7 = vadd.f32 %v991_v2, %v452_v55  ;;  %v913_v8 = vmul.f32 %v3597_v53, %v912_v3  ;;  %vm935_vm6 = vcmp.eq.f32.partialorder %v934_v30, 8.507059e+37  ;;  %v1045_v2 = vmul.f32 %v4291_v62, %v4157_v35  ;;  %v52_v35 = vld [vmem:[%s5444_s0 + $0x60] sm:$0xff] }
 0x246   :  { %3600 = vtanh.f32 %v997_v7  ;;  %v914_v10 = vadd.f32 %v3597_v53, %v913_v8  ;;  %v780_v7 = vpop.permute.xlu2 %779  ;;  %v782_v8 = vpop.permute.xlu0 %781 }
 0x247   :  { %v3599_v12 = vpop.eup %3598 }
 0x248   :  { %v926_v13 = vmul.f32 %v3599_v12, %v891_v59  ;;  %v918_v14 = vsel %vm917_vm1, %v3597_v53, %v914_v10  ;;  %vm931_vm4 = vweird.f32 %v3599_v12 }
 0x249   :  { %v4296_v16 = vsel %vm920_vm2, %v922_v9, %v918_v14  ;;  %vm932_vm5 = vmor %vm930_vm3, %vm931_vm4 }
 0x24a   :  { %v992_v26 = vmul.f32 %v986_v11, %v4296_v16  ;;  %v927_v27 = vsub.f32 1.0, %v926_v13  ;;  %3310 = vmatmul.msk.f32.gmra.mxu0 %vm110_vm0, %v50_v60  ;;  %3358 = vmatmul.msk.f32.gmra.mxu1 %vm110_vm0, %v50_v60 }
 0x24c   :  { %v3601_v32 = vpop.eup %3600  ;;  %v998_v33 = vadd.f32 %v992_v26, %v455_v15  ;;  %v928_v34 = vmul.f32 %v3599_v12, %v927_v27 }
 0x24d   :  { %1021 = vrot.lane.b32.xlu1 %v3601_v32, %s3904_s13 }
 0x24e   :  { %3602 = vtanh.f32 %v998_v33  ;;  %v929_v43 = vadd.f32 %v3599_v12, %v928_v34 }
 0x250   :  { %v933_v49 = vsel %vm932_vm5, %v3599_v12, %v929_v43 }
 0x251   :  { %v4302_v51 = vsel %vm935_vm6, %v937_v38, %v933_v49 }
 0x252   :  { %v993_v53 = vmul.f32 %v987_v48, %v4302_v51  ;;  %3311 = vmatmul.msk.f32.gmra.mxu0 %vm110_vm0, %v51_v61  ;;  %3359 = vmatmul.msk.f32.gmra.mxu1 %vm110_vm0, %v51_v61 }
 0x254   :  { %v3603_v56 = vpop.eup %3602  ;;  %v999_v59 = vadd.f32 %v993_v53, %v458_v18 }
 0x255   :  { %777 = vrot.lane.b32.xlu1 %v4237_v52, %s3904_s13  ;;  %1023 = vrot.lane.b32.xlu2 %v3603_v56, %s3904_s13 }
 0x256   :  { %3604 = vtanh.f32 %v999_v59 }
 0x25a   :  { %3312 = vmatmul.msk.f32.gmra.mxu0 %vm110_vm0, %v52_v35  ;;  %3360 = vmatmul.msk.f32.gmra.mxu1 %vm110_vm0, %v52_v35 }
 0x25c   :  { %v3605_v55 = vpop.eup %3604 }
 0x25d   :  { %1025 = vrot.lane.b32.xlu0 %v3605_v55, %s3904_s13 }
 0x2bf   :  { %v1022_v1 = vpop.permute.xlu1 %1021  ;;  %v299_v9 = vpop.f32.mrf.mxu0 }
 0x2c0   :  { %v1039_v3 = vmul.f32 %v1022_v1, %v1009_v63  ;;  %v460_v34 = vpop.f32.mrf.mxu1 }
 0x2c1   :  { %v461_v55 = vadd.f32 %v460_v34, %v4057_v42 }
 0x2c2   :  { %v4327_v5 = vadd.f32 %v1045_v2, %v1039_v3 }
 0x2c4   :  { %1063 = vrot.lane.b32.xlu1 %v4327_v5, %s3904_s13 }
 0x2c7   :  { %v778_v6 = vpop.permute.xlu1 %777 }
 0x2c8   :  { %3405 = vmatmul.msk.f32.gmra.mxu2 %vm110_vm0, %v778_v6  ;;  %3411 = vmatmul.msk.f32.gmra.mxu3 %vm110_vm0, %v778_v6 }
 0x2d0   :  { %3406 = vmatmul.msk.f32.gmra.mxu2 %vm110_vm0, %v780_v7  ;;  %3412 = vmatmul.msk.f32.gmra.mxu3 %vm110_vm0, %v780_v7  ;;  %v463_v7 = vpop.f32.mrf.mxu1 }
 0x2d8   :  { %3407 = vmatmul.msk.f32.gmra.mxu2 %vm110_vm0, %v782_v8  ;;  %3413 = vmatmul.msk.f32.gmra.mxu3 %vm110_vm0, %v782_v8 }
 0x336   :  { %v1064_v62 = vpop.permute.xlu1 %1063 }
 0x337   :  { %3420 = vmatmul.msk.f32.vlgmr.msrb.gmra.mxu2 %vm110_vm0, %v1064_v62  ;;  %3426 = vmatmul.msk.f32.vlgmr.msrb.gmra.mxu3 %vm110_vm0, %v1064_v62 }
 0x338   :  { %1679 = vmatpush.msrb.mxu2 %v4104_v17  ;;  %1714 = vmatpush.msrb.mxu3 %v4109_v19  ;;  %v300_v17 = vadd.f32 %v299_v9, %v4052_v23 }
 0x33a   :  { %1680 = vmatpush.msrb.mxu2 %v4114_v20  ;;  %1715 = vmatpush.msrb.mxu3 %v4123_v22  ;;  %v302_v20 = vpop.f32.mrf.mxu0 }
 0x33c   :  { %1681 = vmatpush.msrb.mxu2 %v4128_v24  ;;  %1716 = vmatpush.msrb.mxu3 %v4133_v25  ;;  %v303_v25 = vadd.f32 %v302_v20, %v4052_v23  ;;  %v464_v20 = vadd.f32 %v463_v7, %v4057_v42 }
 0x33e   :  { %1682 = vmatpush.msrb.mxu2 %v4142_v28  ;;  %1717 = vmatpush.msrb.mxu3 %v4147_v29 }
 0x340   :  { %1683 = vmatpush.msrb.mxu2 %v4164_v36  ;;  %1718 = vmatpush.msrb.mxu3 %v4169_v37 }
 0x342   :  { %1684 = vmatpush.msrb.mxu2 %v4174_v54  ;;  %1719 = vmatpush.msrb.mxu3 %v4182_v39  ;;  %v305_v10 = vpop.f32.mrf.mxu0 }
 0x343   :  { %v306_v14 = vadd.f32 %v305_v10, %v4052_v23 }
 0x344   :  { %1685 = vmatpush.msrb.mxu2 %v4187_v40  ;;  %1720 = vmatpush.msrb.mxu3 %v4192_v41 }
 0x346   :  { %1686 = vmatpush.msrb.mxu2 %v4203_v45  ;;  %1721 = vmatpush.msrb.mxu3 %v4208_v47 }
 0x34b   :  { %v821_v19 = vpop.f32.mrf.mxu2  ;;  %v856_v33 = vpop.f32.mrf.mxu3 }
 0x34c   :  { %v868_v22 = vadd.f32 %v821_v19, %v300_v17  ;;  %v988_v60 = vadd.f32 %v4062_v46, %v856_v33 }
 0x34e   :  { %v3417_v24 = vmul.f32 -1.442695, %v868_v22 }
 0x350   :  { %3606 = vpow2.f32 %v3417_v24 }
 0x353   :  { %v824_v28 = vpop.f32.mrf.mxu2  ;;  %v859_v3 = vpop.f32.mrf.mxu3 }
 0x354   :  { %v869_v29 = vadd.f32 %v824_v28, %v303_v25  ;;  %v989_v24 = vadd.f32 %v4062_v46, %v859_v3 }
 0x356   :  { %v3607_v11 = vpop.eup %3606  ;;  %v3418_v12 = vmul.f32 -1.442695, %v869_v29 }
 0x357   :  { %v892_v13 = vadd.f32 1.0, %v3607_v11 }
 0x358   :  { %3608 = vpow2.f32 %v3418_v12 }
 0x359   :  { %3610 = vrcp.f32 %v892_v13  ;;  %v951_v4 = vand.u32 2147483648, %v892_v13  ;;  %v949_v48 = vand.u32 2147483647, %v892_v13  ;;  %vm945_vm8 = vweird.f32 %v892_v13 }
 0x35b   :  { %v827_v15 = vpop.f32.mrf.mxu2  ;;  %v952_v56 = vor.u32 1.1754944e-38, %v951_v4  ;;  %vm950_vm10 = vcmp.eq.f32.partialorder %v949_v48, 8.507059e+37  ;;  %v1010_v4 = vsub.f32 1.0, %v4296_v16  ;;  %v1024_v48 = vpop.permute.xlu2 %1023 }
 0x35c   :  { %v870_v21 = vadd.f32 %v827_v15, %v306_v14 }
 0x35e   :  { %v3609_v26 = vpop.eup %3608  ;;  %v3419_v27 = vmul.f32 -1.442695, %v870_v21  ;;  %v862_v21 = vpop.f32.mrf.mxu3 }
 0x35f   :  { %v3611_v30 = vpop.eup %3610  ;;  %v893_v31 = vadd.f32 1.0, %v3609_v26  ;;  %v466_v26 = vpop.f32.mrf.mxu1 }
 0x360   :  { %v941_v32 = vmul.f32 %v3611_v30, %v892_v13  ;;  %3612 = vpow2.f32 %v3419_v27  ;;  %vm946_vm7 = vweird.f32 %v3611_v30  ;;  %v467_v33 = vadd.f32 %v466_v26, %v4057_v42 }
 0x361   :  { %3614 = vrcp.f32 %v893_v31  ;;  %vm947_vm9 = vmor %vm945_vm8, %vm946_vm7  ;;  %v966_v6 = vand.u32 2147483648, %v893_v31  ;;  %v964_v35 = vand.u32 2147483647, %v893_v31  ;;  %vm960_vm12 = vweird.f32 %v893_v31 }
 0x362   :  { %v942_v38 = vsub.f32 1.0, %v941_v32  ;;  %v990_v32 = vadd.f32 %v4062_v46, %v862_v21  ;;  %v1011_v46 = vsub.f32 1.0, %v4302_v51 }
 0x363   :  { %v967_v19 = vor.u32 1.1754944e-38, %v966_v6  ;;  %vm965_vm14 = vcmp.eq.f32.partialorder %v964_v35, 8.507059e+37  ;;  %v53_v6 = vld [vmem:[%s5444_s0 + $0x68] sm:$0xff] }
 0x364   :  { %v943_v43 = vmul.f32 %v3611_v30, %v942_v38  ;;  %3313 = vmatmul.msk.f32.gmra.mxu0 %vm110_vm0, %v53_v6  ;;  %3361 = vmatmul.msk.f32.gmra.mxu1 %vm110_vm0, %v53_v6 }
 0x366   :  { %v3613_v49 = vpop.eup %3612  ;;  %v944_v18 = vadd.f32 %v3611_v30, %v943_v43 }
 0x367   :  { %v3615_v53 = vpop.eup %3614  ;;  %v894_v59 = vadd.f32 1.0, %v3613_v49 }
 0x368   :  { %v948_v58 = vsel %vm947_vm9, %v3611_v30, %v944_v18  ;;  %v956_v61 = vmul.f32 %v3615_v53, %v893_v31  ;;  %vm961_vm11 = vweird.f32 %v3615_v53  ;;  %v1040_v18 = vmul.f32 %v1024_v48, %v1010_v4 }
 0x369   :  { %v4365_v63 = vsel %vm950_vm10, %v952_v56, %v948_v58  ;;  %3616 = vrcp.f32 %v894_v59  ;;  %vm962_vm13 = vmor %vm960_vm12, %vm961_vm11  ;;  %v981_v11 = vand.u32 2147483648, %v894_v59  ;;  %v979_v14 = vand.u32 2147483647, %v894_v59 }
 0x36a   :  { %v994_v1 = vmul.f32 %v988_v60, %v4365_v63  ;;  %v957_v2 = vsub.f32 1.0, %v956_v61  ;;  %vm975_vm1 = vweird.f32 %v894_v59  ;;  %v1047_v60 = vmul.f32 %v4302_v51, %v4220_v50 }
 0x36b   :  { %v982_v30 = vor.u32 1.1754944e-38, %v981_v11  ;;  %vm980_vm3 = vcmp.eq.f32.partialorder %v979_v14, 8.507059e+37 }
 0x36c   :  { %v958_v8 = vmul.f32 %v3615_v53, %v957_v2  ;;  %v1000_v62 = vadd.f32 %v994_v1, %v461_v55  ;;  %v1026_v55 = vpop.permute.xlu0 %1025 }
 0x36d   :  { %v1041_v58 = vmul.f32 %v1026_v55, %v1011_v46 }
 0x36e   :  { %v959_v9 = vadd.f32 %v3615_v53, %v958_v8  ;;  %3618 = vtanh.f32 %v1000_v62 }
 0x36f   :  { %v3617_v17 = vpop.eup %3616  ;;  %v4391_v61 = vadd.f32 %v1047_v60, %v1041_v58 }
 0x370   :  { %v963_v22 = vsel %vm962_vm13, %v3615_v53, %v959_v9  ;;  %v971_v25 = vmul.f32 %v3617_v17, %v894_v59  ;;  %vm976_vm15 = vweird.f32 %v3617_v17  ;;  %v1046_v53 = vmul.f32 %v4296_v16, %v4196_v44  ;;  %v308_v44 = vpop.f32.mrf.mxu0 }
 0x371   :  { %v4370_v28 = vsel %vm965_vm14, %v967_v19, %v963_v22  ;;  %vm977_vm2 = vmor %vm975_vm1, %vm976_vm15  ;;  %v309_v16 = vadd.f32 %v308_v44, %v4052_v23 }
 0x372   :  { %v995_v29 = vmul.f32 %v989_v24, %v4370_v28  ;;  %v972_v10 = vsub.f32 1.0, %v971_v25  ;;  %v4383_v56 = vadd.f32 %v1046_v53, %v1040_v18  ;;  %v1013_v25 = vsub.f32 1.0, %v4370_v28 }
 0x374   :  { %v3619_v12 = vpop.eup %3618  ;;  %v973_v13 = vmul.f32 %v3617_v17, %v972_v10  ;;  %v1001_v15 = vadd.f32 %v995_v29, %v464_v20  ;;  %v469_v20 = vpop.f32.mrf.mxu1  ;;  %v4405_v10 = vld [vmem:[%s5445_s4] ss:$0 sm:$0xff] }
 0x375   :  { %1027 = vrot.lane.b32.xlu1 %v3619_v12, %s3904_s13 }
 0x376   :  { %v974_v27 = vadd.f32 %v3617_v17, %v973_v13  ;;  %3620 = vtanh.f32 %v1001_v15  ;;  %v470_v13 = vadd.f32 %v469_v20, %v4057_v42  ;;  %v1049_v15 = vmul.f32 %v4370_v28, %v4240_v57 }
 0x377   :  { %v1012_v28 = vsub.f32 1.0, %v4365_v63 }
 0x378   :  { %v978_v31 = vsel %vm977_vm2, %v3617_v17, %v974_v27 }
 0x379   :  { %v4376_v34 = vsel %vm980_vm3, %v982_v30, %v978_v31 }
 0x37a   :  { %v996_v38 = vmul.f32 %v990_v32, %v4376_v34  ;;  %v54_v32 = vld [vmem:[%s5444_s0 + $0x70] sm:$0xff]  ;;  %v1014_v48 = vsub.f32 1.0, %v4376_v34  ;;  %v1050_v18 = vmul.f32 %v4376_v34, %v4270_v0  ;;  %v56_v0 = vld [vmem:[%s5444_s0 + $0x80] sm:$0xff] }
 0x37b   :  { %3314 = vmatmul.msk.f32.gmra.mxu0 %vm110_vm0, %v54_v32  ;;  %3362 = vmatmul.msk.f32.gmra.mxu1 %vm110_vm0, %v54_v32 }
 0x37c   :  { %v3621_v43 = vpop.eup %3620  ;;  %v1002_v49 = vadd.f32 %v996_v38, %v467_v33  ;;  %v1048_v38 = vmul.f32 %v4365_v63, %v4237_v52  ;;  %v55_v52 = vld [vmem:[%s5444_s0 + $0x78] sm:$0xff]  ;;  %v57_v63 = vld [vmem:[%s5444_s0 + $0x88] sm:$0xff] }
 0x37d   :  { %1029 = vrot.lane.b32.xlu2 %v3621_v43, %s3904_s13 }
 0x37e   :  { %3622 = vtanh.f32 %v1002_v49 }
 0x383   :  { %3315 = vmatmul.msk.f32.gmra.mxu0 %vm110_vm0, %v55_v52  ;;  %3363 = vmatmul.msk.f32.gmra.mxu1 %vm110_vm0, %v55_v52 }
 0x384   :  { %v3623_v59 = vpop.eup %3622 }
 0x385   :  { %1065 = vrot.lane.b32.xlu2 %v4383_v56, %s3904_s13  ;;  %1031 = vrot.lane.b32.xlu0 %v3623_v59, %s3904_s13 }
 0x38b   :  { %3316 = vmatmul.msk.f32.gmra.mxu0 %vm110_vm0, %v56_v0  ;;  %3364 = vmatmul.msk.f32.gmra.mxu1 %vm110_vm0, %v56_v0 }
 0x38d   :  { %1067 = vrot.lane.b32.xlu0 %v4391_v61, %s3904_s13 }
 0x393   :  { %3317 = vmatmul.msk.f32.gmra.mxu0 %vm110_vm0, %v57_v63  ;;  %3365 = vmatmul.msk.f32.gmra.mxu1 %vm110_vm0, %v57_v63 }
 0x3ba   :  { %v1104_v1 = vpop.f32.mrf.mxu2  ;;  %v1139_v19 = vpop.f32.mrf.mxu3 }
 0x3bb   :  { %v1157_v2 = vadd.f32 %v1104_v1, %v309_v16  ;;  %v1277_v11 = vadd.f32 %v4405_v10, %v1139_v19 }
 0x3bd   :  { %v3432_v3 = vmul.f32 -1.442695, %v1157_v2 }
 0x3bf   :  { %3624 = vpow2.f32 %v3432_v3 }
 0x3c5   :  { %v3625_v50 = vpop.eup %3624 }
 0x3c6   :  { %v1181_v51 = vadd.f32 1.0, %v3625_v50 }
 0x3c8   :  { %3626 = vrcp.f32 %v1181_v51  ;;  %v1198_v62 = vand.u32 2147483648, %v1181_v51  ;;  %v1196_v17 = vand.u32 2147483647, %v1181_v51  ;;  %vm1192_vm5 = vweird.f32 %v1181_v51 }
 0x3ca   :  { %v1199_v24 = vor.u32 1.1754944e-38, %v1198_v62  ;;  %vm1197_vm7 = vcmp.eq.f32.partialorder %v1196_v17, 8.507059e+37 }
 0x3ce   :  { %v3627_v7 = vpop.eup %3626 }
 0x3cf   :  { %v1188_v8 = vmul.f32 %v3627_v7, %v1181_v51  ;;  %vm1193_vm4 = vweird.f32 %v3627_v7 }
 0x3d0   :  { %vm1194_vm6 = vmor %vm1192_vm5, %vm1193_vm4 }
 0x3d1   :  { %v1189_v35 = vsub.f32 1.0, %v1188_v8 }
 0x3d3   :  { %v1190_v9 = vmul.f32 %v3627_v7, %v1189_v35 }
 0x3d5   :  { %v1191_v22 = vadd.f32 %v3627_v7, %v1190_v9 }
 0x3d7   :  { %v1195_v29 = vsel %vm1194_vm6, %v3627_v7, %v1191_v22  ;;  %v1030_v12 = vpop.permute.xlu2 %1029 }
 0x3d8   :  { %v1200_v14 = vsel %vm1197_vm7, %v1199_v24, %v1195_v29  ;;  %v1043_v21 = vmul.f32 %v1030_v12, %v1013_v25 }
 0x3d9   :  { %v1283_v26 = vmul.f32 %v1277_v11, %v1200_v14  ;;  %v1301_v34 = vsub.f32 1.0, %v1200_v14  ;;  %v1337_v58 = vmul.f32 %v1200_v14, %v4327_v5 }
 0x3da   :  { %v4411_v27 = vadd.f32 %v1049_v15, %v1043_v21 }
 0x3db   :  { %v1289_v30 = vadd.f32 %v1283_v26, %v470_v13 }
 0x3dc   :  { %1071 = vrot.lane.b32.xlu2 %v4411_v27, %s3904_s13 }
 0x3dd   :  { %3628 = vtanh.f32 %v1289_v30 }
 0x3df   :  { %v1066_v31 = vpop.permute.xlu2 %1065 }
 0x3e0   :  { %3421 = vmatmul.msk.f32.gmra.mxu2 %vm110_vm0, %v1066_v31  ;;  %3427 = vmatmul.msk.f32.gmra.mxu3 %vm110_vm0, %v1066_v31 }
 0x3e1   :  { %v311_v16 = vpop.f32.mrf.mxu0  ;;  %v472_v25 = vpop.f32.mrf.mxu1 }
 0x3e2   :  { %v312_v2 = vadd.f32 %v311_v16, %v4052_v23  ;;  %v473_v15 = vadd.f32 %v472_v25, %v4057_v42 }
 0x3e3   :  { %v3629_v57 = vpop.eup %3628 }
 0x3e4   :  { %1313 = vrot.lane.b32.xlu1 %v3629_v57, %s3904_s13 }
 0x3e7   :  { %v1028_v33 = vpop.permute.xlu1 %1027 }
 0x3e8   :  { %v1042_v4 = vmul.f32 %v1028_v33, %v1012_v28 }
 0x3ea   :  { %v4426_v43 = vadd.f32 %v1048_v38, %v1042_v4 }
 0x3ec   :  { %1069 = vrot.lane.b32.xlu1 %v4426_v43, %s3904_s13 }
 0x3f7   :  { %v1032_v49 = vpop.permute.xlu0 %1031 }
 0x3f8   :  { %v1044_v53 = vmul.f32 %v1032_v49, %v1014_v48  ;;  %v314_v22 = vpop.f32.mrf.mxu0  ;;  %v475_v0 = vpop.f32.mrf.mxu1 }
 0x3f9   :  { %v315_v12 = vadd.f32 %v314_v22, %v4052_v23 }
 0x3fa   :  { %v4433_v46 = vadd.f32 %v1050_v18, %v1044_v53 }
 0x3fc   :  { %1073 = vrot.lane.b32.xlu0 %v4433_v46, %s3904_s13 }
 0x3ff   :  { %v1068_v59 = vpop.permute.xlu0 %1067 }
 0x400   :  { %3422 = vmatmul.msk.f32.gmra.mxu2 %vm110_vm0, %v1068_v59  ;;  %3428 = vmatmul.msk.f32.gmra.mxu3 %vm110_vm0, %v1068_v59 }
 0x436   :  { %v1072_v50 = vpop.permute.xlu2 %1071 }
 0x456   :  { %v1314_v55 = vpop.permute.xlu1 %1313 }
 0x457   :  { %v1331_v60 = vmul.f32 %v1314_v55, %v1301_v34 }
 0x459   :  { %v4455_v44 = vadd.f32 %v1337_v58, %v1331_v60  ;;  %v476_v60 = vadd.f32 %v475_v0, %v4057_v42 }
 0x45b   :  { %1355 = vrot.lane.b32.xlu1 %v4455_v44, %s3904_s13 }
 0x45e   :  { %v1070_v1 = vpop.permute.xlu1 %1069 }
 0x45f   :  { %3423 = vmatmul.msk.f32.gmra.mxu2 %vm110_vm0, %v1070_v1  ;;  %3429 = vmatmul.msk.f32.gmra.mxu3 %vm110_vm0, %v1070_v1 }
 0x463   :  { %v1107_v3 = vpop.f32.mrf.mxu2  ;;  %v1142_v24 = vpop.f32.mrf.mxu3 }
 0x464   :  { %v1158_v6 = vadd.f32 %v1107_v3, %v312_v2  ;;  %v1278_v14 = vadd.f32 %v4405_v10, %v1142_v24 }
 0x466   :  { %v3433_v51 = vmul.f32 -1.442695, %v1158_v6  ;;  %v58_v6 = vld [vmem:[%s5444_s0 + $0x90] sm:$0xff] }
 0x467   :  { %3424 = vmatmul.msk.f32.gmra.mxu2 %vm110_vm0, %v1072_v50  ;;  %3430 = vmatmul.msk.f32.gmra.mxu3 %vm110_vm0, %v1072_v50 }
 0x468   :  { %3630 = vpow2.f32 %v3433_v51  ;;  %3318 = vmatmul.msk.f32.gmra.mxu0 %vm110_vm0, %v58_v6  ;;  %3366 = vmatmul.msk.f32.gmra.mxu1 %vm110_vm0, %v58_v6  ;;  %v4489_v51 = vld [vmem:[%s5447_s3 + $0x70] sm:$0xff] }
 0x46e   :  { %v3631_v5 = vpop.eup %3630  ;;  %v1074_v7 = vpop.permute.xlu0 %1073 }
 0x46f   :  { %v1182_v8 = vadd.f32 1.0, %v3631_v5  ;;  %3425 = vmatmul.msk.f32.gmra.mxu2 %vm110_vm0, %v1074_v7  ;;  %3431 = vmatmul.msk.f32.gmra.mxu3 %vm110_vm0, %v1074_v7  ;;  %v4495_v5 = vld [vmem:[%s5447_s3 + $0x78] sm:$0xff]  ;;  %v4501_v7 = vld [vmem:[%s5447_s3 + $0x60] sm:$0xff] }
 0x471   :  { %3632 = vrcp.f32 %v1182_v8  ;;  %v1213_v17 = vand.u32 2147483648, %v1182_v8  ;;  %v1211_v20 = vand.u32 2147483647, %v1182_v8  ;;  %vm1207_vm9 = vweird.f32 %v1182_v8 }
 0x473   :  { %v1214_v11 = vor.u32 1.1754944e-38, %v1213_v17  ;;  %vm1212_vm11 = vcmp.eq.f32.partialorder %v1211_v20, 8.507059e+37  ;;  %v4531_v17 = vld [vmem:[%s5447_s3 + $0x48] sm:$0xff] }
 0x477   :  { %v3633_v35 = vpop.eup %3632 }
 0x478   :  { %v1203_v62 = vmul.f32 %v3633_v35, %v1182_v8  ;;  %vm1208_vm8 = vweird.f32 %v3633_v35  ;;  %v4507_v8 = vld [vmem:[%s5447_s3 + $0x68] sm:$0xff] }
 0x479   :  { %vm1209_vm10 = vmor %vm1207_vm9, %vm1208_vm8 }
 0x47a   :  { %v1204_v9 = vsub.f32 1.0, %v1203_v62  ;;  %v4519_v62 = vld [vmem:[%s5447_s3 + $0x58] sm:$0xff] }
 0x47c   :  { %v1205_v19 = vmul.f32 %v3633_v35, %v1204_v9  ;;  %v4525_v9 = vld [vmem:[%s5447_s3 + $0x40] sm:$0xff] }
 0x47e   :  { %v1206_v29 = vadd.f32 %v3633_v35, %v1205_v19  ;;  %v317_v19 = vpop.f32.mrf.mxu0 }
 0x47f   :  { %v318_v20 = vadd.f32 %v317_v19, %v4052_v23 }
 0x480   :  { %v1210_v13 = vsel %vm1209_vm10, %v3633_v35, %v1206_v29  ;;  %v4513_v35 = vld [vmem:[%s5447_s3 + $0x50] sm:$0xff] }
 0x481   :  { %v4469_v21 = vsel %vm1212_vm11, %v1214_v11, %v1210_v13 }
 0x482   :  { %v1284_v26 = vmul.f32 %v1278_v14, %v4469_v21 }
 0x483   :  { %v1110_v30 = vpop.f32.mrf.mxu2  ;;  %v1145_v52 = vpop.f32.mrf.mxu3 }
 0x484   :  { %v1290_v31 = vadd.f32 %v1284_v26, %v473_v15  ;;  %v1159_v32 = vadd.f32 %v1110_v30, %v315_v12  ;;  %v1279_v58 = vadd.f32 %v4405_v10, %v1145_v52 }
 0x486   :  { %3634 = vtanh.f32 %v1290_v31  ;;  %v3434_v57 = vmul.f32 -1.442695, %v1159_v32  ;;  %v320_v24 = vpop.f32.mrf.mxu0  ;;  %v478_v32 = vpop.f32.mrf.mxu1 }
 0x488   :  { %3636 = vpow2.f32 %v3434_v57 }
 0x48c   :  { %v3635_v28 = vpop.eup %3634 }
 0x48d   :  { %1315 = vrot.lane.b32.xlu2 %v3635_v28, %s3904_s13 }
 0x48e   :  { %v3637_v33 = vpop.eup %3636 }
 0x48f   :  { %v1183_v38 = vadd.f32 1.0, %v3637_v33 }
 0x491   :  { %3638 = vrcp.f32 %v1183_v38  ;;  %v1228_v18 = vand.u32 2147483648, %v1183_v38  ;;  %v1226_v59 = vand.u32 2147483647, %v1183_v38  ;;  %vm1222_vm13 = vweird.f32 %v1183_v38 }
 0x493   :  { %v1229_v34 = vor.u32 1.1754944e-38, %v1228_v18  ;;  %vm1227_vm15 = vcmp.eq.f32.partialorder %v1226_v59, 8.507059e+37  ;;  %v479_v59 = vadd.f32 %v478_v32, %v4057_v42 }
 0x497   :  { %v3639_v4 = vpop.eup %3638 }
 0x498   :  { %v1218_v48 = vmul.f32 %v3639_v4, %v1183_v38  ;;  %vm1223_vm12 = vweird.f32 %v3639_v4 }
 0x499   :  { %vm1224_vm14 = vmor %vm1222_vm13, %vm1223_vm12 }
 0x49a   :  { %v1219_v49 = vsub.f32 1.0, %v1218_v48 }
 0x49c   :  { %v1220_v53 = vmul.f32 %v3639_v4, %v1219_v49 }
 0x49e   :  { %v1221_v63 = vadd.f32 %v3639_v4, %v1220_v53 }
 0x4a0   :  { %v1225_v55 = vsel %vm1224_vm14, %v3639_v4, %v1221_v63 }
 0x4a1   :  { %v4475_v16 = vsel %vm1227_vm15, %v1229_v34, %v1225_v55 }
 0x4a2   :  { %v1285_v1 = vmul.f32 %v1279_v58, %v4475_v16 }
 0x4a4   :  { %v1291_v2 = vadd.f32 %v1285_v1, %v476_v60 }
 0x4a6   :  { %3640 = vtanh.f32 %v1291_v2  ;;  %v481_v2 = vpop.f32.mrf.mxu1 }
 0x4ac   :  { %v3641_v3 = vpop.eup %3640 }
 0x4ad   :  { %1317 = vrot.lane.b32.xlu0 %v3641_v3, %s3904_s13 }
 0x4cd   :  { %v1356_v50 = vpop.permute.xlu1 %1355 }
 0x4ce   :  { %3438 = vmatmul.msk.f32.vlgmr.msra.gmra.mxu2 %vm110_vm0, %v1356_v50  ;;  %3444 = vmatmul.msk.f32.vlgmr.msra.gmra.mxu3 %vm110_vm0, %v1356_v50 }
 0x4cf   :  { %1971 = vmatpush.msra.mxu2 %v4489_v51  ;;  %2006 = vmatpush.msra.mxu3 %v4495_v5 }
 0x4d1   :  { %1972 = vmatpush.msra.mxu2 %v4501_v7  ;;  %2007 = vmatpush.msra.mxu3 %v4507_v8 }
 0x4d3   :  { %1973 = vmatpush.msra.mxu2 %v4513_v35  ;;  %2008 = vmatpush.msra.mxu3 %v4519_v62 }
 0x4d5   :  { %1974 = vmatpush.msra.mxu2 %v4525_v9  ;;  %2009 = vmatpush.msra.mxu3 %v4531_v17 }
 0x4d7   :  { %1975 = vmatpush.msra.mxu2 %v4164_v36  ;;  %2010 = vmatpush.msra.mxu3 %v4169_v37  ;;  %v321_v37 = vadd.f32 %v320_v24, %v4052_v23  ;;  %v482_v24 = vadd.f32 %v481_v2, %v4057_v42  ;;  %v59_v2 = vld [vmem:[%s5444_s0 + $0x98] sm:$0xff] }
 0x4d8   :  { %3319 = vmatmul.msk.f32.gmra.mxu0 %vm110_vm0, %v59_v2  ;;  %3367 = vmatmul.msk.f32.gmra.mxu1 %vm110_vm0, %v59_v2 }
 0x4d9   :  { %1976 = vmatpush.msra.mxu2 %v4174_v54  ;;  %2011 = vmatpush.msra.mxu3 %v4182_v39  ;;  %v323_v39 = vpop.f32.mrf.mxu0 }
 0x4db   :  { %1977 = vmatpush.msra.mxu2 %v4187_v40  ;;  %2012 = vmatpush.msra.mxu3 %v4192_v41  ;;  %v324_v41 = vadd.f32 %v323_v39, %v4052_v23 }
 0x4dd   :  { %1978 = vmatpush.msra.mxu2 %v4203_v45  ;;  %2013 = vmatpush.msra.mxu3 %v4208_v47 }
 0x4e2   :  { %v1113_v22 = vpop.f32.mrf.mxu2  ;;  %v1148_v31 = vpop.f32.mrf.mxu3 }
 0x4e3   :  { %v1160_v36 = vadd.f32 %v1113_v22, %v318_v20  ;;  %v1280_v0 = vadd.f32 %v4405_v10, %v1148_v31 }
 0x4e5   :  { %v3435_v25 = vmul.f32 -1.442695, %v1160_v36 }
 0x4e7   :  { %3642 = vpow2.f32 %v3435_v25 }
 0x4ea   :  { %v1116_v54 = vpop.f32.mrf.mxu2  ;;  %v1151_v60 = vpop.f32.mrf.mxu3 }
 0x4eb   :  { %v1161_v29 = vadd.f32 %v1116_v54, %v321_v37  ;;  %v1281_v25 = vadd.f32 %v4405_v10, %v1151_v60 }
 0x4ed   :  { %v3643_v11 = vpop.eup %3642  ;;  %v3436_v40 = vmul.f32 -1.442695, %v1161_v29 }
 0x4ee   :  { %v1184_v12 = vadd.f32 1.0, %v3643_v11 }
 0x4ef   :  { %3644 = vpow2.f32 %v3436_v40 }
 0x4f0   :  { %3646 = vrcp.f32 %v1184_v12  ;;  %v1243_v28 = vand.u32 2147483648, %v1184_v12  ;;  %v1241_v38 = vand.u32 2147483647, %v1184_v12  ;;  %vm1237_vm2 = vweird.f32 %v1184_v12 }
 0x4f2   :  { %v1119_v45 = vpop.f32.mrf.mxu2  ;;  %v1244_v18 = vor.u32 1.1754944e-38, %v1243_v28  ;;  %vm1242_vm4 = vcmp.eq.f32.partialorder %v1241_v38, 8.507059e+37 }
 0x4f3   :  { %v1162_v47 = vadd.f32 %v1119_v45, %v324_v41 }
 0x4f5   :  { %v3645_v13 = vpop.eup %3644  ;;  %v3437_v14 = vmul.f32 -1.442695, %v1162_v47  ;;  %v1154_v47 = vpop.f32.mrf.mxu3 }
 0x4f6   :  { %v3647_v15 = vpop.eup %3646  ;;  %v1185_v26 = vadd.f32 1.0, %v3645_v13  ;;  %v484_v13 = vpop.f32.mrf.mxu1 }
 0x4f7   :  { %v1233_v30 = vmul.f32 %v3647_v15, %v1184_v12  ;;  %3648 = vpow2.f32 %v3437_v14  ;;  %vm1238_vm1 = vweird.f32 %v3647_v15  ;;  %v485_v31 = vadd.f32 %v484_v13, %v4057_v42 }
 0x4f8   :  { %3650 = vrcp.f32 %v1185_v26  ;;  %vm1239_vm3 = vmor %vm1237_vm2, %vm1238_vm1  ;;  %v1258_v1 = vand.u32 2147483648, %v1185_v26  ;;  %v1256_v6 = vand.u32 2147483647, %v1185_v26  ;;  %vm1252_vm6 = vweird.f32 %v1185_v26 }
 0x4f9   :  { %v1234_v57 = vsub.f32 1.0, %v1233_v30  ;;  %v1282_v30 = vadd.f32 %v4405_v10, %v1154_v47 }
 0x4fa   :  { %v1259_v22 = vor.u32 1.1754944e-38, %v1258_v1  ;;  %vm1257_vm8 = vcmp.eq.f32.partialorder %v1256_v6, 8.507059e+37 }
 0x4fb   :  { %v1235_v33 = vmul.f32 %v3647_v15, %v1234_v57 }
 0x4fd   :  { %v3649_v4 = vpop.eup %3648  ;;  %v1236_v48 = vadd.f32 %v3647_v15, %v1235_v33  ;;  %v1316_v33 = vpop.permute.xlu2 %1315 }
 0x4fe   :  { %v3651_v49 = vpop.eup %3650  ;;  %v1186_v53 = vadd.f32 1.0, %v3649_v4  ;;  %v1302_v4 = vsub.f32 1.0, %v4469_v21 }
 0x4ff   :  { %v1240_v52 = vsel %vm1239_vm3, %v3647_v15, %v1236_v48  ;;  %v1248_v63 = vmul.f32 %v3651_v49, %v1185_v26  ;;  %vm1253_vm5 = vweird.f32 %v3651_v49 }
 0x500   :  { %v4547_v34 = vsel %vm1242_vm4, %v1244_v18, %v1240_v52  ;;  %3652 = vrcp.f32 %v1186_v53  ;;  %vm1254_vm7 = vmor %vm1252_vm6, %vm1253_vm5  ;;  %v1273_v11 = vand.u32 2147483648, %v1186_v53  ;;  %v1271_v41 = vand.u32 2147483647, %v1186_v53 }
 0x501   :  { %v1286_v55 = vmul.f32 %v1280_v0, %v4547_v34  ;;  %v1249_v58 = vsub.f32 1.0, %v1248_v63  ;;  %vm1267_vm10 = vweird.f32 %v1186_v53  ;;  %v1332_v48 = vmul.f32 %v1316_v33, %v1302_v4 }
 0x502   :  { %v1274_v15 = vor.u32 1.1754944e-38, %v1273_v11  ;;  %vm1272_vm12 = vcmp.eq.f32.partialorder %v1271_v41, 8.507059e+37  ;;  %v1339_v0 = vmul.f32 %v4475_v16, %v4391_v61 }
 0x503   :  { %v1250_v3 = vmul.f32 %v3651_v49, %v1249_v58  ;;  %v1292_v50 = vadd.f32 %v1286_v55, %v479_v59  ;;  %v1303_v59 = vsub.f32 1.0, %v4475_v16 }
 0x505   :  { %v1251_v19 = vadd.f32 %v3651_v49, %v1250_v3  ;;  %3654 = vtanh.f32 %v1292_v50 }
 0x506   :  { %v3653_v20 = vpop.eup %3652 }
 0x507   :  { %v1255_v36 = vsel %vm1254_vm7, %v3651_v49, %v1251_v19  ;;  %v1263_v37 = vmul.f32 %v3653_v20, %v1186_v53  ;;  %vm1268_vm9 = vweird.f32 %v3653_v20  ;;  %v1338_v49 = vmul.f32 %v4469_v21, %v4383_v56  ;;  %v326_v56 = vpop.f32.mrf.mxu0 }
 0x508   :  { %v4552_v54 = vsel %vm1257_vm8, %v1259_v22, %v1255_v36  ;;  %vm1269_vm11 = vmor %vm1267_vm10, %vm1268_vm9  ;;  %v327_v21 = vadd.f32 %v326_v56, %v4052_v23  ;;  %v487_v36 = vpop.f32.mrf.mxu1 }
 0x509   :  { %v1287_v29 = vmul.f32 %v1281_v25, %v4552_v54  ;;  %v1264_v39 = vsub.f32 1.0, %v1263_v37  ;;  %v4565_v18 = vadd.f32 %v1338_v49, %v1332_v48 }
 0x50b   :  { %v3655_v40 = vpop.eup %3654  ;;  %v1265_v12 = vmul.f32 %v3653_v20, %v1264_v39  ;;  %v1293_v45 = vadd.f32 %v1287_v29, %v482_v24  ;;  %v1305_v29 = vsub.f32 1.0, %v4552_v54 }
 0x50c   :  { %1319 = vrot.lane.b32.xlu1 %v3655_v40, %s3904_s13 }
 0x50d   :  { %v1266_v14 = vadd.f32 %v3653_v20, %v1265_v12  ;;  %3656 = vtanh.f32 %v1293_v45  ;;  %v488_v12 = vadd.f32 %v487_v36, %v4057_v42  ;;  %v1341_v45 = vmul.f32 %v4552_v54, %v4411_v27 }
 0x50e   :  { %v1304_v54 = vsub.f32 1.0, %v4547_v34 }
 0x50f   :  { %v1270_v26 = vsel %vm1269_vm11, %v3653_v20, %v1266_v14 }
 0x510   :  { %v4558_v32 = vsel %vm1272_vm12, %v1274_v15, %v1270_v26 }
 0x511   :  { %v1288_v57 = vmul.f32 %v1282_v30, %v4558_v32  ;;  %v60_v30 = vld [vmem:[%s5444_s0 + $0xa0] sm:$0xff]  ;;  %v1342_v48 = vmul.f32 %v4558_v32, %v4433_v46  ;;  %v62_v46 = vld [vmem:[%s5444_s0 + $0xb0] sm:$0xff] }
 0x512   :  { %3320 = vmatmul.msk.f32.gmra.mxu0 %vm110_vm0, %v60_v30  ;;  %3368 = vmatmul.msk.f32.gmra.mxu1 %vm110_vm0, %v60_v30 }
 0x513   :  { %v3657_v28 = vpop.eup %3656  ;;  %v1294_v38 = vadd.f32 %v1288_v57, %v485_v31  ;;  %v1340_v57 = vmul.f32 %v4547_v34, %v4426_v43  ;;  %v61_v43 = vld [vmem:[%s5444_s0 + $0xa8] sm:$0xff]  ;;  %v63_v34 = vld [vmem:[%s5444_s0 + $0xb8] sm:$0xff] }
 0x514   :  { %1321 = vrot.lane.b32.xlu2 %v3657_v28, %s3904_s13 }
 0x515   :  { %3658 = vtanh.f32 %v1294_v38  ;;  %v1306_v38 = vsub.f32 1.0, %v4558_v32 }
 0x51a   :  { %3321 = vmatmul.msk.f32.gmra.mxu0 %vm110_vm0, %v61_v43  ;;  %3369 = vmatmul.msk.f32.gmra.mxu1 %vm110_vm0, %v61_v43 }
 0x51b   :  { %v3659_v53 = vpop.eup %3658 }
 0x51c   :  { %1357 = vrot.lane.b32.xlu2 %v4565_v18, %s3904_s13  ;;  %1323 = vrot.lane.b32.xlu0 %v3659_v53, %s3904_s13 }
 0x51f   :  { %v1318_v52 = vpop.permute.xlu0 %1317 }
 0x520   :  { %v1333_v63 = vmul.f32 %v1318_v52, %v1303_v59 }
 0x522   :  { %v4573_v55 = vadd.f32 %v1339_v0, %v1333_v63  ;;  %3322 = vmatmul.msk.f32.gmra.mxu0 %vm110_vm0, %v62_v46  ;;  %3370 = vmatmul.msk.f32.gmra.mxu1 %vm110_vm0, %v62_v46 }
 0x524   :  { %1359 = vrot.lane.b32.xlu0 %v4573_v55, %s3904_s13 }
 0x52a   :  { %3323 = vmatmul.msk.f32.gmra.mxu0 %vm110_vm0, %v63_v34  ;;  %3371 = vmatmul.msk.f32.gmra.mxu1 %vm110_vm0, %v63_v34 }
 0x551   :  { %v1396_v58 = vpop.f32.mrf.mxu2  ;;  %v1431_v24 = vpop.f32.mrf.mxu3 }
 0x552   :  { %v1449_v60 = vadd.f32 %v1396_v58, %v327_v21  ;;  %v1569_v11 = vadd.f32 %v4405_v10, %v1431_v24 }
 0x554   :  { %v3450_v1 = vmul.f32 -1.442695, %v1449_v60 }
 0x555   :  { %v329_v21 = vpop.f32.mrf.mxu0 }
 0x556   :  { %3660 = vpow2.f32 %v3450_v1  ;;  %v330_v60 = vadd.f32 %v329_v21, %v4052_v23 }
 0x55c   :  { %v3661_v61 = vpop.eup %3660 }
 0x55d   :  { %v1473_v16 = vadd.f32 1.0, %v3661_v61 }
 0x55f   :  { %3662 = vrcp.f32 %v1473_v16  ;;  %v1490_v19 = vand.u32 2147483648, %v1473_v16  ;;  %v1488_v22 = vand.u32 2147483647, %v1473_v16  ;;  %vm1484_vm14 = vweird.f32 %v1473_v16 }
 0x561   :  { %v1491_v37 = vor.u32 1.1754944e-38, %v1490_v19  ;;  %vm1489_vm1 = vcmp.eq.f32.partialorder %v1488_v22, 8.507059e+37 }
 0x565   :  { %v3663_v3 = vpop.eup %3662 }
 0x566   :  { %v1480_v6 = vmul.f32 %v3663_v3, %v1473_v16  ;;  %vm1485_vm13 = vweird.f32 %v3663_v3 }
 0x567   :  { %vm1486_vm15 = vmor %vm1484_vm14, %vm1485_vm13 }
 0x568   :  { %v1481_v50 = vsub.f32 1.0, %v1480_v6 }
 0x56a   :  { %v1482_v20 = vmul.f32 %v3663_v3, %v1481_v50 }
 0x56c   :  { %v1483_v25 = vadd.f32 %v3663_v3, %v1482_v20 }
 0x56e   :  { %v1487_v39 = vsel %vm1486_vm15, %v3663_v3, %v1483_v25  ;;  %v1322_v40 = vpop.permute.xlu2 %1321 }
 0x56f   :  { %v1492_v41 = vsel %vm1489_vm1, %v1491_v37, %v1487_v39  ;;  %v1335_v47 = vmul.f32 %v1322_v40, %v1305_v29  ;;  %v490_v29 = vpop.f32.mrf.mxu1 }
 0x570   :  { %v1575_v13 = vmul.f32 %v1569_v11, %v1492_v41  ;;  %v1593_v32 = vsub.f32 1.0, %v1492_v41  ;;  %v1629_v0 = vmul.f32 %v1492_v41, %v4455_v44 }
 0x571   :  { %v4588_v14 = vadd.f32 %v1341_v45, %v1335_v47  ;;  %v491_v45 = vadd.f32 %v490_v29, %v4057_v42 }
 0x572   :  { %v1581_v15 = vadd.f32 %v1575_v13, %v488_v12 }
 0x573   :  { %1363 = vrot.lane.b32.xlu2 %v4588_v14, %s3904_s13 }
 0x574   :  { %3664 = vtanh.f32 %v1581_v15 }
 0x576   :  { %v1358_v26 = vpop.permute.xlu2 %1357 }
 0x577   :  { %3439 = vmatmul.msk.f32.gmra.mxu2 %vm110_vm0, %v1358_v26  ;;  %3445 = vmatmul.msk.f32.gmra.mxu3 %vm110_vm0, %v1358_v26 }
 0x57a   :  { %v3665_v27 = vpop.eup %3664 }
 0x57b   :  { %1605 = vrot.lane.b32.xlu1 %v3665_v27, %s3904_s13 }
 0x57e   :  { %v1320_v31 = vpop.permute.xlu1 %1319 }
 0x57f   :  { %v1334_v28 = vmul.f32 %v1320_v31, %v1304_v54 }
 0x581   :  { %v4603_v33 = vadd.f32 %v1340_v57, %v1334_v28 }
 0x583   :  { %1361 = vrot.lane.b32.xlu1 %v4603_v33, %s3904_s13 }
 0x58e   :  { %v1324_v4 = vpop.permute.xlu0 %1323 }
 0x58f   :  { %v1336_v49 = vmul.f32 %v1324_v4, %v1306_v38  ;;  %v332_v25 = vpop.f32.mrf.mxu0  ;;  %v493_v46 = vpop.f32.mrf.mxu1 }
 0x590   :  { %v333_v40 = vadd.f32 %v332_v25, %v4052_v23 }
 0x591   :  { %v4610_v53 = vadd.f32 %v1342_v48, %v1336_v49 }
 0x593   :  { %1365 = vrot.lane.b32.xlu0 %v4610_v53, %s3904_s13 }
 0x596   :  { %v1360_v59 = vpop.permute.xlu0 %1359 }
 0x597   :  { %3440 = vmatmul.msk.f32.gmra.mxu2 %vm110_vm0, %v1360_v59  ;;  %3446 = vmatmul.msk.f32.gmra.mxu3 %vm110_vm0, %v1360_v59 }
 0x5cd   :  { %v1364_v61 = vpop.permute.xlu2 %1363 }
 0x5ed   :  { %v1606_v52 = vpop.permute.xlu1 %1605 }
 0x5ee   :  { %v1623_v63 = vmul.f32 %v1606_v52, %v1593_v32 }
 0x5f0   :  { %v4632_v56 = vadd.f32 %v1629_v0, %v1623_v63  ;;  %v494_v63 = vadd.f32 %v493_v46, %v4057_v42 }
 0x5f2   :  { %1647 = vrot.lane.b32.xlu1 %v4632_v56, %s3904_s13 }
 0x5f5   :  { %v1362_v58 = vpop.permute.xlu1 %1361 }
 0x5f6   :  { %3441 = vmatmul.msk.f32.gmra.mxu2 %vm110_vm0, %v1362_v58  ;;  %3447 = vmatmul.msk.f32.gmra.mxu3 %vm110_vm0, %v1362_v58 }
 0x5fa   :  { %v1399_v1 = vpop.f32.mrf.mxu2  ;;  %v1434_v37 = vpop.f32.mrf.mxu3 }
 0x5fb   :  { %v1450_v2 = vadd.f32 %v1399_v1, %v330_v60  ;;  %v1570_v41 = vadd.f32 %v4405_v10, %v1434_v37 }
 0x5fd   :  { %v3451_v16 = vmul.f32 -1.442695, %v1450_v2  ;;  %v64_v2 = vld [vmem:[%s5444_s0 + $0xc0] sm:$0xff] }
 0x5fe   :  { %3442 = vmatmul.msk.f32.gmra.mxu2 %vm110_vm0, %v1364_v61  ;;  %3448 = vmatmul.msk.f32.gmra.mxu3 %vm110_vm0, %v1364_v61 }
 0x5ff   :  { %3666 = vpow2.f32 %v3451_v16  ;;  %3324 = vmatmul.msk.f32.gmra.mxu0 %vm110_vm0, %v64_v2  ;;  %3372 = vmatmul.msk.f32.gmra.mxu1 %vm110_vm0, %v64_v2  ;;  %v4674_v16 = vld [vmem:[%s5447_s3 + $0x30] sm:$0xff] }
 0x605   :  { %v3667_v44 = vpop.eup %3666  ;;  %v1366_v3 = vpop.permute.xlu0 %1365 }
 0x606   :  { %v1474_v6 = vadd.f32 1.0, %v3667_v44  ;;  %3443 = vmatmul.msk.f32.gmra.mxu2 %vm110_vm0, %v1366_v3  ;;  %3449 = vmatmul.msk.f32.gmra.mxu3 %vm110_vm0, %v1366_v3 }
 0x608   :  { %3668 = vrcp.f32 %v1474_v6  ;;  %v1505_v22 = vand.u32 2147483648, %v1474_v6  ;;  %v1503_v36 = vand.u32 2147483647, %v1474_v6  ;;  %vm1499_vm3 = vweird.f32 %v1474_v6 }
 0x60a   :  { %v1506_v11 = vor.u32 1.1754944e-38, %v1505_v22  ;;  %vm1504_vm5 = vcmp.eq.f32.partialorder %v1503_v36, 8.507059e+37 }
 0x60e   :  { %v3669_v50 = vpop.eup %3668 }
 0x60f   :  { %v1495_v19 = vmul.f32 %v3669_v50, %v1474_v6  ;;  %vm1500_vm2 = vweird.f32 %v3669_v50 }
 0x610   :  { %vm1501_vm4 = vmor %vm1499_vm3, %vm1500_vm2 }
 0x611   :  { %v1496_v20 = vsub.f32 1.0, %v1495_v19 }
 0x613   :  { %v1497_v24 = vmul.f32 %v3669_v50, %v1496_v20 }
 0x615   :  { %v1498_v39 = vadd.f32 %v3669_v50, %v1497_v24 }
 0x617   :  { %v1502_v12 = vsel %vm1501_vm4, %v3669_v50, %v1498_v39 }
 0x618   :  { %v4646_v47 = vsel %vm1504_vm5, %v1506_v11, %v1502_v12 }
 0x619   :  { %v1576_v13 = vmul.f32 %v1570_v41, %v4646_v47 }
 0x61a   :  { %v1402_v15 = vpop.f32.mrf.mxu2  ;;  %v1437_v43 = vpop.f32.mrf.mxu3 }
 0x61b   :  { %v1582_v26 = vadd.f32 %v1576_v13, %v491_v45  ;;  %v1451_v30 = vadd.f32 %v1402_v15, %v333_v40  ;;  %v1571_v0 = vadd.f32 %v4405_v10, %v1437_v43 }
 0x61d   :  { %3670 = vtanh.f32 %v1582_v26  ;;  %v3452_v27 = vmul.f32 -1.442695, %v1451_v30  ;;  %v496_v30 = vpop.f32.mrf.mxu1 }
 0x61f   :  { %3672 = vpow2.f32 %v3452_v27 }
 0x623   :  { %v3671_v54 = vpop.eup %3670 }
 0x624   :  { %1607 = vrot.lane.b32.xlu2 %v3671_v54, %s3904_s13 }
 0x625   :  { %v3673_v31 = vpop.eup %3672 }
 0x626   :  { %v1475_v57 = vadd.f32 1.0, %v3673_v31 }
 0x628   :  { %3674 = vrcp.f32 %v1475_v57  ;;  %v1520_v48 = vand.u32 2147483648, %v1475_v57  ;;  %v1518_v59 = vand.u32 2147483647, %v1475_v57  ;;  %vm1514_vm7 = vweird.f32 %v1475_v57 }
 0x62a   :  { %v1521_v32 = vor.u32 1.1754944e-38, %v1520_v48  ;;  %vm1519_vm9 = vcmp.eq.f32.partialorder %v1518_v59, 8.507059e+37  ;;  %v497_v59 = vadd.f32 %v496_v30, %v4057_v42 }
 0x62e   :  { %v3675_v28 = vpop.eup %3674 }
 0x62f   :  { %v1510_v38 = vmul.f32 %v3675_v28, %v1475_v57  ;;  %vm1515_vm6 = vweird.f32 %v3675_v28 }
 0x630   :  { %vm1516_vm8 = vmor %vm1514_vm7, %vm1515_vm6 }
 0x631   :  { %v1511_v4 = vsub.f32 1.0, %v1510_v38 }
 0x633   :  { %v1512_v49 = vmul.f32 %v3675_v28, %v1511_v4 }
 0x635   :  { %v1513_v34 = vadd.f32 %v3675_v28, %v1512_v49 }
 0x637   :  { %v1517_v52 = vsel %vm1516_vm8, %v3675_v28, %v1513_v34 }
 0x638   :  { %v4652_v21 = vsel %vm1519_vm9, %v1521_v32, %v1517_v52 }
 0x639   :  { %v1577_v58 = vmul.f32 %v1571_v0, %v4652_v21 }
 0x63b   :  { %v1583_v60 = vadd.f32 %v1577_v58, %v494_v63 }
 0x63d   :  { %3676 = vtanh.f32 %v1583_v60  ;;  %v499_v60 = vpop.f32.mrf.mxu1 }
 0x643   :  { %v3677_v1 = vpop.eup %3676 }
 0x644   :  { %1609 = vrot.lane.b32.xlu0 %v3677_v1, %s3904_s13 }
 0x664   :  { %v1648_v61 = vpop.permute.xlu1 %1647 }
 0x665   :  { %3456 = vmatmul.msk.f32.vlgmr.msrb.gmra.mxu2 %vm110_vm0, %v1648_v61  ;;  %3462 = vmatmul.msk.f32.vlgmr.msrb.gmra.mxu3 %vm110_vm0, %v1648_v61 }
 0x666   :  { %2263 = vmatpush.msrb.mxu2 %v4489_v51  ;;  %2298 = vmatpush.msrb.mxu3 %v4495_v5  ;;  %v4680_v51 = vld [vmem:[%s5447_s3 + $0x38] sm:$0xff]  ;;  %v335_v5 = vpop.f32.mrf.mxu0 }
 0x667   :  { %v336_v44 = vadd.f32 %v335_v5, %v4052_v23 }
 0x668   :  { %2264 = vmatpush.msrb.mxu2 %v4501_v7  ;;  %2299 = vmatpush.msrb.mxu3 %v4507_v8  ;;  %v4686_v7 = vld [vmem:[%s5447_s3 + $0x20] sm:$0xff]  ;;  %v4692_v8 = vld [vmem:[%s5447_s3 + $0x28] sm:$0xff] }
 0x66a   :  { %2265 = vmatpush.msrb.mxu2 %v4513_v35  ;;  %2300 = vmatpush.msrb.mxu3 %v4519_v62  ;;  %v4698_v35 = vld [vmem:[%s5447_s3 + $0x10] sm:$0xff]  ;;  %v4704_v62 = vld [vmem:[%s5447_s3 + $0x18] sm:$0xff] }
 0x66c   :  { %2266 = vmatpush.msrb.mxu2 %v4525_v9  ;;  %2301 = vmatpush.msrb.mxu3 %v4531_v17  ;;  %v4710_v9 = vld [vmem:[%s5447_s3] sm:$0xff]  ;;  %v4716_v17 = vld [vmem:[%s5447_s3 + $0x8] sm:$0xff] }
 0x66e   :  { %2267 = vmatpush.msrb.mxu2 %v4674_v16  ;;  %2302 = vmatpush.msrb.mxu3 %v4680_v51  ;;  %v338_v6 = vpop.f32.mrf.mxu0 }
 0x66f   :  { %v339_v20 = vadd.f32 %v338_v6, %v4052_v23  ;;  %v500_v6 = vadd.f32 %v499_v60, %v4057_v42 }
 0x670   :  { %2268 = vmatpush.msrb.mxu2 %v4686_v7  ;;  %2303 = vmatpush.msrb.mxu3 %v4692_v8 }
 0x672   :  { %2269 = vmatpush.msrb.mxu2 %v4698_v35  ;;  %2304 = vmatpush.msrb.mxu3 %v4704_v62 }
 0x674   :  { %2270 = vmatpush.msrb.mxu2 %v4710_v9  ;;  %2305 = vmatpush.msrb.mxu3 %v4716_v17 }
 0x676   :  { %v341_v36 = vpop.f32.mrf.mxu0 }
 0x677   :  { %v342_v39 = vadd.f32 %v341_v36, %v4052_v23 }
 0x679   :  { %v1405_v3 = vpop.f32.mrf.mxu2  ;;  %v1440_v26 = vpop.f32.mrf.mxu3 }
 0x67a   :  { %v1452_v50 = vadd.f32 %v1405_v3, %v336_v44  ;;  %v1572_v46 = vadd.f32 %v4405_v10, %v1440_v26 }
 0x67c   :  { %v3453_v19 = vmul.f32 -1.442695, %v1452_v50 }
 0x67e   :  { %3678 = vpow2.f32 %v3453_v19 }
 0x681   :  { %v1408_v22 = vpop.f32.mrf.mxu2  ;;  %v1443_v63 = vpop.f32.mrf.mxu3 }
 0x682   :  { %v1453_v24 = vadd.f32 %v1408_v22, %v339_v20  ;;  %v1573_v19 = vadd.f32 %v4405_v10, %v1443_v63 }
 0x684   :  { %v3679_v25 = vpop.eup %3678  ;;  %v3454_v37 = vmul.f32 -1.442695, %v1453_v24 }
 0x685   :  { %v1476_v29 = vadd.f32 1.0, %v3679_v25 }
 0x686   :  { %3680 = vpow2.f32 %v3454_v37 }
 0x687   :  { %3682 = vrcp.f32 %v1476_v29  ;;  %v1535_v54 = vand.u32 2147483648, %v1476_v29  ;;  %v1533_v57 = vand.u32 2147483647, %v1476_v29  ;;  %vm1529_vm11 = vweird.f32 %v1476_v29 }
 0x689   :  { %v1411_v11 = vpop.f32.mrf.mxu2  ;;  %v1536_v48 = vor.u32 1.1754944e-38, %v1535_v54  ;;  %vm1534_vm13 = vcmp.eq.f32.partialorder %v1533_v57, 8.507059e+37 }
 0x68a   :  { %v1454_v40 = vadd.f32 %v1411_v11, %v342_v39 }
 0x68c   :  { %v3681_v12 = vpop.eup %3680  ;;  %v3455_v41 = vmul.f32 -1.442695, %v1454_v40  ;;  %v1446_v40 = vpop.f32.mrf.mxu3 }
 0x68d   :  { %v3683_v45 = vpop.eup %3682  ;;  %v1477_v13 = vadd.f32 1.0, %v3681_v12  ;;  %v502_v12 = vpop.f32.mrf.mxu1 }
 0x68e   :  { %v1525_v15 = vmul.f32 %v3683_v45, %v1476_v29  ;;  %3684 = vpow2.f32 %v3455_v41  ;;  %vm1530_vm10 = vweird.f32 %v3683_v45  ;;  %v503_v26 = vadd.f32 %v502_v12, %v4057_v42 }
 0x68f   :  { %3686 = vrcp.f32 %v1477_v13  ;;  %vm1531_vm12 = vmor %vm1529_vm11, %vm1530_vm10  ;;  %v1550_v58 = vand.u32 2147483648, %v1477_v13  ;;  %v1548_v2 = vand.u32 2147483647, %v1477_v13  ;;  %vm1544_vm15 = vweird.f32 %v1477_v13 }
 0x690   :  { %v1526_v27 = vsub.f32 1.0, %v1525_v15  ;;  %v1574_v15 = vadd.f32 %v4405_v10, %v1446_v40 }
 0x691   :  { %v1551_v3 = vor.u32 1.1754944e-38, %v1550_v58  ;;  %vm1549_vm2 = vcmp.eq.f32.partialorder %v1548_v2, 8.507059e+37  ;;  %v65_v58 = vld [vmem:[%s5444_s0 + $0xc8] sm:$0xff] }
 0x692   :  { %v1527_v31 = vmul.f32 %v3683_v45, %v1526_v27  ;;  %3325 = vmatmul.msk.f32.gmra.mxu0 %vm110_vm0, %v65_v58  ;;  %3373 = vmatmul.msk.f32.gmra.mxu1 %vm110_vm0, %v65_v58 }
 0x694   :  { %v3685_v28 = vpop.eup %3684  ;;  %v1528_v38 = vadd.f32 %v3683_v45, %v1527_v31  ;;  %v1608_v31 = vpop.permute.xlu2 %1607 }
 0x695   :  { %v3687_v4 = vpop.eup %3686  ;;  %v1478_v49 = vadd.f32 1.0, %v3685_v28  ;;  %v1594_v28 = vsub.f32 1.0, %v4646_v47 }
 0x696   :  { %v1532_v43 = vsel %vm1531_vm12, %v3683_v45, %v1528_v38  ;;  %v1540_v34 = vmul.f32 %v3687_v4, %v1477_v13  ;;  %vm1545_vm14 = vweird.f32 %v3687_v4 }
 0x697   :  { %v4724_v32 = vsel %vm1534_vm13, %v1536_v48, %v1532_v43  ;;  %3688 = vrcp.f32 %v1478_v49  ;;  %vm1546_vm1 = vmor %vm1544_vm15, %vm1545_vm14  ;;  %v1565_v25 = vand.u32 2147483648, %v1478_v49  ;;  %v1563_v39 = vand.u32 2147483647, %v1478_v49 }
 0x698   :  { %v1578_v52 = vmul.f32 %v1572_v46, %v4724_v32  ;;  %v1541_v0 = vsub.f32 1.0, %v1540_v34  ;;  %vm1559_vm4 = vweird.f32 %v1478_v49  ;;  %v1624_v38 = vmul.f32 %v1608_v31, %v1594_v28 }
 0x699   :  { %v1566_v45 = vor.u32 1.1754944e-38, %v1565_v25  ;;  %vm1564_vm6 = vcmp.eq.f32.partialorder %v1563_v39, 8.507059e+37  ;;  %v1631_v43 = vmul.f32 %v4652_v21, %v4573_v55 }
 0x69a   :  { %v1542_v1 = vmul.f32 %v3687_v4, %v1541_v0  ;;  %v1584_v61 = vadd.f32 %v1578_v52, %v497_v59 }
 0x69c   :  { %v1543_v5 = vadd.f32 %v3687_v4, %v1542_v1  ;;  %3690 = vtanh.f32 %v1584_v61 }
 0x69d   :  { %v3689_v44 = vpop.eup %3688 }
 0x69e   :  { %v1547_v50 = vsel %vm1546_vm1, %v3687_v4, %v1543_v5  ;;  %v1555_v20 = vmul.f32 %v3689_v44, %v1478_v49  ;;  %vm1560_vm3 = vweird.f32 %v3689_v44  ;;  %v1630_v4 = vmul.f32 %v4646_v47, %v4565_v18  ;;  %v344_v18 = vpop.f32.mrf.mxu0 }
 0x69f   :  { %v4729_v22 = vsel %vm1549_vm2, %v1551_v3, %v1547_v50  ;;  %vm1561_vm5 = vmor %vm1559_vm4, %vm1560_vm3  ;;  %v1595_v49 = vsub.f32 1.0, %v4652_v21  ;;  %v345_v47 = vadd.f32 %v344_v18, %v4052_v23 }
 0x6a0   :  { %v1579_v24 = vmul.f32 %v1573_v19, %v4729_v22  ;;  %v1556_v36 = vsub.f32 1.0, %v1555_v20  ;;  %v4742_v48 = vadd.f32 %v1630_v4, %v1624_v38  ;;  %v1597_v20 = vsub.f32 1.0, %v4729_v22 }
 0x6a2   :  { %v3691_v37 = vpop.eup %3690  ;;  %v1557_v29 = vmul.f32 %v3689_v44, %v1556_v36  ;;  %v1585_v11 = vadd.f32 %v1579_v24, %v500_v6  ;;  %v505_v6 = vpop.f32.mrf.mxu1  ;;  %v4764_v36 = vld [vmem:[%s5445_s4] ss:$0 sm:$0xff] }
 0x6a3   :  { %1611 = vrot.lane.b32.xlu1 %v3691_v37, %s3904_s13 }
 0x6a4   :  { %v1558_v41 = vadd.f32 %v3689_v44, %v1557_v29  ;;  %3692 = vtanh.f32 %v1585_v11  ;;  %v506_v29 = vadd.f32 %v505_v6, %v4057_v42  ;;  %v1633_v11 = vmul.f32 %v4729_v22, %v4588_v14 }
 0x6a5   :  { %v1596_v22 = vsub.f32 1.0, %v4724_v32 }
 0x6a6   :  { %v1562_v13 = vsel %vm1561_vm5, %v3689_v44, %v1558_v41 }
 0x6a7   :  { %v4735_v30 = vsel %vm1564_vm6, %v1566_v45, %v1562_v13 }
 0x6a8   :  { %v1580_v27 = vmul.f32 %v1574_v15, %v4735_v30  ;;  %v66_v15 = vld [vmem:[%s5444_s0 + $0xd0] sm:$0xff]  ;;  %v1634_v38 = vmul.f32 %v4735_v30, %v4610_v53  ;;  %v68_v53 = vld [vmem:[%s5444_s0 + $0xe0] sm:$0xff] }
 0x6a9   :  { %3326 = vmatmul.msk.f32.gmra.mxu0 %vm110_vm0, %v66_v15  ;;  %3374 = vmatmul.msk.f32.gmra.mxu1 %vm110_vm0, %v66_v15 }
 0x6aa   :  { %v3693_v54 = vpop.eup %3692  ;;  %v1586_v57 = vadd.f32 %v1580_v27, %v503_v26  ;;  %v1632_v27 = vmul.f32 %v4724_v32, %v4603_v33  ;;  %v67_v33 = vld [vmem:[%s5444_s0 + $0xd8] sm:$0xff]  ;;  %v69_v32 = vld [vmem:[%s5444_s0 + $0xe8] sm:$0xff] }
 0x6ab   :  { %1613 = vrot.lane.b32.xlu2 %v3693_v54, %s3904_s13 }
 0x6ac   :  { %3694 = vtanh.f32 %v1586_v57  ;;  %v1598_v57 = vsub.f32 1.0, %v4735_v30 }
 0x6b1   :  { %3327 = vmatmul.msk.f32.gmra.mxu0 %vm110_vm0, %v67_v33  ;;  %3375 = vmatmul.msk.f32.gmra.mxu1 %vm110_vm0, %v67_v33 }
 0x6b2   :  { %v3695_v10 = vpop.eup %3694 }
 0x6b3   :  { %1649 = vrot.lane.b32.xlu2 %v4742_v48, %s3904_s13  ;;  %1615 = vrot.lane.b32.xlu0 %v3695_v10, %s3904_s13 }
 0x6b6   :  { %v1610_v59 = vpop.permute.xlu0 %1609 }
 0x6b7   :  { %v1625_v46 = vmul.f32 %v1610_v59, %v1595_v49 }
 0x6b9   :  { %v4750_v34 = vadd.f32 %v1631_v43, %v1625_v46  ;;  %3328 = vmatmul.msk.f32.gmra.mxu0 %vm110_vm0, %v68_v53  ;;  %3376 = vmatmul.msk.f32.gmra.mxu1 %vm110_vm0, %v68_v53 }
 0x6bb   :  { %1651 = vrot.lane.b32.xlu0 %v4750_v34, %s3904_s13 }
 0x6c1   :  { %3329 = vmatmul.msk.f32.gmra.mxu0 %vm110_vm0, %v69_v32  ;;  %3377 = vmatmul.msk.f32.gmra.mxu1 %vm110_vm0, %v69_v32 }
 0x6e8   :  { %v1688_v52 = vpop.f32.mrf.mxu2  ;;  %v1723_v3 = vpop.f32.mrf.mxu3 }
 0x6e9   :  { %v1741_v0 = vadd.f32 %v1688_v52, %v345_v47  ;;  %v1861_v25 = vadd.f32 %v4764_v36, %v1723_v3 }
 0x6eb   :  { %v3468_v63 = vmul.f32 -1.442695, %v1741_v0 }
 0x6ed   :  { %3696 = vpow2.f32 %v3468_v63 }
 0x6f3   :  { %v3697_v55 = vpop.eup %3696 }
 0x6f4   :  { %v1765_v21 = vadd.f32 1.0, %v3697_v55 }
 0x6f6   :  { %3698 = vrcp.f32 %v1765_v21  ;;  %v1782_v61 = vand.u32 2147483648, %v1765_v21  ;;  %v1780_v44 = vand.u32 2147483647, %v1765_v21  ;;  %vm1776_vm8 = vweird.f32 %v1765_v21 }
 0x6f8   :  { %v1783_v19 = vor.u32 1.1754944e-38, %v1782_v61  ;;  %vm1781_vm10 = vcmp.eq.f32.partialorder %v1780_v44, 8.507059e+37 }
 0x6fc   :  { %v3699_v60 = vpop.eup %3698 }
 0x6fd   :  { %v1772_v1 = vmul.f32 %v3699_v60, %v1765_v21  ;;  %vm1777_vm7 = vweird.f32 %v3699_v60 }
 0x6fe   :  { %vm1778_vm9 = vmor %vm1776_vm8, %vm1777_vm7 }
 0x6ff   :  { %v1773_v2 = vsub.f32 1.0, %v1772_v1 }
 0x701   :  { %v1774_v5 = vmul.f32 %v3699_v60, %v1773_v2 }
 0x703   :  { %v1775_v50 = vadd.f32 %v3699_v60, %v1774_v5 }
 0x705   :  { %v1779_v24 = vsel %vm1778_vm9, %v3699_v60, %v1775_v50  ;;  %v1614_v37 = vpop.permute.xlu2 %1613 }
 0x706   :  { %v1784_v39 = vsel %vm1781_vm10, %v1783_v19, %v1779_v24  ;;  %v1627_v40 = vmul.f32 %v1614_v37, %v1597_v20 }
 0x707   :  { %v1867_v12 = vmul.f32 %v1861_v25, %v1784_v39  ;;  %v1885_v30 = vsub.f32 1.0, %v1784_v39  ;;  %v1921_v43 = vmul.f32 %v1784_v39, %v4632_v56 }
 0x708   :  { %v4770_v41 = vadd.f32 %v1633_v11, %v1627_v40 }
 0x709   :  { %v1873_v45 = vadd.f32 %v1867_v12, %v506_v29 }
 0x70a   :  { %1655 = vrot.lane.b32.xlu2 %v4770_v41, %s3904_s13 }
 0x70b   :  { %3700 = vtanh.f32 %v1873_v45 }
 0x70d   :  { %v1650_v13 = vpop.permute.xlu2 %1649 }
 0x70e   :  { %3457 = vmatmul.msk.f32.gmra.mxu2 %vm110_vm0, %v1650_v13  ;;  %3463 = vmatmul.msk.f32.gmra.mxu3 %vm110_vm0, %v1650_v13 }
 0x70f   :  { %v347_v47 = vpop.f32.mrf.mxu0  ;;  %v508_v20 = vpop.f32.mrf.mxu1 }
 0x710   :  { %v348_v0 = vadd.f32 %v347_v47, %v4052_v23  ;;  %v509_v11 = vadd.f32 %v508_v20, %v4057_v42 }
 0x711   :  { %v3701_v14 = vpop.eup %3700 }
 0x712   :  { %1897 = vrot.lane.b32.xlu1 %v3701_v14, %s3904_s13 }
 0x715   :  { %v1612_v26 = vpop.permute.xlu1 %1611 }
 0x716   :  { %v1626_v54 = vmul.f32 %v1612_v26, %v1596_v22 }
 0x718   :  { %v4785_v31 = vadd.f32 %v1632_v27, %v1626_v54 }
 0x71a   :  { %1653 = vrot.lane.b32.xlu1 %v4785_v31, %s3904_s13 }
 0x725   :  { %v1616_v28 = vpop.permute.xlu0 %1615 }
 0x726   :  { %v1628_v4 = vmul.f32 %v1616_v28, %v1598_v57  ;;  %v350_v50 = vpop.f32.mrf.mxu0  ;;  %v511_v53 = vpop.f32.mrf.mxu1 }
 0x727   :  { %v351_v37 = vadd.f32 %v350_v50, %v4052_v23 }
 0x728   :  { %v4792_v10 = vadd.f32 %v1634_v38, %v1628_v4 }
 0x72a   :  { %1657 = vrot.lane.b32.xlu0 %v4792_v10, %s3904_s13 }
 0x72d   :  { %v1652_v49 = vpop.permute.xlu0 %1651 }
 0x72e   :  { %3458 = vmatmul.msk.f32.gmra.mxu2 %vm110_vm0, %v1652_v49  ;;  %3464 = vmatmul.msk.f32.gmra.mxu3 %vm110_vm0, %v1652_v49 }
 0x764   :  { %v1656_v55 = vpop.permute.xlu2 %1655 }
 0x784   :  { %v1898_v59 = vpop.permute.xlu1 %1897 }
 0x785   :  { %v1915_v46 = vmul.f32 %v1898_v59, %v1885_v30 }
 0x787   :  { %v4814_v18 = vadd.f32 %v1921_v43, %v1915_v46  ;;  %v512_v46 = vadd.f32 %v511_v53, %v4057_v42 }
 0x789   :  { %1939 = vrot.lane.b32.xlu1 %v4814_v18, %s3904_s13 }
 0x78c   :  { %v1654_v52 = vpop.permute.xlu1 %1653 }
 0x78d   :  { %3459 = vmatmul.msk.f32.gmra.mxu2 %vm110_vm0, %v1654_v52  ;;  %3465 = vmatmul.msk.f32.gmra.mxu3 %vm110_vm0, %v1654_v52 }
 0x791   :  { %v1691_v63 = vpop.f32.mrf.mxu2  ;;  %v1726_v19 = vpop.f32.mrf.mxu3 }
 0x792   :  { %v1742_v58 = vadd.f32 %v1691_v63, %v348_v0  ;;  %v1862_v39 = vadd.f32 %v4764_v36, %v1726_v19 }
 0x794   :  { %v3469_v21 = vmul.f32 -1.442695, %v1742_v58  ;;  %v70_v58 = vld [vmem:[%s5444_s0 + $0xf0] sm:$0xff] }
 0x795   :  { %3460 = vmatmul.msk.f32.gmra.mxu2 %vm110_vm0, %v1656_v55  ;;  %3466 = vmatmul.msk.f32.gmra.mxu3 %vm110_vm0, %v1656_v55 }
 0x796   :  { %3702 = vpow2.f32 %v3469_v21  ;;  %3330 = vmatmul.msk.f32.gmra.mxu0 %vm110_vm0, %v70_v58  ;;  %3378 = vmatmul.msk.f32.gmra.mxu1 %vm110_vm0, %v70_v58  ;;  %v3894_v21 = vld [vmem:[%s5447_s3 + $0x70] sm:$0xff] }
 0x79c   :  { %v3703_v56 = vpop.eup %3702  ;;  %v1658_v60 = vpop.permute.xlu0 %1657 }
 0x79d   :  { %v1766_v1 = vadd.f32 1.0, %v3703_v56  ;;  %3461 = vmatmul.msk.f32.gmra.mxu2 %vm110_vm0, %v1658_v60  ;;  %3467 = vmatmul.msk.f32.gmra.mxu3 %vm110_vm0, %v1658_v60  ;;  %v3895_v56 = vld [vmem:[%s5447_s3 + $0x78] sm:$0xff]  ;;  %v3896_v60 = vld [vmem:[%s5447_s3 + $0x60] sm:$0xff] }
 0x79f   :  { %3704 = vrcp.f32 %v1766_v1  ;;  %v1797_v44 = vand.u32 2147483648, %v1766_v1  ;;  %v1795_v6 = vand.u32 2147483647, %v1766_v1  ;;  %vm1791_vm12 = vweird.f32 %v1766_v1 }
 0x7a1   :  { %v1798_v25 = vor.u32 1.1754944e-38, %v1797_v44  ;;  %vm1796_vm14 = vcmp.eq.f32.partialorder %v1795_v6, 8.507059e+37  ;;  %v3901_v44 = vld [vmem:[%s5447_s3 + $0x48] sm:$0xff] }
 0x7a5   :  { %v3705_v2 = vpop.eup %3704 }
 0x7a6   :  { %v1787_v61 = vmul.f32 %v3705_v2, %v1766_v1  ;;  %vm1792_vm11 = vweird.f32 %v3705_v2  ;;  %v3897_v1 = vld [vmem:[%s5447_s3 + $0x68] sm:$0xff] }
 0x7a7   :  { %vm1793_vm13 = vmor %vm1791_vm12, %vm1792_vm11 }
 0x7a8   :  { %v1788_v5 = vsub.f32 1.0, %v1787_v61  ;;  %v3899_v61 = vld [vmem:[%s5447_s3 + $0x58] sm:$0xff] }
 0x7aa   :  { %v1789_v3 = vmul.f32 %v3705_v2, %v1788_v5  ;;  %v3900_v5 = vld [vmem:[%s5447_s3 + $0x40] sm:$0xff] }
 0x7ac   :  { %v1790_v24 = vadd.f32 %v3705_v2, %v1789_v3  ;;  %v353_v3 = vpop.f32.mrf.mxu0 }
 0x7ad   :  { %v354_v6 = vadd.f32 %v353_v3, %v4052_v23 }
 0x7ae   :  { %v1794_v29 = vsel %vm1793_vm13, %v3705_v2, %v1790_v24  ;;  %v3898_v2 = vld [vmem:[%s5447_s3 + $0x50] sm:$0xff] }
 0x7af   :  { %v4828_v40 = vsel %vm1796_vm14, %v1798_v25, %v1794_v29 }
 0x7b0   :  { %v1868_v12 = vmul.f32 %v1862_v39, %v4828_v40 }
 0x7b1   :  { %v1694_v45 = vpop.f32.mrf.mxu2  ;;  %v1729_v33 = vpop.f32.mrf.mxu3 }
 0x7b2   :  { %v1874_v13 = vadd.f32 %v1868_v12, %v509_v11  ;;  %v1743_v15 = vadd.f32 %v1694_v45, %v351_v37  ;;  %v1863_v43 = vadd.f32 %v4764_v36, %v1729_v33 }
 0x7b4   :  { %3706 = vtanh.f32 %v1874_v13  ;;  %v3470_v14 = vmul.f32 -1.442695, %v1743_v15  ;;  %v356_v19 = vpop.f32.mrf.mxu0  ;;  %v514_v15 = vpop.f32.mrf.mxu1 }
 0x7b6   :  { %3708 = vpow2.f32 %v3470_v14 }
 0x7ba   :  { %v3707_v22 = vpop.eup %3706 }
 0x7bb   :  { %1899 = vrot.lane.b32.xlu2 %v3707_v22, %s3904_s13 }
 0x7bc   :  { %v3709_v26 = vpop.eup %3708 }
 0x7bd   :  { %v1767_v27 = vadd.f32 1.0, %v3709_v26 }
 0x7bf   :  { %3710 = vrcp.f32 %v1767_v27  ;;  %v1812_v38 = vand.u32 2147483648, %v1767_v27  ;;  %v1810_v49 = vand.u32 2147483647, %v1767_v27  ;;  %vm1806_vm1 = vweird.f32 %v1767_v27 }
 0x7c1   :  { %v1813_v30 = vor.u32 1.1754944e-38, %v1812_v38  ;;  %vm1811_vm3 = vcmp.eq.f32.partialorder %v1810_v49, 8.507059e+37  ;;  %v515_v49 = vadd.f32 %v514_v15, %v4057_v42 }
 0x7c5   :  { %v3711_v54 = vpop.eup %3710 }
 0x7c6   :  { %v1802_v57 = vmul.f32 %v3711_v54, %v1767_v27  ;;  %vm1807_vm15 = vweird.f32 %v3711_v54 }
 0x7c7   :  { %vm1808_vm2 = vmor %vm1806_vm1, %vm1807_vm15 }
 0x7c8   :  { %v1803_v28 = vsub.f32 1.0, %v1802_v57 }
 0x7ca   :  { %v1804_v4 = vmul.f32 %v3711_v54, %v1803_v28 }
 0x7cc   :  { %v1805_v32 = vadd.f32 %v3711_v54, %v1804_v4 }
 0x7ce   :  { %v1809_v59 = vsel %vm1808_vm2, %v3711_v54, %v1805_v32 }
 0x7cf   :  { %v4834_v47 = vsel %vm1811_vm3, %v1813_v30, %v1809_v59 }
 0x7d0   :  { %v1869_v52 = vmul.f32 %v1863_v43, %v4834_v47 }
 0x7d2   :  { %v1875_v0 = vadd.f32 %v1869_v52, %v512_v46 }
 0x7d4   :  { %3712 = vtanh.f32 %v1875_v0  ;;  %v517_v0 = vpop.f32.mrf.mxu1 }
 0x7da   :  { %v3713_v63 = vpop.eup %3712 }
 0x7db   :  { %1901 = vrot.lane.b32.xlu0 %v3713_v63, %s3904_s13 }
 0x7fb   :  { %v1940_v55 = vpop.permute.xlu1 %1939 }
 0x7fc   :  { %3474 = vmatmul.msk.f32.vlgmr.msra.gmra.mxu2 %vm110_vm0, %v1940_v55  ;;  %3480 = vmatmul.msk.f32.vlgmr.msra.gmra.mxu3 %vm110_vm0, %v1940_v55 }
 0x7fd   :  { %2555 = vmatpush.msra.mxu2 %v3894_v21  ;;  %2590 = vmatpush.msra.mxu3 %v3895_v56 }
 0x7ff   :  { %2556 = vmatpush.msra.mxu2 %v3896_v60  ;;  %2591 = vmatpush.msra.mxu3 %v3897_v1  ;;  %v518_v1 = vadd.f32 %v517_v0, %v4057_v42 }
 0x801   :  { %2557 = vmatpush.msra.mxu2 %v3898_v2  ;;  %2592 = vmatpush.msra.mxu3 %v3899_v61 }
 0x803   :  { %2558 = vmatpush.msra.mxu2 %v3900_v5  ;;  %2593 = vmatpush.msra.mxu3 %v3901_v44 }
 0x805   :  { %2559 = vmatpush.msra.mxu2 %v4674_v16  ;;  %2594 = vmatpush.msra.mxu3 %v4680_v51  ;;  %v357_v51 = vadd.f32 %v356_v19, %v4052_v23 }
 0x807   :  { %2560 = vmatpush.msra.mxu2 %v4686_v7  ;;  %2595 = vmatpush.msra.mxu3 %v4692_v8  ;;  %v359_v8 = vpop.f32.mrf.mxu0 }
 0x809   :  { %2561 = vmatpush.msra.mxu2 %v4698_v35  ;;  %2596 = vmatpush.msra.mxu3 %v4704_v62  ;;  %v360_v62 = vadd.f32 %v359_v8, %v4052_v23 }
 0x80b   :  { %2562 = vmatpush.msra.mxu2 %v4710_v9  ;;  %2597 = vmatpush.msra.mxu3 %v4716_v17 }
 0x810   :  { %v1697_v50 = vpop.f32.mrf.mxu2  ;;  %v1732_v13 = vpop.f32.mrf.mxu3 }
 0x811   :  { %v1744_v16 = vadd.f32 %v1697_v50, %v354_v6  ;;  %v1864_v53 = vadd.f32 %v4764_v36, %v1732_v13  ;;  %v1922_v13 = vmul.f32 %v4828_v40, %v4742_v48 }
 0x813   :  { %v3471_v20 = vmul.f32 -1.442695, %v1744_v16  ;;  %v362_v48 = vpop.f32.mrf.mxu0 }
 0x815   :  { %3714 = vpow2.f32 %v3471_v20 }
 0x818   :  { %v1700_v7 = vpop.f32.mrf.mxu2  ;;  %v1735_v46 = vpop.f32.mrf.mxu3 }
 0x819   :  { %v1745_v24 = vadd.f32 %v1700_v7, %v357_v51  ;;  %v1865_v61 = vadd.f32 %v4764_v36, %v1735_v46 }
 0x81b   :  { %v3715_v25 = vpop.eup %3714  ;;  %v3472_v35 = vmul.f32 -1.442695, %v1745_v24  ;;  %v520_v24 = vpop.f32.mrf.mxu1 }
 0x81c   :  { %v1768_v37 = vadd.f32 1.0, %v3715_v25 }
 0x81d   :  { %3716 = vpow2.f32 %v3472_v35 }
 0x81e   :  { %3718 = vrcp.f32 %v1768_v37  ;;  %v1827_v22 = vand.u32 2147483648, %v1768_v37  ;;  %v1825_v27 = vand.u32 2147483647, %v1768_v37  ;;  %vm1821_vm5 = vweird.f32 %v1768_v37 }
 0x820   :  { %v1703_v9 = vpop.f32.mrf.mxu2  ;;  %v1828_v38 = vor.u32 1.1754944e-38, %v1827_v22  ;;  %vm1826_vm7 = vcmp.eq.f32.partialorder %v1825_v27, 8.507059e+37  ;;  %v1738_v7 = vpop.f32.mrf.mxu3  ;;  %v1887_v22 = vsub.f32 1.0, %v4834_v47  ;;  %v1923_v27 = vmul.f32 %v4834_v47, %v4750_v34 }
 0x821   :  { %v1746_v17 = vadd.f32 %v1703_v9, %v360_v62  ;;  %v521_v62 = vadd.f32 %v520_v24, %v4057_v42 }
 0x823   :  { %v3717_v29 = vpop.eup %3716  ;;  %v3473_v39 = vmul.f32 -1.442695, %v1746_v17  ;;  %v523_v0 = vpop.f32.mrf.mxu1 }
 0x824   :  { %v3719_v11 = vpop.eup %3718  ;;  %v1769_v12 = vadd.f32 1.0, %v3717_v29 }
 0x825   :  { %v1817_v45 = vmul.f32 %v3719_v11, %v1768_v37  ;;  %3720 = vpow2.f32 %v3473_v39  ;;  %vm1822_vm4 = vweird.f32 %v3719_v11  ;;  %v1866_v37 = vadd.f32 %v4764_v36, %v1738_v7  ;;  %v1900_v39 = vpop.permute.xlu2 %1899 }
 0x826   :  { %3722 = vrcp.f32 %v1769_v12  ;;  %vm1823_vm6 = vmor %vm1821_vm5, %vm1822_vm4  ;;  %v1842_v52 = vand.u32 2147483648, %v1769_v12  ;;  %v1840_v58 = vand.u32 2147483647, %v1769_v12  ;;  %vm1836_vm9 = vweird.f32 %v1769_v12 }
 0x827   :  { %v1818_v14 = vsub.f32 1.0, %v1817_v45 }
 0x828   :  { %v1843_v60 = vor.u32 1.1754944e-38, %v1842_v52  ;;  %vm1841_vm11 = vcmp.eq.f32.partialorder %v1840_v58, 8.507059e+37 }
 0x829   :  { %v1819_v26 = vmul.f32 %v3719_v11, %v1818_v14 }
 0x82b   :  { %v3721_v54 = vpop.eup %3720  ;;  %v1820_v57 = vadd.f32 %v3719_v11, %v1819_v26 }
 0x82c   :  { %v3723_v28 = vpop.eup %3722  ;;  %v1770_v4 = vadd.f32 1.0, %v3721_v54 }
 0x82d   :  { %v1824_v33 = vsel %vm1823_vm6, %v3719_v11, %v1820_v57  ;;  %v1832_v32 = vmul.f32 %v3723_v28, %v1769_v12  ;;  %vm1837_vm8 = vweird.f32 %v3723_v28  ;;  %v1886_v12 = vsub.f32 1.0, %v4828_v40 }
 0x82e   :  { %v4882_v30 = vsel %vm1826_vm7, %v1828_v38, %v1824_v33  ;;  %3724 = vrcp.f32 %v1770_v4  ;;  %vm1838_vm10 = vmor %vm1836_vm9, %vm1837_vm8  ;;  %v1857_v50 = vand.u32 2147483648, %v1770_v4  ;;  %v1855_v20 = vand.u32 2147483647, %v1770_v4 }
 0x82f   :  { %v1870_v59 = vmul.f32 %v1864_v53, %v4882_v30  ;;  %v1833_v43 = vsub.f32 1.0, %v1832_v32  ;;  %vm1851_vm13 = vweird.f32 %v1770_v4  ;;  %v1916_v45 = vmul.f32 %v1900_v39, %v1886_v12 }
 0x830   :  { %v1858_v25 = vor.u32 1.1754944e-38, %v1857_v50  ;;  %vm1856_vm15 = vcmp.eq.f32.partialorder %v1855_v20, 8.507059e+37  ;;  %v363_v40 = vadd.f32 %v362_v48, %v4052_v23 }
 0x831   :  { %v1834_v63 = vmul.f32 %v3723_v28, %v1833_v43  ;;  %v1876_v55 = vadd.f32 %v1870_v59, %v515_v49  ;;  %v4900_v15 = vadd.f32 %v1922_v13, %v1916_v45  ;;  %v71_v49 = vld [vmem:[%s5444_s0 + $0xf8] sm:$0xff] }
 0x832   :  { %3331 = vmatmul.msk.f32.gmra.mxu0 %vm110_vm0, %v71_v49  ;;  %3379 = vmatmul.msk.f32.gmra.mxu1 %vm110_vm0, %v71_v49 }
 0x833   :  { %v1835_v21 = vadd.f32 %v3723_v28, %v1834_v63  ;;  %3726 = vtanh.f32 %v1876_v55 }
 0x834   :  { %v3725_v56 = vpop.eup %3724 }
 0x835   :  { %v1839_v2 = vsel %vm1838_vm10, %v3723_v28, %v1835_v21  ;;  %v1847_v5 = vmul.f32 %v3725_v56, %v1770_v4  ;;  %vm1852_vm12 = vweird.f32 %v3725_v56 }
 0x836   :  { %v4887_v44 = vsel %vm1841_vm11, %v1843_v60, %v1839_v2  ;;  %vm1853_vm14 = vmor %vm1851_vm13, %vm1852_vm12 }
 0x837   :  { %v1871_v3 = vmul.f32 %v1865_v61, %v4887_v44  ;;  %v1848_v6 = vsub.f32 1.0, %v1847_v5  ;;  %v1889_v55 = vsub.f32 1.0, %v4887_v44  ;;  %v1925_v61 = vmul.f32 %v4887_v44, %v4770_v41 }
 0x838   :  { %v1888_v44 = vsub.f32 1.0, %v4882_v30 }
 0x839   :  { %v3727_v19 = vpop.eup %3726  ;;  %v1849_v16 = vmul.f32 %v3725_v56, %v1848_v6  ;;  %v1877_v51 = vadd.f32 %v1871_v3, %v518_v1  ;;  %v524_v1 = vadd.f32 %v523_v0, %v4057_v42 }
 0x83a   :  { %1903 = vrot.lane.b32.xlu1 %v3727_v19, %s3904_s13 }
 0x83b   :  { %v1850_v8 = vadd.f32 %v3725_v56, %v1849_v16  ;;  %3728 = vtanh.f32 %v1877_v51  ;;  %v72_v16 = vld [vmem:[%s5444_s0 + $0x100] sm:$0xff]  ;;  %v1924_v51 = vmul.f32 %v4882_v30, %v4785_v31  ;;  %v73_v31 = vld [vmem:[%s5444_s0 + $0x108] sm:$0xff]  ;;  %v75_v30 = vld [vmem:[%s5444_s0 + $0x118] sm:$0xff] }
 0x83c   :  { %3332 = vmatmul.msk.f32.gmra.mxu0 %vm110_vm0, %v72_v16  ;;  %3380 = vmatmul.msk.f32.gmra.mxu1 %vm110_vm0, %v72_v16 }
 0x83d   :  { %v1854_v35 = vsel %vm1853_vm14, %v3725_v56, %v1850_v8 }
 0x83e   :  { %v4893_v9 = vsel %vm1856_vm15, %v1858_v25, %v1854_v35 }
 0x83f   :  { %v1872_v17 = vmul.f32 %v1866_v37, %v4893_v9  ;;  %v1890_v8 = vsub.f32 1.0, %v4893_v9  ;;  %v1926_v35 = vmul.f32 %v4893_v9, %v4792_v10  ;;  %v74_v10 = vld [vmem:[%s5444_s0 + $0x110] sm:$0xff] }
 0x841   :  { %v3729_v29 = vpop.eup %3728  ;;  %v1878_v11 = vadd.f32 %v1872_v17, %v521_v62 }
 0x842   :  { %1905 = vrot.lane.b32.xlu2 %v3729_v29, %s3904_s13 }
 0x843   :  { %3730 = vtanh.f32 %v1878_v11 }
 0x844   :  { %3333 = vmatmul.msk.f32.gmra.mxu0 %vm110_vm0, %v73_v31  ;;  %3381 = vmatmul.msk.f32.gmra.mxu1 %vm110_vm0, %v73_v31 }
 0x849   :  { %v3731_v14 = vpop.eup %3730 }
 0x84a   :  { %1941 = vrot.lane.b32.xlu2 %v4900_v15, %s3904_s13  ;;  %1907 = vrot.lane.b32.xlu0 %v3731_v14, %s3904_s13 }
 0x84c   :  { %3334 = vmatmul.msk.f32.gmra.mxu0 %vm110_vm0, %v74_v10  ;;  %3382 = vmatmul.msk.f32.gmra.mxu1 %vm110_vm0, %v74_v10 }
 0x84d   :  { %v1902_v26 = vpop.permute.xlu0 %1901 }
 0x84e   :  { %v1917_v54 = vmul.f32 %v1902_v26, %v1887_v22 }
 0x850   :  { %v4908_v57 = vadd.f32 %v1923_v27, %v1917_v54 }
 0x852   :  { %1943 = vrot.lane.b32.xlu0 %v4908_v57, %s3904_s13 }
 0x854   :  { %3335 = vmatmul.msk.f32.gmra.mxu0 %vm110_vm0, %v75_v30  ;;  %3383 = vmatmul.msk.f32.gmra.mxu1 %vm110_vm0, %v75_v30 }
 0x87f   :  { %v1980_v28 = vpop.f32.mrf.mxu2  ;;  %v2015_v52 = vpop.f32.mrf.mxu3 }
 0x880   :  { %v2033_v38 = vadd.f32 %v1980_v28, %v363_v40  ;;  %v2153_v56 = vadd.f32 %v4764_v36, %v2015_v52 }
 0x882   :  { %v3486_v4 = vmul.f32 -1.442695, %v2033_v38 }
 0x884   :  { %3732 = vpow2.f32 %v3486_v4 }
 0x88a   :  { %v3733_v34 = vpop.eup %3732 }
 0x88b   :  { %v2057_v47 = vadd.f32 1.0, %v3733_v34 }
 0x88d   :  { %3734 = vrcp.f32 %v2057_v47  ;;  %v2074_v59 = vand.u32 2147483648, %v2057_v47  ;;  %v2072_v46 = vand.u32 2147483647, %v2057_v47  ;;  %vm2068_vm2 = vweird.f32 %v2057_v47 }
 0x88f   :  { %v2075_v58 = vor.u32 1.1754944e-38, %v2074_v59  ;;  %vm2073_vm4 = vcmp.eq.f32.partialorder %v2072_v46, 8.507059e+37 }
 0x893   :  { %v3735_v33 = vpop.eup %3734 }
 0x894   :  { %v2064_v53 = vmul.f32 %v3735_v33, %v2057_v47  ;;  %vm2069_vm1 = vweird.f32 %v3735_v33 }
 0x895   :  { %vm2070_vm3 = vmor %vm2068_vm2, %vm2069_vm1 }
 0x896   :  { %v2065_v32 = vsub.f32 1.0, %v2064_v53 }
 0x898   :  { %v2066_v43 = vmul.f32 %v3735_v33, %v2065_v32 }
 0x89a   :  { %v2067_v63 = vadd.f32 %v3735_v33, %v2066_v43 }
 0x89c   :  { %v2071_v21 = vsel %vm2070_vm3, %v3735_v33, %v2067_v63  ;;  %v1906_v60 = vpop.permute.xlu2 %1905 }
 0x89d   :  { %v2076_v2 = vsel %vm2073_vm4, %v2075_v58, %v2071_v21  ;;  %v1919_v5 = vmul.f32 %v1906_v60, %v1889_v55 }
 0x89e   :  { %v2159_v3 = vmul.f32 %v2153_v56, %v2076_v2  ;;  %v2177_v9 = vsub.f32 1.0, %v2076_v2  ;;  %v2213_v39 = vmul.f32 %v2076_v2, %v4814_v18 }
 0x89f   :  { %v4923_v6 = vadd.f32 %v1925_v61, %v1919_v5 }
 0x8a0   :  { %v2165_v50 = vadd.f32 %v2159_v3, %v524_v1 }
 0x8a1   :  { %1947 = vrot.lane.b32.xlu2 %v4923_v6, %s3904_s13 }
 0x8a2   :  { %3736 = vtanh.f32 %v2165_v50 }
 0x8a4   :  { %v1942_v19 = vpop.permute.xlu2 %1941 }
 0x8a5   :  { %3475 = vmatmul.msk.f32.gmra.mxu2 %vm110_vm0, %v1942_v19  ;;  %3481 = vmatmul.msk.f32.gmra.mxu3 %vm110_vm0, %v1942_v19 }
 0x8a8   :  { %v3737_v41 = vpop.eup %3736 }
 0x8a9   :  { %2189 = vrot.lane.b32.xlu1 %v3737_v41, %s3904_s13 }
 0x8ac   :  { %v1904_v20 = vpop.permute.xlu1 %1903 }
 0x8ad   :  { %v1918_v7 = vmul.f32 %v1904_v20, %v1888_v44 }
 0x8af   :  { %v4938_v24 = vadd.f32 %v1924_v51, %v1918_v7  ;;  %v365_v45 = vpop.f32.mrf.mxu0  ;;  %v526_v32 = vpop.f32.mrf.mxu1 }
 0x8b0   :  { %v366_v14 = vadd.f32 %v365_v45, %v4052_v23  ;;  %v527_v63 = vadd.f32 %v526_v32, %v4057_v42 }
 0x8b1   :  { %1945 = vrot.lane.b32.xlu1 %v4938_v24, %s3904_s13 }
 0x8b9   :  { %v368_v33 = vpop.f32.mrf.mxu0  ;;  %v529_v51 = vpop.f32.mrf.mxu1 }
 0x8ba   :  { %v369_v46 = vadd.f32 %v368_v33, %v4052_v23 }
 0x8bc   :  { %v1908_v25 = vpop.permute.xlu0 %1907 }
 0x8bd   :  { %v1920_v37 = vmul.f32 %v1908_v25, %v1890_v8 }
 0x8bf   :  { %v4945_v62 = vadd.f32 %v1926_v35, %v1920_v37  ;;  %v530_v37 = vadd.f32 %v529_v51, %v4057_v42 }
 0x8c1   :  { %1949 = vrot.lane.b32.xlu0 %v4945_v62, %s3904_s13 }
 0x8c4   :  { %v1944_v17 = vpop.permute.xlu0 %1943 }
 0x8c5   :  { %3476 = vmatmul.msk.f32.gmra.mxu2 %vm110_vm0, %v1944_v17  ;;  %3482 = vmatmul.msk.f32.gmra.mxu3 %vm110_vm0, %v1944_v17 }
 0x8fb   :  { %v1948_v27 = vpop.permute.xlu2 %1947 }
 0x91b   :  { %v2190_v29 = vpop.permute.xlu1 %2189 }
 0x91c   :  { %v2207_v11 = vmul.f32 %v2190_v29, %v2177_v9  ;;  %v76_v9 = vld [vmem:[%s5444_s0 + $0x120] sm:$0xff] }
 0x91d   :  { %3336 = vmatmul.msk.f32.gmra.mxu0 %vm110_vm0, %v76_v9  ;;  %3384 = vmatmul.msk.f32.gmra.mxu1 %vm110_vm0, %v76_v9 }
 0x91e   :  { %v4967_v12 = vadd.f32 %v2213_v39, %v2207_v11  ;;  %v371_v39 = vpop.f32.mrf.mxu0 }
 0x91f   :  { %v372_v11 = vadd.f32 %v371_v39, %v4052_v23 }
 0x920   :  { %2231 = vrot.lane.b32.xlu1 %v4967_v12, %s3904_s13 }
 0x923   :  { %v1946_v13 = vpop.permute.xlu1 %1945 }
 0x924   :  { %3477 = vmatmul.msk.f32.gmra.mxu2 %vm110_vm0, %v1946_v13  ;;  %3483 = vmatmul.msk.f32.gmra.mxu3 %vm110_vm0, %v1946_v13 }
 0x926   :  { %v374_v13 = vpop.f32.mrf.mxu0 }
 0x928   :  { %v1983_v22 = vpop.f32.mrf.mxu2  ;;  %v2018_v53 = vpop.f32.mrf.mxu3 }
 0x929   :  { %v2034_v26 = vadd.f32 %v1983_v22, %v366_v14  ;;  %v2154_v0 = vadd.f32 %v4764_v36, %v2018_v53 }
 0x92b   :  { %v3487_v54 = vmul.f32 -1.442695, %v2034_v26  ;;  %v375_v26 = vadd.f32 %v374_v13, %v4052_v23 }
 0x92c   :  { %3478 = vmatmul.msk.f32.gmra.mxu2 %vm110_vm0, %v1948_v27  ;;  %3484 = vmatmul.msk.f32.gmra.mxu3 %vm110_vm0, %v1948_v27 }
 0x92d   :  { %3738 = vpow2.f32 %v3487_v54 }
 0x933   :  { %v3739_v18 = vpop.eup %3738  ;;  %v1950_v48 = vpop.permute.xlu0 %1949 }
 0x934   :  { %v2058_v40 = vadd.f32 1.0, %v3739_v18  ;;  %3479 = vmatmul.msk.f32.gmra.mxu2 %vm110_vm0, %v1950_v48  ;;  %3485 = vmatmul.msk.f32.gmra.mxu3 %vm110_vm0, %v1950_v48  ;;  %v377_v18 = vpop.f32.mrf.mxu0 }
 0x936   :  { %3740 = vrcp.f32 %v2058_v40  ;;  %v2089_v49 = vand.u32 2147483648, %v2058_v40  ;;  %v2087_v47 = vand.u32 2147483647, %v2058_v40  ;;  %vm2083_vm6 = vweird.f32 %v2058_v40 }
 0x938   :  { %v2090_v43 = vor.u32 1.1754944e-38, %v2089_v49  ;;  %vm2088_vm8 = vcmp.eq.f32.partialorder %v2087_v47, 8.507059e+37 }
 0x93c   :  { %v3741_v28 = vpop.eup %3740 }
 0x93d   :  { %v2079_v38 = vmul.f32 %v3741_v28, %v2058_v40  ;;  %vm2084_vm5 = vweird.f32 %v3741_v28 }
 0x93e   :  { %vm2085_vm7 = vmor %vm2083_vm6, %vm2084_vm5 }
 0x93f   :  { %v2080_v4 = vsub.f32 1.0, %v2079_v38  ;;  %v378_v38 = vadd.f32 %v377_v18, %v4052_v23 }
 0x941   :  { %v2081_v34 = vmul.f32 %v3741_v28, %v2080_v4 }
 0x943   :  { %v2082_v59 = vadd.f32 %v3741_v28, %v2081_v34 }
 0x945   :  { %v2086_v52 = vsel %vm2085_vm7, %v3741_v28, %v2082_v59 }
 0x946   :  { %v4981_v58 = vsel %vm2088_vm8, %v2090_v43, %v2086_v52  ;;  %v532_v43 = vpop.f32.mrf.mxu1 }
 0x947   :  { %v2160_v55 = vmul.f32 %v2154_v0, %v4981_v58 }
 0x948   :  { %v1986_v21 = vpop.f32.mrf.mxu2  ;;  %v2021_v20 = vpop.f32.mrf.mxu3 }
 0x949   :  { %v2166_v56 = vadd.f32 %v2160_v55, %v527_v63  ;;  %v2035_v60 = vadd.f32 %v1986_v21, %v369_v46  ;;  %v2155_v35 = vadd.f32 %v4764_v36, %v2021_v20 }
 0x94b   :  { %3742 = vtanh.f32 %v2166_v56  ;;  %v3488_v1 = vmul.f32 -1.442695, %v2035_v60 }
 0x94d   :  { %3744 = vpow2.f32 %v3488_v1 }
 0x94e   :  { %v535_v20 = vpop.f32.mrf.mxu1 }
 0x951   :  { %v3743_v2 = vpop.eup %3742 }
 0x952   :  { %2191 = vrot.lane.b32.xlu2 %v3743_v2, %s3904_s13  ;;  %v533_v2 = vadd.f32 %v532_v43, %v4057_v42 }
 0x953   :  { %v3745_v61 = vpop.eup %3744 }
 0x954   :  { %v2059_v5 = vadd.f32 1.0, %v3745_v61 }
 0x956   :  { %3746 = vrcp.f32 %v2059_v5  ;;  %v2104_v16 = vand.u32 2147483648, %v2059_v5  ;;  %v2102_v44 = vand.u32 2147483647, %v2059_v5  ;;  %vm2098_vm10 = vweird.f32 %v2059_v5 }
 0x958   :  { %v2105_v8 = vor.u32 1.1754944e-38, %v2104_v16  ;;  %vm2103_vm12 = vcmp.eq.f32.partialorder %v2102_v44, 8.507059e+37 }
 0x95c   :  { %v3747_v3 = vpop.eup %3746 }
 0x95d   :  { %v2094_v50 = vmul.f32 %v3747_v3, %v2059_v5  ;;  %vm2099_vm9 = vweird.f32 %v3747_v3 }
 0x95e   :  { %vm2100_vm11 = vmor %vm2098_vm10, %vm2099_vm9 }
 0x95f   :  { %v2095_v19 = vsub.f32 1.0, %v2094_v50 }
 0x961   :  { %v2096_v41 = vmul.f32 %v3747_v3, %v2095_v19 }
 0x963   :  { %v2097_v7 = vadd.f32 %v3747_v3, %v2096_v41 }
 0x965   :  { %v2101_v25 = vsel %vm2100_vm11, %v3747_v3, %v2097_v7 }
 0x966   :  { %v4987_v17 = vsel %vm2103_vm12, %v2105_v8, %v2101_v25 }
 0x967   :  { %v2161_v31 = vmul.f32 %v2155_v35, %v4987_v17 }
 0x969   :  { %v2167_v10 = vadd.f32 %v2161_v31, %v530_v37  ;;  %v536_v31 = vadd.f32 %v535_v20, %v4057_v42 }
 0x96b   :  { %3748 = vtanh.f32 %v2167_v10 }
 0x971   :  { %v3749_v30 = vpop.eup %3748 }
 0x972   :  { %2193 = vrot.lane.b32.xlu0 %v3749_v30, %s3904_s13 }
 0x992   :  { %v2232_v29 = vpop.permute.xlu1 %2231 }
 0x993   :  { %3492 = vmatmul.msk.f32.vlgmr.msrb.gmra.mxu2 %vm110_vm0, %v2232_v29  ;;  %3498 = vmatmul.msk.f32.vlgmr.msrb.gmra.mxu3 %vm110_vm0, %v2232_v29 }
 0x9a7   :  { %v1989_v45 = vpop.f32.mrf.mxu2  ;;  %v2024_v59 = vpop.f32.mrf.mxu3 }
 0x9a8   :  { %v2036_v14 = vadd.f32 %v1989_v45, %v372_v11  ;;  %v2156_v5 = vadd.f32 %v4764_v36, %v2024_v59  ;;  %v2214_v59 = vmul.f32 %v4981_v58, %v4900_v15  ;;  %v380_v15 = vpop.f32.mrf.mxu0 }
 0x9aa   :  { %v3489_v22 = vmul.f32 -1.442695, %v2036_v14 }
 0x9ac   :  { %3750 = vpow2.f32 %v3489_v22 }
 0x9af   :  { %v1992_v27 = vpop.f32.mrf.mxu2  ;;  %v2027_v41 = vpop.f32.mrf.mxu3 }
 0x9b0   :  { %v2037_v54 = vadd.f32 %v1992_v27, %v375_v26  ;;  %v2157_v30 = vadd.f32 %v4764_v36, %v2027_v41 }
 0x9b2   :  { %v3751_v48 = vpop.eup %3750  ;;  %v3490_v40 = vmul.f32 -1.442695, %v2037_v54  ;;  %v538_v54 = vpop.f32.mrf.mxu1 }
 0x9b3   :  { %v2060_v28 = vadd.f32 1.0, %v3751_v48 }
 0x9b4   :  { %3752 = vpow2.f32 %v3490_v40 }
 0x9b5   :  { %3754 = vrcp.f32 %v2060_v28  ;;  %v2119_v52 = vand.u32 2147483648, %v2060_v28  ;;  %v2117_v63 = vand.u32 2147483647, %v2060_v28  ;;  %vm2113_vm14 = vweird.f32 %v2060_v28 }
 0x9b7   :  { %v1995_v4 = vpop.f32.mrf.mxu2  ;;  %v2120_v60 = vor.u32 1.1754944e-38, %v2119_v52  ;;  %vm2118_vm1 = vcmp.eq.f32.partialorder %v2117_v63, 8.507059e+37  ;;  %v2030_v27 = vpop.f32.mrf.mxu3 }
 0x9b8   :  { %v2038_v49 = vadd.f32 %v1995_v4, %v378_v38  ;;  %v539_v38 = vadd.f32 %v538_v54, %v4057_v42 }
 0x9ba   :  { %v3753_v34 = vpop.eup %3752  ;;  %v3491_v47 = vmul.f32 -1.442695, %v2038_v49 }
 0x9bb   :  { %v3755_v33 = vpop.eup %3754  ;;  %v2061_v53 = vadd.f32 1.0, %v3753_v34 }
 0x9bc   :  { %v2109_v32 = vmul.f32 %v3755_v33, %v2060_v28  ;;  %3756 = vpow2.f32 %v3491_v47  ;;  %vm2114_vm13 = vweird.f32 %v3755_v33  ;;  %v2158_v28 = vadd.f32 %v4764_v36, %v2030_v27  ;;  %v2192_v47 = vpop.permute.xlu2 %2191 }
 0x9bd   :  { %3758 = vrcp.f32 %v2061_v53  ;;  %vm2115_vm15 = vmor %vm2113_vm14, %vm2114_vm13  ;;  %v2134_v44 = vand.u32 2147483648, %v2061_v53  ;;  %v2132_v7 = vand.u32 2147483647, %v2061_v53  ;;  %vm2128_vm3 = vweird.f32 %v2061_v53 }
 0x9be   :  { %v2110_v46 = vsub.f32 1.0, %v2109_v32 }
 0x9bf   :  { %v2135_v37 = vor.u32 1.1754944e-38, %v2134_v44  ;;  %vm2133_vm5 = vcmp.eq.f32.partialorder %v2132_v7, 8.507059e+37  ;;  %v541_v44 = vpop.f32.mrf.mxu1 }
 0x9c0   :  { %v2111_v0 = vmul.f32 %v3755_v33, %v2110_v46  ;;  %v2179_v46 = vsub.f32 1.0, %v4987_v17 }
 0x9c2   :  { %v3757_v55 = vpop.eup %3756  ;;  %v2112_v21 = vadd.f32 %v3755_v33, %v2111_v0  ;;  %v2215_v0 = vmul.f32 %v4987_v17, %v4908_v57 }
 0x9c3   :  { %v3759_v56 = vpop.eup %3758  ;;  %v2062_v1 = vadd.f32 1.0, %v3757_v55 }
 0x9c4   :  { %v2116_v61 = vsel %vm2115_vm15, %v3755_v33, %v2112_v21  ;;  %v2124_v3 = vmul.f32 %v3759_v56, %v2061_v53  ;;  %vm2129_vm2 = vweird.f32 %v3759_v56  ;;  %v2178_v53 = vsub.f32 1.0, %v4981_v58 }
 0x9c5   :  { %v5003_v50 = vsel %vm2118_vm1, %v2120_v60, %v2116_v61  ;;  %3760 = vrcp.f32 %v2062_v1  ;;  %vm2130_vm4 = vmor %vm2128_vm3, %vm2129_vm2  ;;  %v2149_v45 = vand.u32 2147483648, %v2062_v1  ;;  %v2147_v22 = vand.u32 2147483647, %v2062_v1 }
 0x9c6   :  { %v2162_v19 = vmul.f32 %v2156_v5, %v5003_v50  ;;  %v2125_v16 = vsub.f32 1.0, %v2124_v3  ;;  %vm2143_vm7 = vweird.f32 %v2062_v1  ;;  %v2208_v32 = vmul.f32 %v2192_v47, %v2178_v53 }
 0x9c7   :  { %v2150_v48 = vor.u32 1.1754944e-38, %v2149_v45  ;;  %vm2148_vm9 = vcmp.eq.f32.partialorder %v2147_v22, 8.507059e+37  ;;  %v381_v58 = vadd.f32 %v380_v15, %v4052_v23 }
 0x9c8   :  { %v2126_v51 = vmul.f32 %v3759_v56, %v2125_v16  ;;  %v2168_v8 = vadd.f32 %v2162_v19, %v533_v2  ;;  %v5021_v43 = vadd.f32 %v2214_v59, %v2208_v32 }
 0x9ca   :  { %v2127_v25 = vadd.f32 %v3759_v56, %v2126_v51  ;;  %3762 = vtanh.f32 %v2168_v8 }
 0x9cb   :  { %v3761_v35 = vpop.eup %3760 }
 0x9cc   :  { %v2131_v10 = vsel %vm2130_vm4, %v3759_v56, %v2127_v25  ;;  %v2139_v9 = vmul.f32 %v3761_v35, %v2062_v1  ;;  %vm2144_vm6 = vweird.f32 %v3761_v35  ;;  %v77_v1 = vld [vmem:[%s5444_s0 + $0x128] sm:$0xff]  ;;  %v5043_v25 = vld [vmem:[%s5445_s4] ss:$0 sm:$0xff] }
 0x9cd   :  { %v5008_v29 = vsel %vm2133_vm5, %v2135_v37, %v2131_v10  ;;  %vm2145_vm8 = vmor %vm2143_vm7, %vm2144_vm6  ;;  %3337 = vmatmul.msk.f32.gmra.mxu0 %vm110_vm0, %v77_v1  ;;  %3385 = vmatmul.msk.f32.gmra.mxu1 %vm110_vm0, %v77_v1 }
 0x9ce   :  { %v2163_v39 = vmul.f32 %v2157_v30, %v5008_v29  ;;  %v2140_v11 = vsub.f32 1.0, %v2139_v9  ;;  %v2181_v7 = vsub.f32 1.0, %v5008_v29  ;;  %v2217_v30 = vmul.f32 %v5008_v29, %v4923_v6 }
 0x9cf   :  { %v2180_v29 = vsub.f32 1.0, %v5003_v50 }
 0x9d0   :  { %v3763_v13 = vpop.eup %3762  ;;  %v2141_v14 = vmul.f32 %v3761_v35, %v2140_v11  ;;  %v2169_v26 = vadd.f32 %v2163_v39, %v536_v31  ;;  %v542_v31 = vadd.f32 %v541_v44, %v4057_v42 }
 0x9d1   :  { %2195 = vrot.lane.b32.xlu1 %v3763_v13, %s3904_s13 }
 0x9d2   :  { %v2142_v18 = vadd.f32 %v3761_v35, %v2141_v14  ;;  %3764 = vtanh.f32 %v2169_v26  ;;  %v78_v14 = vld [vmem:[%s5444_s0 + $0x130] sm:$0xff]  ;;  %v2216_v26 = vmul.f32 %v5003_v50, %v4938_v24  ;;  %v79_v24 = vld [vmem:[%s5444_s0 + $0x138] sm:$0xff]  ;;  %v81_v50 = vld [vmem:[%s5444_s0 + $0x148] sm:$0xff] }
 0x9d4   :  { %v2146_v40 = vsel %vm2145_vm8, %v3761_v35, %v2142_v18 }
 0x9d5   :  { %v5014_v4 = vsel %vm2148_vm9, %v2150_v48, %v2146_v40  ;;  %3338 = vmatmul.msk.f32.gmra.mxu0 %vm110_vm0, %v78_v14  ;;  %3386 = vmatmul.msk.f32.gmra.mxu1 %vm110_vm0, %v78_v14 }
 0x9d6   :  { %v2164_v49 = vmul.f32 %v2158_v28, %v5014_v4  ;;  %v2182_v18 = vsub.f32 1.0, %v5014_v4  ;;  %v2218_v40 = vmul.f32 %v5014_v4, %v4945_v62  ;;  %v80_v62 = vld [vmem:[%s5444_s0 + $0x140] sm:$0xff] }
 0x9d8   :  { %v3765_v34 = vpop.eup %3764  ;;  %v2170_v33 = vadd.f32 %v2164_v49, %v539_v38 }
 0x9d9   :  { %2197 = vrot.lane.b32.xlu2 %v3765_v34, %s3904_s13 }
 0x9da   :  { %3766 = vtanh.f32 %v2170_v33 }
 0x9dd   :  { %3339 = vmatmul.msk.f32.gmra.mxu0 %vm110_vm0, %v79_v24  ;;  %3387 = vmatmul.msk.f32.gmra.mxu1 %vm110_vm0, %v79_v24 }
 0x9e0   :  { %v3767_v36 = vpop.eup %3766 }
 0x9e1   :  { %2233 = vrot.lane.b32.xlu2 %v5021_v43, %s3904_s13  ;;  %2199 = vrot.lane.b32.xlu0 %v3767_v36, %s3904_s13 }
 0x9e4   :  { %v2194_v52 = vpop.permute.xlu0 %2193 }
 0x9e5   :  { %v2209_v63 = vmul.f32 %v2194_v52, %v2179_v46  ;;  %3340 = vmatmul.msk.f32.gmra.mxu0 %vm110_vm0, %v80_v62  ;;  %3388 = vmatmul.msk.f32.gmra.mxu1 %vm110_vm0, %v80_v62 }
 0x9e7   :  { %v5029_v55 = vadd.f32 %v2215_v0, %v2209_v63 }
 0x9e9   :  { %2235 = vrot.lane.b32.xlu0 %v5029_v55, %s3904_s13 }
 0x9ed   :  { %3341 = vmatmul.msk.f32.gmra.mxu0 %vm110_vm0, %v81_v50  ;;  %3389 = vmatmul.msk.f32.gmra.mxu1 %vm110_vm0, %v81_v50 }
 0xa16   :  { %v2272_v21 = vpop.f32.mrf.mxu2  ;;  %v2307_v41 = vpop.f32.mrf.mxu3 }
 0xa17   :  { %v2325_v56 = vadd.f32 %v2272_v21, %v381_v58  ;;  %v2445_v35 = vadd.f32 %v5043_v25, %v2307_v41 }
 0xa19   :  { %v3504_v60 = vmul.f32 -1.442695, %v2325_v56 }
 0xa1b   :  { %3768 = vpow2.f32 %v3504_v60 }
 0xa21   :  { %v3769_v57 = vpop.eup %3768 }
 0xa22   :  { %v2349_v17 = vadd.f32 1.0, %v3769_v57 }
 0xa24   :  { %3770 = vrcp.f32 %v2349_v17  ;;  %v2366_v3 = vand.u32 2147483648, %v2349_v17  ;;  %v2364_v16 = vand.u32 2147483647, %v2349_v17  ;;  %vm2360_vm11 = vweird.f32 %v2349_v17 }
 0xa26   :  { %v2367_v51 = vor.u32 1.1754944e-38, %v2366_v3  ;;  %vm2365_vm13 = vcmp.eq.f32.partialorder %v2364_v16, 8.507059e+37 }
 0xa2a   :  { %v3771_v2 = vpop.eup %3770 }
 0xa2b   :  { %v2356_v61 = vmul.f32 %v3771_v2, %v2349_v17  ;;  %vm2361_vm10 = vweird.f32 %v3771_v2 }
 0xa2c   :  { %vm2362_vm12 = vmor %vm2360_vm11, %vm2361_vm10 }
 0xa2d   :  { %v2357_v5 = vsub.f32 1.0, %v2356_v61 }
 0xa2f   :  { %v2358_v19 = vmul.f32 %v3771_v2, %v2357_v5 }
 0xa31   :  { %v2359_v20 = vadd.f32 %v3771_v2, %v2358_v19 }
 0xa33   :  { %v2363_v8 = vsel %vm2362_vm12, %v3771_v2, %v2359_v20  ;;  %v2198_v37 = vpop.permute.xlu2 %2197 }
 0xa34   :  { %v2368_v10 = vsel %vm2365_vm13, %v2367_v51, %v2363_v8  ;;  %v2211_v9 = vmul.f32 %v2198_v37, %v2181_v7 }
 0xa35   :  { %v2451_v39 = vmul.f32 %v2445_v35, %v2368_v10  ;;  %v2469_v4 = vsub.f32 1.0, %v2368_v10  ;;  %v2505_v47 = vmul.f32 %v2368_v10, %v4967_v12 }
 0xa36   :  { %v5049_v11 = vadd.f32 %v2217_v30, %v2211_v9 }
 0xa37   :  { %v2457_v45 = vadd.f32 %v2451_v39, %v542_v31 }
 0xa38   :  { %2239 = vrot.lane.b32.xlu2 %v5049_v11, %s3904_s13 }
 0xa39   :  { %3772 = vtanh.f32 %v2457_v45 }
 0xa3b   :  { %v2234_v13 = vpop.permute.xlu2 %2233 }
 0xa3c   :  { %3493 = vmatmul.msk.f32.gmra.mxu2 %vm110_vm0, %v2234_v13  ;;  %3499 = vmatmul.msk.f32.gmra.mxu3 %vm110_vm0, %v2234_v13 }
 0xa3f   :  { %v3773_v6 = vpop.eup %3772 }
 0xa40   :  { %2481 = vrot.lane.b32.xlu1 %v3773_v6, %s3904_s13 }
 0xa43   :  { %v2196_v22 = vpop.permute.xlu1 %2195 }
 0xa44   :  { %v2210_v27 = vmul.f32 %v2196_v22, %v2180_v29 }
 0xa46   :  { %v5064_v54 = vadd.f32 %v2216_v26, %v2210_v27 }
 0xa48   :  { %2237 = vrot.lane.b32.xlu1 %v5064_v54, %s3904_s13 }
 0xa4a   :  { %v383_v32 = vpop.f32.mrf.mxu0  ;;  %v544_v5 = vpop.f32.mrf.mxu1 }
 0xa4b   :  { %v384_v36 = vadd.f32 %v383_v32, %v4052_v23  ;;  %v545_v20 = vadd.f32 %v544_v5, %v4057_v42 }
 0xa52   :  { %v386_v2 = vpop.f32.mrf.mxu0  ;;  %v547_v26 = vpop.f32.mrf.mxu1 }
 0xa53   :  { %v2200_v48 = vpop.permute.xlu0 %2199  ;;  %v387_v16 = vadd.f32 %v386_v2, %v4052_v23 }
 0xa54   :  { %v2212_v28 = vmul.f32 %v2200_v48, %v2182_v18 }
 0xa56   :  { %v5071_v38 = vadd.f32 %v2218_v40, %v2212_v28  ;;  %v548_v28 = vadd.f32 %v547_v26, %v4057_v42 }
 0xa58   :  { %2241 = vrot.lane.b32.xlu0 %v5071_v38, %s3904_s13 }
 0xa5b   :  { %v2236_v49 = vpop.permute.xlu0 %2235 }
 0xa5c   :  { %3494 = vmatmul.msk.f32.gmra.mxu2 %vm110_vm0, %v2236_v49  ;;  %3500 = vmatmul.msk.f32.gmra.mxu3 %vm110_vm0, %v2236_v49 }
 0xa92   :  { %v2240_v0 = vpop.permute.xlu2 %2239 }
 0xab2   :  { %v2482_v34 = vpop.permute.xlu1 %2481 }
 0xab3   :  { %v2499_v33 = vmul.f32 %v2482_v34, %v2469_v4  ;;  %v82_v4 = vld [vmem:[%s5444_s0 + $0x150] sm:$0xff] }
 0xab4   :  { %3342 = vmatmul.msk.f32.gmra.mxu0 %vm110_vm0, %v82_v4  ;;  %3390 = vmatmul.msk.f32.gmra.mxu1 %vm110_vm0, %v82_v4 }
 0xab5   :  { %v5093_v53 = vadd.f32 %v2505_v47, %v2499_v33  ;;  %v389_v47 = vpop.f32.mrf.mxu0 }
 0xab6   :  { %v390_v33 = vadd.f32 %v389_v47, %v4052_v23 }
 0xab7   :  { %2523 = vrot.lane.b32.xlu1 %v5093_v53, %s3904_s13 }
 0xaba   :  { %v2238_v59 = vpop.permute.xlu1 %2237 }
 0xabb   :  { %3495 = vmatmul.msk.f32.gmra.mxu2 %vm110_vm0, %v2238_v59  ;;  %3501 = vmatmul.msk.f32.gmra.mxu3 %vm110_vm0, %v2238_v59 }
 0xabd   :  { %v392_v59 = vpop.f32.mrf.mxu0 }
 0xabf   :  { %v2275_v46 = vpop.f32.mrf.mxu2  ;;  %v2310_v61 = vpop.f32.mrf.mxu3 }
 0xac0   :  { %v2326_v52 = vadd.f32 %v2275_v46, %v384_v36  ;;  %v2446_v44 = vadd.f32 %v5043_v25, %v2310_v61 }
 0xac2   :  { %v3505_v63 = vmul.f32 -1.442695, %v2326_v52  ;;  %v393_v52 = vadd.f32 %v392_v59, %v4052_v23 }
 0xac3   :  { %3496 = vmatmul.msk.f32.gmra.mxu2 %vm110_vm0, %v2240_v0  ;;  %3502 = vmatmul.msk.f32.gmra.mxu3 %vm110_vm0, %v2240_v0 }
 0xac4   :  { %3774 = vpow2.f32 %v3505_v63 }
 0xaca   :  { %v3775_v12 = vpop.eup %3774  ;;  %v2242_v15 = vpop.permute.xlu0 %2241 }
 0xacb   :  { %v2350_v58 = vadd.f32 1.0, %v3775_v12  ;;  %3497 = vmatmul.msk.f32.gmra.mxu2 %vm110_vm0, %v2242_v15  ;;  %3503 = vmatmul.msk.f32.gmra.mxu3 %vm110_vm0, %v2242_v15  ;;  %v395_v12 = vpop.f32.mrf.mxu0 }
 0xacd   :  { %3776 = vrcp.f32 %v2350_v58  ;;  %v2381_v1 = vand.u32 2147483648, %v2350_v58  ;;  %v2379_v17 = vand.u32 2147483647, %v2350_v58  ;;  %vm2375_vm15 = vweird.f32 %v2350_v58 }
 0xacf   :  { %v2382_v19 = vor.u32 1.1754944e-38, %v2381_v1  ;;  %vm2380_vm2 = vcmp.eq.f32.partialorder %v2379_v17, 8.507059e+37 }
 0xad3   :  { %v3777_v21 = vpop.eup %3776 }
 0xad4   :  { %v2371_v56 = vmul.f32 %v3777_v21, %v2350_v58  ;;  %vm2376_vm14 = vweird.f32 %v3777_v21 }
 0xad5   :  { %vm2377_vm1 = vmor %vm2375_vm15, %vm2376_vm14 }
 0xad6   :  { %v2372_v60 = vsub.f32 1.0, %v2371_v56  ;;  %v396_v56 = vadd.f32 %v395_v12, %v4052_v23 }
 0xad8   :  { %v2373_v57 = vmul.f32 %v3777_v21, %v2372_v60 }
 0xada   :  { %v2374_v3 = vadd.f32 %v3777_v21, %v2373_v57 }
 0xadc   :  { %v2378_v41 = vsel %vm2377_vm1, %v3777_v21, %v2374_v3 }
 0xadd   :  { %v5107_v51 = vsel %vm2380_vm2, %v2382_v19, %v2378_v41  ;;  %v550_v19 = vpop.f32.mrf.mxu1 }
 0xade   :  { %v2452_v7 = vmul.f32 %v2446_v44, %v5107_v51 }
 0xadf   :  { %v2278_v8 = vpop.f32.mrf.mxu2  ;;  %v2313_v22 = vpop.f32.mrf.mxu3 }
 0xae0   :  { %v2458_v35 = vadd.f32 %v2452_v7, %v545_v20  ;;  %v2327_v37 = vadd.f32 %v2278_v8, %v387_v16  ;;  %v2447_v40 = vadd.f32 %v5043_v25, %v2313_v22 }
 0xae2   :  { %3778 = vtanh.f32 %v2458_v35  ;;  %v3506_v31 = vmul.f32 -1.442695, %v2327_v37 }
 0xae4   :  { %3780 = vpow2.f32 %v3506_v31 }
 0xae5   :  { %v553_v22 = vpop.f32.mrf.mxu1 }
 0xae8   :  { %v3779_v10 = vpop.eup %3778 }
 0xae9   :  { %2483 = vrot.lane.b32.xlu2 %v3779_v10, %s3904_s13  ;;  %v551_v10 = vadd.f32 %v550_v19, %v4057_v42 }
 0xaea   :  { %v3781_v30 = vpop.eup %3780 }
 0xaeb   :  { %v2351_v9 = vadd.f32 1.0, %v3781_v30 }
 0xaed   :  { %3782 = vrcp.f32 %v2351_v9  ;;  %v2396_v14 = vand.u32 2147483648, %v2351_v9  ;;  %v2394_v29 = vand.u32 2147483647, %v2351_v9  ;;  %vm2390_vm4 = vweird.f32 %v2351_v9 }
 0xaef   :  { %v2397_v18 = vor.u32 1.1754944e-38, %v2396_v14  ;;  %vm2395_vm6 = vcmp.eq.f32.partialorder %v2394_v29, 8.507059e+37 }
 0xaf3   :  { %v3783_v39 = vpop.eup %3782 }
 0xaf4   :  { %v2386_v45 = vmul.f32 %v3783_v39, %v2351_v9  ;;  %vm2391_vm3 = vweird.f32 %v3783_v39 }
 0xaf5   :  { %vm2392_vm5 = vmor %vm2390_vm4, %vm2391_vm3 }
 0xaf6   :  { %v2387_v13 = vsub.f32 1.0, %v2386_v45 }
 0xaf8   :  { %v2388_v6 = vmul.f32 %v3783_v39, %v2387_v13 }
 0xafa   :  { %v2389_v27 = vadd.f32 %v3783_v39, %v2388_v6 }
 0xafc   :  { %v2393_v48 = vsel %vm2392_vm5, %v3783_v39, %v2389_v27 }
 0xafd   :  { %v5113_v49 = vsel %vm2395_vm6, %v2397_v18, %v2393_v48 }
 0xafe   :  { %v2453_v24 = vmul.f32 %v2447_v40, %v5113_v49 }
 0xb00   :  { %v2459_v62 = vadd.f32 %v2453_v24, %v548_v28  ;;  %v554_v24 = vadd.f32 %v553_v22, %v4057_v42 }
 0xb02   :  { %3784 = vtanh.f32 %v2459_v62 }
 0xb08   :  { %v3785_v50 = vpop.eup %3784 }
 0xb09   :  { %2485 = vrot.lane.b32.xlu0 %v3785_v50, %s3904_s13 }
 0xb29   :  { %v2524_v34 = vpop.permute.xlu1 %2523 }
 0xb2a   :  { %3510 = vmatmul.msk.f32.vlgmr.msra.gmra.mxu2 %vm110_vm0, %v2524_v34  ;;  %3516 = vmatmul.msk.f32.vlgmr.msra.gmra.mxu3 %vm110_vm0, %v2524_v34 }
 0xb3e   :  { %v2281_v32 = vpop.f32.mrf.mxu2  ;;  %v2316_v3 = vpop.f32.mrf.mxu3 }
 0xb3f   :  { %v2328_v36 = vadd.f32 %v2281_v32, %v390_v33  ;;  %v2448_v9 = vadd.f32 %v5043_v25, %v2316_v3  ;;  %v2506_v3 = vmul.f32 %v5107_v51, %v5021_v43  ;;  %v398_v43 = vpop.f32.mrf.mxu0 }
 0xb41   :  { %v3507_v46 = vmul.f32 -1.442695, %v2328_v36 }
 0xb43   :  { %3786 = vpow2.f32 %v3507_v46 }
 0xb46   :  { %v2284_v0 = vpop.f32.mrf.mxu2  ;;  %v2319_v6 = vpop.f32.mrf.mxu3 }
 0xb47   :  { %v2329_v63 = vadd.f32 %v2284_v0, %v393_v52  ;;  %v2449_v50 = vadd.f32 %v5043_v25, %v2319_v6 }
 0xb49   :  { %v3787_v15 = vpop.eup %3786  ;;  %v3508_v58 = vmul.f32 -1.442695, %v2329_v63  ;;  %v556_v63 = vpop.f32.mrf.mxu1 }
 0xb4a   :  { %v2352_v21 = vadd.f32 1.0, %v3787_v15 }
 0xb4b   :  { %3788 = vpow2.f32 %v3508_v58 }
 0xb4c   :  { %3790 = vrcp.f32 %v2352_v21  ;;  %v2411_v41 = vand.u32 2147483648, %v2352_v21  ;;  %v2409_v20 = vand.u32 2147483647, %v2352_v21  ;;  %vm2405_vm8 = vweird.f32 %v2352_v21 }
 0xb4e   :  { %v2287_v60 = vpop.f32.mrf.mxu2  ;;  %v2412_v37 = vor.u32 1.1754944e-38, %v2411_v41  ;;  %vm2410_vm10 = vcmp.eq.f32.partialorder %v2409_v20, 8.507059e+37  ;;  %v2322_v0 = vpop.f32.mrf.mxu3  ;;  %v2471_v41 = vsub.f32 1.0, %v5113_v49  ;;  %v2507_v20 = vmul.f32 %v5113_v49, %v5029_v55 }
 0xb4f   :  { %v2330_v1 = vadd.f32 %v2287_v60, %v396_v56  ;;  %v557_v56 = vadd.f32 %v556_v63, %v4057_v42 }
 0xb51   :  { %v3789_v57 = vpop.eup %3788  ;;  %v3509_v17 = vmul.f32 -1.442695, %v2330_v1  ;;  %v559_v22 = vpop.f32.mrf.mxu1 }
 0xb52   :  { %v3791_v2 = vpop.eup %3790  ;;  %v2353_v61 = vadd.f32 1.0, %v3789_v57 }
 0xb53   :  { %v2401_v5 = vmul.f32 %v3791_v2, %v2352_v21  ;;  %3792 = vpow2.f32 %v3509_v17  ;;  %vm2406_vm7 = vweird.f32 %v3791_v2  ;;  %v2450_v21 = vadd.f32 %v5043_v25, %v2322_v0  ;;  %v2484_v17 = vpop.permute.xlu2 %2483 }
 0xb54   :  { %3794 = vrcp.f32 %v2353_v61  ;;  %vm2407_vm9 = vmor %vm2405_vm8, %vm2406_vm7  ;;  %v2426_v29 = vand.u32 2147483648, %v2353_v61  ;;  %v2424_v27 = vand.u32 2147483647, %v2353_v61  ;;  %vm2420_vm12 = vweird.f32 %v2353_v61 }
 0xb55   :  { %v2402_v16 = vsub.f32 1.0, %v2401_v5 }
 0xb56   :  { %v2427_v28 = vor.u32 1.1754944e-38, %v2426_v29  ;;  %vm2425_vm14 = vcmp.eq.f32.partialorder %v2424_v27, 8.507059e+37 }
 0xb57   :  { %v2403_v44 = vmul.f32 %v3791_v2, %v2402_v16 }
 0xb59   :  { %v3793_v7 = vpop.eup %3792  ;;  %v2404_v8 = vadd.f32 %v3791_v2, %v2403_v44 }
 0xb5a   :  { %v3795_v35 = vpop.eup %3794  ;;  %v2354_v31 = vadd.f32 1.0, %v3793_v7 }
 0xb5b   :  { %v2408_v30 = vsel %vm2407_vm9, %v3791_v2, %v2404_v8  ;;  %v2416_v39 = vmul.f32 %v3795_v35, %v2353_v61  ;;  %vm2421_vm11 = vweird.f32 %v3795_v35  ;;  %v2470_v61 = vsub.f32 1.0, %v5107_v51 }
 0xb5c   :  { %v5129_v45 = vsel %vm2410_vm10, %v2412_v37, %v2408_v30  ;;  %3796 = vrcp.f32 %v2354_v31  ;;  %vm2422_vm13 = vmor %vm2420_vm12, %vm2421_vm11  ;;  %v2441_v32 = vand.u32 2147483648, %v2354_v31  ;;  %v2439_v46 = vand.u32 2147483647, %v2354_v31 }
 0xb5d   :  { %v2454_v13 = vmul.f32 %v2448_v9, %v5129_v45  ;;  %v2417_v14 = vsub.f32 1.0, %v2416_v39  ;;  %vm2435_vm1 = vweird.f32 %v2354_v31  ;;  %v2500_v5 = vmul.f32 %v2484_v17, %v2470_v61 }
 0xb5e   :  { %v2442_v15 = vor.u32 1.1754944e-38, %v2441_v32  ;;  %vm2440_vm3 = vcmp.eq.f32.partialorder %v2439_v46, 8.507059e+37  ;;  %v399_v51 = vadd.f32 %v398_v43, %v4052_v23 }
 0xb5f   :  { %v2418_v26 = vmul.f32 %v3795_v35, %v2417_v14  ;;  %v2460_v18 = vadd.f32 %v2454_v13, %v551_v10  ;;  %v5147_v19 = vadd.f32 %v2506_v3, %v2500_v5  ;;  %v83_v10 = vld [vmem:[%s5444_s0 + $0x158] sm:$0xff] }
 0xb60   :  { %3343 = vmatmul.msk.f32.gmra.mxu0 %vm110_vm0, %v83_v10  ;;  %3391 = vmatmul.msk.f32.gmra.mxu1 %vm110_vm0, %v83_v10 }
 0xb61   :  { %v2419_v48 = vadd.f32 %v3795_v35, %v2418_v26  ;;  %3798 = vtanh.f32 %v2460_v18 }
 0xb62   :  { %v3797_v40 = vpop.eup %3796 }
 0xb63   :  { %v2423_v62 = vsel %vm2422_vm13, %v3795_v35, %v2419_v48  ;;  %v2431_v4 = vmul.f32 %v3797_v40, %v2354_v31  ;;  %vm2436_vm15 = vweird.f32 %v3797_v40 }
 0xb64   :  { %v5134_v34 = vsel %vm2425_vm14, %v2427_v28, %v2423_v62  ;;  %vm2437_vm2 = vmor %vm2435_vm1, %vm2436_vm15 }
 0xb65   :  { %v2455_v47 = vmul.f32 %v2449_v50, %v5134_v34  ;;  %v2432_v33 = vsub.f32 1.0, %v2431_v4  ;;  %v2473_v18 = vsub.f32 1.0, %v5134_v34  ;;  %v2509_v50 = vmul.f32 %v5134_v34, %v5049_v11 }
 0xb66   :  { %v2472_v34 = vsub.f32 1.0, %v5129_v45 }
 0xb67   :  { %v3799_v59 = vpop.eup %3798  ;;  %v2433_v36 = vmul.f32 %v3797_v40, %v2432_v33  ;;  %v2461_v52 = vadd.f32 %v2455_v47, %v554_v24  ;;  %v560_v24 = vadd.f32 %v559_v22, %v4057_v42 }
 0xb68   :  { %2487 = vrot.lane.b32.xlu1 %v3799_v59, %s3904_s13 }
 0xb69   :  { %v2434_v12 = vadd.f32 %v3797_v40, %v2433_v36  ;;  %3800 = vtanh.f32 %v2461_v52  ;;  %v84_v36 = vld [vmem:[%s5444_s0 + $0x160] sm:$0xff]  ;;  %v2508_v52 = vmul.f32 %v5129_v45, %v5064_v54  ;;  %v85_v54 = vld [vmem:[%s5444_s0 + $0x168] sm:$0xff]  ;;  %v87_v45 = vld [vmem:[%s5444_s0 + $0x178] sm:$0xff] }
 0xb6a   :  { %3344 = vmatmul.msk.f32.gmra.mxu0 %vm110_vm0, %v84_v36  ;;  %3392 = vmatmul.msk.f32.gmra.mxu1 %vm110_vm0, %v84_v36 }
 0xb6b   :  { %v2438_v58 = vsel %vm2437_vm2, %v3797_v40, %v2434_v12 }
 0xb6c   :  { %v5140_v60 = vsel %vm2440_vm3, %v2442_v15, %v2438_v58 }
 0xb6d   :  { %v2456_v1 = vmul.f32 %v2450_v21, %v5140_v60  ;;  %v2474_v12 = vsub.f32 1.0, %v5140_v60  ;;  %v2510_v58 = vmul.f32 %v5140_v60, %v5071_v38  ;;  %v86_v38 = vld [vmem:[%s5444_s0 + $0x170] sm:$0xff] }
 0xb6f   :  { %v3801_v57 = vpop.eup %3800  ;;  %v2462_v2 = vadd.f32 %v2456_v1, %v557_v56 }
 0xb70   :  { %2489 = vrot.lane.b32.xlu2 %v3801_v57, %s3904_s13 }
 0xb71   :  { %3802 = vtanh.f32 %v2462_v2 }
 0xb72   :  { %3345 = vmatmul.msk.f32.gmra.mxu0 %vm110_vm0, %v85_v54  ;;  %3393 = vmatmul.msk.f32.gmra.mxu1 %vm110_vm0, %v85_v54 }
 0xb77   :  { %v3803_v16 = vpop.eup %3802 }
 0xb78   :  { %2525 = vrot.lane.b32.xlu2 %v5147_v19, %s3904_s13  ;;  %2491 = vrot.lane.b32.xlu0 %v3803_v16, %s3904_s13 }
 0xb7a   :  { %3346 = vmatmul.msk.f32.gmra.mxu0 %vm110_vm0, %v86_v38  ;;  %3394 = vmatmul.msk.f32.gmra.mxu1 %vm110_vm0, %v86_v38 }
 0xb7b   :  { %v2486_v44 = vpop.permute.xlu0 %2485 }
 0xb7c   :  { %v2501_v7 = vmul.f32 %v2486_v44, %v2471_v41 }
 0xb7e   :  { %v5155_v8 = vadd.f32 %v2507_v20, %v2501_v7 }
 0xb80   :  { %2527 = vrot.lane.b32.xlu0 %v5155_v8, %s3904_s13 }
 0xb82   :  { %3347 = vmatmul.msk.f32.gmra.mxu0 %vm110_vm0, %v87_v45  ;;  %3395 = vmatmul.msk.f32.gmra.mxu1 %vm110_vm0, %v87_v45 }
 0xbad   :  { %v2564_v35 = vpop.f32.mrf.mxu2  ;;  %v2599_v29 = vpop.f32.mrf.mxu3 }
 0xbae   :  { %v2617_v37 = vadd.f32 %v2564_v35, %v399_v51  ;;  %v2737_v40 = vadd.f32 %v5043_v25, %v2599_v29 }
 0xbb0   :  { %v3522_v31 = vmul.f32 -1.442695, %v2617_v37 }
 0xbb2   :  { %3804 = vpow2.f32 %v3522_v31 }
 0xbb8   :  { %v3805_v55 = vpop.eup %3804 }
 0xbb9   :  { %v2641_v49 = vadd.f32 1.0, %v3805_v55 }
 0xbbb   :  { %3806 = vrcp.f32 %v2641_v49  ;;  %v2658_v13 = vand.u32 2147483648, %v2641_v49  ;;  %v2656_v6 = vand.u32 2147483647, %v2641_v49  ;;  %vm2652_vm5 = vweird.f32 %v2641_v49 }
 0xbbd   :  { %v2659_v27 = vor.u32 1.1754944e-38, %v2658_v13  ;;  %vm2657_vm7 = vcmp.eq.f32.partialorder %v2656_v6, 8.507059e+37 }
 0xbc1   :  { %v3807_v30 = vpop.eup %3806 }
 0xbc2   :  { %v2648_v9 = vmul.f32 %v3807_v30, %v2641_v49  ;;  %vm2653_vm4 = vweird.f32 %v3807_v30 }
 0xbc3   :  { %vm2654_vm6 = vmor %vm2652_vm5, %vm2653_vm4 }
 0xbc4   :  { %v2649_v39 = vsub.f32 1.0, %v2648_v9 }
 0xbc6   :  { %v2650_v14 = vmul.f32 %v3807_v30, %v2649_v39 }
 0xbc8   :  { %v2651_v26 = vadd.f32 %v3807_v30, %v2650_v14 }
 0xbca   :  { %v2655_v48 = vsel %vm2654_vm6, %v3807_v30, %v2651_v26  ;;  %v2490_v28 = vpop.permute.xlu2 %2489 }
 0xbcb   :  { %v2660_v62 = vsel %vm2657_vm7, %v2659_v27, %v2655_v48  ;;  %v2503_v4 = vmul.f32 %v2490_v28, %v2473_v18  ;;  %v2816_v27 = vld [vmem:[%s5448_s5 + $0x38] sm:$0xff]  ;;  %v2815_v48 = vld [vmem:[%s5448_s5 + $0x30] sm:$0xff]  ;;  %v2813_v28 = vld [vmem:[%s5448_s5 + $0x20] sm:$0xff] }
 0xbcc   :  { %v2743_v47 = vmul.f32 %v2737_v40, %v2660_v62  ;;  %v2761_v60 = vsub.f32 1.0, %v2660_v62  ;;  %v2797_v17 = vmul.f32 %v2660_v62, %v5093_v53  ;;  %2859 = vmatpush.msrb.mxu2 %v2816_v27  ;;  %v2814_v40 = vld [vmem:[%s5448_s5 + $0x28] sm:$0xff] }
 0xbcd   :  { %v5170_v33 = vadd.f32 %v2509_v50, %v2503_v4  ;;  %v2811_v50 = vld [vmem:[%s5448_s5 + $0x10] sm:$0xff]  ;;  %v2810_v4 = vld [vmem:[%s5448_s5 + $0x8] sm:$0xff] }
 0xbce   :  { %v2749_v32 = vadd.f32 %v2743_v47, %v560_v24  ;;  %2860 = vmatpush.msrb.mxu2 %v2815_v48  ;;  %v2812_v24 = vld [vmem:[%s5448_s5 + $0x18] sm:$0xff]  ;;  %v2809_v47 = vld [vmem:[%s5448_s5] sm:$0xff] }
 0xbcf   :  { %2531 = vrot.lane.b32.xlu2 %v5170_v33, %s3904_s13 }
 0xbd0   :  { %3808 = vtanh.f32 %v2749_v32  ;;  %2861 = vmatpush.msrb.mxu2 %v2814_v40 }
 0xbd2   :  { %v2526_v59 = vpop.permute.xlu2 %2525  ;;  %2862 = vmatpush.msrb.mxu2 %v2813_v28 }
 0xbd3   :  { %3511 = vmatmul.msk.f32.gmra.mxu2 %vm110_vm0, %v2526_v59  ;;  %3517 = vmatmul.msk.f32.gmra.mxu3 %vm110_vm0, %v2526_v59 }
 0xbd4   :  { %2863 = vmatpush.msrb.mxu2 %v2812_v24 }
 0xbd6   :  { %v3809_v11 = vpop.eup %3808  ;;  %2864 = vmatpush.msrb.mxu2 %v2811_v50 }
 0xbd7   :  { %2773 = vrot.lane.b32.xlu1 %v3809_v11, %s3904_s13 }
 0xbd8   :  { %2865 = vmatpush.msrb.mxu2 %v2810_v4 }
 0xbda   :  { %v2488_v46 = vpop.permute.xlu1 %2487  ;;  %2866 = vmatpush.msrb.mxu2 %v2809_v47 }
 0xbdb   :  { %v2502_v0 = vmul.f32 %v2488_v46, %v2472_v34 }
 0xbdd   :  { %v5185_v63 = vadd.f32 %v2508_v52, %v2502_v0  ;;  %v401_v5 = vpop.f32.mrf.mxu0  ;;  %v562_v9 = vpop.f32.mrf.mxu1 }
 0xbde   :  { %v402_v16 = vadd.f32 %v401_v5, %v4052_v23  ;;  %v563_v29 = vadd.f32 %v562_v9, %v4057_v42 }
 0xbdf   :  { %2529 = vrot.lane.b32.xlu1 %v5185_v63, %s3904_s13 }
 0xbe7   :  { %v5253_v59 = vpop.f32.mrf.mxu0 }
 0xbea   :  { %v2492_v15 = vpop.permute.xlu0 %2491 }
 0xbeb   :  { %v2504_v21 = vmul.f32 %v2492_v15, %v2474_v12 }
 0xbed   :  { %v5192_v56 = vadd.f32 %v2510_v58, %v2504_v21 }
 0xbef   :  { %2533 = vrot.lane.b32.xlu0 %v5192_v56, %s3904_s13  ;;  %v407_v11 = vpop.f32.mrf.mxu0 }
 0xbf0   :  { %v408_v34 = vadd.f32 %v407_v11, %v4052_v23 }
 0xbf2   :  { %v2528_v1 = vpop.permute.xlu0 %2527 }
 0xbf3   :  { %3512 = vmatmul.msk.f32.gmra.mxu2 %vm110_vm0, %v2528_v1  ;;  %3518 = vmatmul.msk.f32.gmra.mxu3 %vm110_vm0, %v2528_v1 }
 0xbf7   :  { %v410_v0 = vpop.f32.mrf.mxu0 }
 0xbf8   :  { %v411_v15 = vadd.f32 %v410_v0, %v4052_v23 }
 0xc29   :  { %v2532_v20 = vpop.permute.xlu2 %2531 }
 0xc49   :  { %v2774_v57 = vpop.permute.xlu1 %2773 }
 0xc4a   :  { %v2791_v2 = vmul.f32 %v2774_v57, %v2761_v60 }
 0xc4c   :  { %v2803_v61 = vadd.f32 %v2797_v17, %v2791_v2 }
 0xc4e   :  { %2827 = vrot.lane.b32.xlu1 %v2803_v61, %s3904_s13 }
 0xc51   :  { %v2530_v3 = vpop.permute.xlu1 %2529 }
 0xc52   :  { %3513 = vmatmul.msk.f32.gmra.mxu2 %vm110_vm0, %v2530_v3  ;;  %3519 = vmatmul.msk.f32.gmra.mxu3 %vm110_vm0, %v2530_v3 }
 0xc56   :  { %v2567_v41 = vpop.f32.mrf.mxu2  ;;  %v2602_v30 = vpop.f32.mrf.mxu3 }
 0xc57   :  { %v2618_v44 = vadd.f32 %v2567_v41, %v402_v16  ;;  %v2738_v6 = vadd.f32 %v5043_v25, %v2602_v30 }
 0xc59   :  { %v3523_v7 = vmul.f32 -1.442695, %v2618_v44 }
 0xc5a   :  { %3514 = vmatmul.msk.f32.gmra.mxu2 %vm110_vm0, %v2532_v20  ;;  %3520 = vmatmul.msk.f32.gmra.mxu3 %vm110_vm0, %v2532_v20 }
 0xc5b   :  { %3810 = vpow2.f32 %v3523_v7 }
 0xc61   :  { %v3811_v53 = vpop.eup %3810  ;;  %v2534_v43 = vpop.permute.xlu0 %2533 }
 0xc62   :  { %v2642_v51 = vadd.f32 1.0, %v3811_v53  ;;  %3515 = vmatmul.msk.f32.gmra.mxu2 %vm110_vm0, %v2534_v43  ;;  %3521 = vmatmul.msk.f32.gmra.mxu3 %vm110_vm0, %v2534_v43 }
 0xc64   :  { %3812 = vrcp.f32 %v2642_v51  ;;  %v2673_v10 = vand.u32 2147483648, %v2642_v51  ;;  %v2671_v49 = vand.u32 2147483647, %v2642_v51  ;;  %vm2667_vm9 = vweird.f32 %v2642_v51 }
 0xc66   :  { %v2674_v13 = vor.u32 1.1754944e-38, %v2673_v10  ;;  %vm2672_vm11 = vcmp.eq.f32.partialorder %v2671_v49, 8.507059e+37 }
 0xc6a   :  { %v3813_v35 = vpop.eup %3812 }
 0xc6b   :  { %v2663_v37 = vmul.f32 %v3813_v35, %v2642_v51  ;;  %vm2668_vm8 = vweird.f32 %v3813_v35 }
 0xc6c   :  { %vm2669_vm10 = vmor %vm2667_vm9, %vm2668_vm8  ;;  %vm2929_vm9 = vcmask 261120  }
 0xc6d   :  { %v2664_v31 = vsub.f32 1.0, %v2663_v37 }
 0xc6f   :  { %v2665_v55 = vmul.f32 %v3813_v35, %v2664_v31 }
 0xc71   :  { %v2666_v39 = vadd.f32 %v3813_v35, %v2665_v55 }
 0xc73   :  { %v2670_v14 = vsel %vm2669_vm10, %v3813_v35, %v2666_v39 }
 0xc74   :  { %v5224_v22 = vsel %vm2672_vm11, %v2674_v13, %v2670_v14 }
 0xc75   :  { %v2744_v26 = vmul.f32 %v2738_v6, %v5224_v22 }
 0xc76   :  { %v5255_v36 = vpop.f32.mrf.mxu2  ;;  %v5259_v45 = vpop.f32.mrf.mxu3 }
 0xc77   :  { %v2750_v18 = vadd.f32 %v2744_v26, %v563_v29  ;;  %v3550_v26 = vld [vmem:[%s5450_s8] ss:$0 sm:$0xff] }
 0xc79   :  { %3814 = vtanh.f32 %v2750_v18  ;;  %v5282_v18 = vld [vmem:[%s5449_s6] ss:$0 sm:$0xff]  ;;  %s3905_s6 = smov 96  }
 0xc7f   :  { %v3815_v62 = vpop.eup %3814 }
 0xc80   :  { %2775 = vrot.lane.b32.xlu1 %v3815_v62, %s3904_s13 }
 0xc88   :  { %2972 = vrot.lane.b32.xlu1 %v3550_v26, %s3904_s13 }
 0xcc0   :  { %v2828_v32 = vpop.permute.xlu1 %2827 }
 0xcc1   :  { %3528 = vmatmul.msk.f32.vlgmr.msrb.gmra.mxu2 %vm110_vm0, %v2828_v32 }
 0xcd5   :  { %v2573_v46 = vpop.f32.mrf.mxu2  ;;  %v2608_v5 = vpop.f32.mrf.mxu3 }
 0xcd6   :  { %v2620_v52 = vadd.f32 %v2573_v46, %v408_v34  ;;  %v2740_v43 = vadd.f32 %v5043_v25, %v2608_v5 }
 0xcd8   :  { %v3525_v12 = vmul.f32 -1.442695, %v2620_v52 }
 0xcda   :  { %3816 = vpow2.f32 %v3525_v12 }
 0xcdd   :  { %v2576_v58 = vpop.f32.mrf.mxu2  ;;  %v2611_v30 = vpop.f32.mrf.mxu3 }
 0xcde   :  { %v2621_v21 = vadd.f32 %v2576_v58, %v411_v15  ;;  %v2741_v14 = vadd.f32 %v5043_v25, %v2611_v30 }
 0xce0   :  { %v3817_v1 = vpop.eup %3816  ;;  %v3526_v54 = vmul.f32 -1.442695, %v2621_v21 }
 0xce1   :  { %v2644_v38 = vadd.f32 1.0, %v3817_v1 }
 0xce2   :  { %3818 = vpow2.f32 %v3526_v54  ;;  %v2762_v54 = vsub.f32 1.0, %v5224_v22 }
 0xce3   :  { %3820 = vrcp.f32 %v2644_v38  ;;  %v2703_v3 = vand.u32 2147483648, %v2644_v38  ;;  %v2701_v41 = vand.u32 2147483647, %v2644_v38  ;;  %vm2697_vm13 = vweird.f32 %v2644_v38 }
 0xce5   :  { %v2704_v7 = vor.u32 1.1754944e-38, %v2703_v3  ;;  %vm2702_vm15 = vcmp.eq.f32.partialorder %v2701_v41, 8.507059e+37  ;;  %v5277_v27 = vpop.f32.mrf.mxu2 }
 0xce8   :  { %v3819_v60 = vpop.eup %3818 }
 0xce9   :  { %v3821_v57 = vpop.eup %3820  ;;  %v2645_v17 = vadd.f32 1.0, %v3819_v60  ;;  %v2798_v60 = vmul.f32 %v5224_v22, %v5147_v19  ;;  %v5311_v19 = vld [vmem:[%s5451_s7] sm:$0xff] }
 0xcea   :  { %v2693_v2 = vmul.f32 %v3821_v57, %v2644_v38  ;;  %vm2698_vm12 = vweird.f32 %v3821_v57 }
 0xceb   :  { %3822 = vrcp.f32 %v2645_v17  ;;  %vm2699_vm14 = vmor %vm2697_vm13, %vm2698_vm12  ;;  %v2718_v10 = vand.u32 2147483648, %v2645_v17  ;;  %v2716_v49 = vand.u32 2147483647, %v2645_v17  ;;  %vm2712_vm2 = vweird.f32 %v2645_v17 }
 0xcec   :  { %v2694_v61 = vsub.f32 1.0, %v2693_v2  ;;  %v5299_v2 = vld [vmem:[%s5451_s7 + $0x10] sm:$0xff] }
 0xced   :  { %v2719_v39 = vor.u32 1.1754944e-38, %v2718_v10  ;;  %vm2717_vm4 = vcmp.eq.f32.partialorder %v2716_v49, 8.507059e+37 }
 0xcee   :  { %v2695_v16 = vmul.f32 %v3821_v57, %v2694_v61  ;;  %v5305_v61 = vld [vmem:[%s5451_s7 + $0x8] sm:$0xff] }
 0xcf0   :  { %v2696_v44 = vadd.f32 %v3821_v57, %v2695_v16 }
 0xcf1   :  { %v3823_v20 = vpop.eup %3822 }
 0xcf2   :  { %v2700_v53 = vsel %vm2699_vm14, %v3821_v57, %v2696_v44  ;;  %v2708_v51 = vmul.f32 %v3823_v20, %v2645_v17  ;;  %vm2713_vm1 = vweird.f32 %v3823_v20  ;;  %v2776_v1 = vpop.permute.xlu1 %2775  ;;  %v5294_v17 = vld [vmem:[%s5451_s7 + $0x18] sm:$0xff]  ;;  %v405_v44 = vadd.f32 %v5253_v59, %v4052_v23  ;;  %v5332_v59 = vpop.f32.mrf.mxu3 }
 0xcf3   :  { %v5262_v35 = vsel %vm2702_vm15, %v2704_v7, %v2700_v53  ;;  %vm2714_vm3 = vmor %vm2712_vm2, %vm2713_vm1  ;;  %v2792_v38 = vmul.f32 %v2776_v1, %v2762_v54  ;;  %2944 = vmatpush.msrb.mxu3 %v5294_v17 }
 0xcf4   :  { %v5265_v37 = vmul.f32 %v2740_v43, %v5262_v35  ;;  %v2709_v31 = vsub.f32 1.0, %v2708_v51 }
 0xcf5   :  { %v2804_v57 = vadd.f32 %v2798_v60, %v2792_v38  ;;  %2945 = vmatpush.msrb.mxu3 %v5299_v2 }
 0xcf6   :  { %v2710_v55 = vmul.f32 %v3823_v20, %v2709_v31 }
 0xcf7   :  { %2946 = vmatpush.msrb.mxu3 %v5305_v61 }
 0xcf8   :  { %v2711_v9 = vadd.f32 %v3823_v20, %v2710_v55 }
 0xcf9   :  { %2947 = vmatpush.msrb.mxu3 %v5311_v19 }
 0xcfa   :  { %v2715_v13 = vsel %vm2714_vm3, %v3823_v20, %v2711_v9  ;;  %v2619_v20 = vadd.f32 %v5255_v36, %v405_v44 }
 0xcfb   :  { %v5268_v6 = vsel %vm2717_vm4, %v2719_v39, %v2715_v13  ;;  %3012 = vmatpush.msra.mxu3 %v5294_v17 }
 0xcfc   :  { %v5271_v29 = vmul.f32 %v2741_v14, %v5268_v6  ;;  %v3524_v7 = vmul.f32 -1.442695, %v2619_v20  ;;  %v565_v14 = vpop.f32.mrf.mxu1 }
 0xcfd   :  { %3013 = vmatpush.msra.mxu3 %v5299_v2 }
 0xcff   :  { %3014 = vmatpush.msra.mxu3 %v5305_v61 }
 0xd01   :  { %3015 = vmatpush.msra.mxu3 %v5311_v19 }
 0xd44   :  { %v2868_v48 = vpop.f32.mrf.mxu2 }
 0xd45   :  { %v2869_v25 = vadd.f32 %v5282_v18, %v2868_v48 }
 0xd47   :  { %v3534_v40 = vmul.f32 -1.442695, %v2869_v25 }
 0xd49   :  { %3824 = vpow2.f32 %v3534_v40  ;;  %v566_v40 = vadd.f32 %v565_v14, %v4057_v42 }
 0xd4f   :  { %v3825_v28 = vpop.eup %3824 }
 0xd50   :  { %v2897_v24 = vadd.f32 1.0, %v3825_v28  ;;  %v5342_v28 = vpop.permute.xlu1 %2972 }
 0xd52   :  { %3826 = vrcp.f32 %v2897_v24  ;;  %v2909_v47 = vand.u32 2147483648, %v2897_v24  ;;  %v2907_v11 = vand.u32 2147483647, %v2897_v24  ;;  %vm2903_vm6 = vweird.f32 %v2897_v24 }
 0xd54   :  { %v2910_v46 = vor.u32 1.1754944e-38, %v2909_v47  ;;  %vm2908_vm8 = vcmp.eq.f32.partialorder %v2907_v11, 8.507059e+37 }
 0xd58   :  { %v3827_v62 = vpop.eup %3826 }
 0xd59   :  { %v2899_v50 = vmul.f32 %v3827_v62, %v2897_v24  ;;  %vm2904_vm5 = vweird.f32 %v3827_v62 }
 0xd5a   :  { %vm2905_vm7 = vmor %vm2903_vm6, %vm2904_vm5 }
 0xd5b   :  { %v2900_v4 = vsub.f32 1.0, %v2899_v50 }
 0xd5d   :  { %v2901_v32 = vmul.f32 %v3827_v62, %v2900_v4 }
 0xd5f   :  { %v2902_v34 = vadd.f32 %v3827_v62, %v2901_v32 }
 0xd61   :  { %v2906_v52 = vsel %vm2905_vm7, %v3827_v62, %v2902_v34 }
 0xd62   :  { %v2911_v0 = vsel %vm2908_vm8, %v2910_v46, %v2906_v52 }
 0xd63   :  { %v2913_v12 = vmul.f32 %v3550_v26, %v2911_v0  ;;  %v2920_v22 = vsub.f32 1.0, %v2911_v0  ;;  %v5337_v26 = vld [vmem:[%s5445_s4] ss:$0 sm:$0xff] }
 0xd64   :  { %v2739_v48 = vadd.f32 %v5337_v26, %v5259_v45 }
 0xd65   :  { %2915 = vrot.lane.b32.xlu2 %v2913_v12, %s3904_s13 }
 0xdbf   :  { %v2916_v15 = vpop.permute.xlu2 %2915 }
 0xdc0   :  { %v2918_v58 = vadd.f32 %v2916_v15, %v2869_v25 }
 0xdc2   :  { %3828 = vtanh.f32 %v2918_v58 }
 0xdc3   :  { %3830 = vpow2.f32 %v3524_v7 }
 0xdc8   :  { %v3829_v21 = vpop.eup %3828 }
 0xdc9   :  { %2922 = vrot.lane.b32.xlu0 %v3829_v21, %s3905_s6  ;;  %v3831_v53 = vpop.eup %3830 }
 0xdca   :  { %v2643_v43 = vadd.f32 1.0, %v3831_v53 }
 0xdcc   :  { %3832 = vrcp.f32 %v2643_v43  ;;  %v2688_v30 = vand.u32 2147483648, %v2643_v43  ;;  %vm2682_vm11 = vweird.f32 %v2643_v43  ;;  %v2686_v9 = vand.u32 2147483647, %v2643_v43 }
 0xdce   :  { %v2689_v13 = vor.u32 1.1754944e-38, %v2688_v30  ;;  %vm2687_vm13 = vcmp.eq.f32.partialorder %v2686_v9, 8.507059e+37 }
 0xdd1   :  { %2829 = vrot.lane.b32.xlu0 %v2804_v57, %s3904_s13 }
 0xdd2   :  { %v3833_v51 = vpop.eup %3832 }
 0xdd3   :  { %v2678_v31 = vmul.f32 %v3833_v51, %v2643_v43  ;;  %vm2683_vm10 = vweird.f32 %v3833_v51 }
 0xdd4   :  { %vm2684_vm12 = vmor %vm2682_vm11, %vm2683_vm10 }
 0xdd5   :  { %v2679_v10 = vsub.f32 1.0, %v2678_v31 }
 0xdd7   :  { %v2680_v55 = vmul.f32 %v3833_v51, %v2679_v10 }
 0xdd9   :  { %v2681_v49 = vadd.f32 %v3833_v51, %v2680_v55 }
 0xddb   :  { %v2685_v39 = vsel %vm2684_vm12, %v3833_v51, %v2681_v49 }
 0xddc   :  { %v2690_v36 = vsel %vm2687_vm13, %v2689_v13, %v2685_v39 }
 0xddd   :  { %v2745_v25 = vmul.f32 %v2739_v48, %v2690_v36  ;;  %v2763_v20 = vsub.f32 1.0, %v2690_v36  ;;  %v2799_v53 = vmul.f32 %v2690_v36, %v5155_v8  ;;  %v568_v8 = vpop.f32.mrf.mxu1 }
 0xddf   :  { %v2751_v24 = vadd.f32 %v2745_v25, %v566_v40 }
 0xde1   :  { %3834 = vtanh.f32 %v2751_v24 }
 0xde7   :  { %v3835_v4 = vpop.eup %3834 }
 0xe3b   :  { %v2923_v5 = vpop.permute.xlu0 %2922 }
 0xe3c   :  { %v5319_v3 = vmul.f32 %v2923_v5, %v2920_v22 }
 0xe3e   :  { %2927 = vrot.lane.b32.xlu2 %v5319_v3, %s3905_s6 }
 0xe43   :  { %v2830_v16 = vpop.permute.xlu0 %2829 }
 0xe44   :  { %3529 = vmatmul.msk.f32.gmra.mxu2 %vm110_vm0, %v2830_v16 }
 0xe98   :  { %v2928_v41 = vpop.permute.xlu2 %2927 }
 0xe99   :  { %3535 = vmatmul.msk.f32.vlgmr.msrb.gmra.mxu3 %vm2929_vm9, %v2928_v41 }
 0xe9a   :  { %3077 = vmatpush.msrb.mxu3 %v5294_v17 }
 0xe9c   :  { %3078 = vmatpush.msrb.mxu3 %v5299_v2 }
 0xe9e   :  { %3079 = vmatpush.msrb.mxu3 %v5305_v61 }
 0xea0   :  { %3080 = vmatpush.msrb.mxu3 %v5311_v19 }
 0xec7   :  { %v2871_v47 = vpop.f32.mrf.mxu2 }
 0xec8   :  { %v2872_v32 = vadd.f32 %v5282_v18, %v2871_v47 }
 0xf1c   :  { %v2949_v62 = vpop.f32.mrf.mxu3 }
 0xf1d   :  { %v2975_v50 = vadd.f32 %v5342_v28, %v2949_v62  ;;  %v2952_v11 = vadd.f32 %v2949_v62, %v2872_v32 }
 0xf1f   :  { %2977 = vrot.lane.b32.xlu2 %v2975_v50, %s3904_s13  ;;  %v3536_v45 = vmul.f32 -1.442695, %v2952_v11 }
 0xf21   :  { %3836 = vpow2.f32 %v3536_v45 }
 0xf27   :  { %2777 = vrot.lane.b32.xlu2 %v3835_v4, %s3904_s13  ;;  %v3837_v34 = vpop.eup %3836 }
 0xf28   :  { %v2956_v46 = vadd.f32 1.0, %v3837_v34 }
 0xf2a   :  { %3838 = vrcp.f32 %v2956_v46  ;;  %v2968_v21 = vand.u32 2147483648, %v2956_v46  ;;  %vm2962_vm15 = vweird.f32 %v2956_v46  ;;  %v2966_v1 = vand.u32 2147483647, %v2956_v46 }
 0xf2c   :  { %v2969_v38 = vor.u32 1.1754944e-38, %v2968_v21  ;;  %vm2967_vm2 = vcmp.eq.f32.partialorder %v2966_v1, 8.507059e+37 }
 0xf30   :  { %v3839_v52 = vpop.eup %3838 }
 0xf31   :  { %v2958_v0 = vmul.f32 %v3839_v52, %v2956_v46  ;;  %vm2963_vm14 = vweird.f32 %v3839_v52 }
 0xf32   :  { %vm2964_vm1 = vmor %vm2962_vm15, %vm2963_vm14 }
 0xf33   :  { %v2959_v12 = vsub.f32 1.0, %v2958_v0 }
 0xf35   :  { %v2960_v15 = vmul.f32 %v3839_v52, %v2959_v12 }
 0xf37   :  { %v2961_v58 = vadd.f32 %v3839_v52, %v2960_v15 }
 0xf39   :  { %v2965_v54 = vsel %vm2964_vm1, %v3839_v52, %v2961_v58 }
 0xf3a   :  { %v2970_v57 = vsel %vm2967_vm2, %v2969_v38, %v2965_v54  ;;  %v2764_v38 = vsub.f32 1.0, %v5262_v35 }
 0xf3b   :  { %v2987_v51 = vsub.f32 1.0, %v2970_v57  ;;  %v2993_v10 = vmul.f32 %v2970_v57, %v5319_v3  ;;  %v569_v3 = vadd.f32 %v568_v8, %v4057_v42 }
 0xf3d   :  { %v2752_v39 = vadd.f32 %v5265_v37, %v569_v3 }
 0xf79   :  { %v2978_v60 = vpop.permute.xlu2 %2977 }
 0xf7a   :  { %v2980_v22 = vmul.f32 %v2978_v60, %v2970_v57  ;;  %v2800_v57 = vmul.f32 %v5262_v35, %v5185_v63  ;;  %v571_v63 = vpop.f32.mrf.mxu1 }
 0xf7b   :  { %v572_v35 = vadd.f32 %v571_v63, %v4057_v42 }
 0xf7c   :  { %2982 = vrot.lane.b32.xlu0 %v2980_v22, %s3904_s13 }
 0xf81   :  { %v2778_v44 = vpop.permute.xlu2 %2777 }
 0xf82   :  { %v2793_v7 = vmul.f32 %v2778_v44, %v2763_v20 }
 0xf84   :  { %v2805_v43 = vadd.f32 %v2799_v53, %v2793_v7 }
 0xfee   :  { %v2983_v5 = vpop.permute.xlu0 %2982 }
 0xfef   :  { %v2985_v16 = vadd.f32 %v2983_v5, %v2872_v32 }
 0xff1   :  { %3840 = vtanh.f32 %v2985_v16 }
 0xff2   :  { %3842 = vtanh.f32 %v2752_v39 }
 0xff7   :  { %v3841_v41 = vpop.eup %3840 }
 0xff8   :  { %2989 = vrot.lane.b32.xlu1 %v3841_v41, %s3905_s6  ;;  %v3843_v14 = vpop.eup %3842 }
0x1000   :  { %2831 = vrot.lane.b32.xlu1 %v2805_v43, %s3904_s13  ;;  %v2753_v43 = vadd.f32 %v5271_v29, %v572_v35 }
0x106a   :  { %v2990_v31 = vpop.permute.xlu1 %2989 }
0x106b   :  { %v2992_v55 = vmul.f32 %v2990_v31, %v2987_v51 }
0x106d   :  { %v2994_v49 = vadd.f32 %v2993_v10, %v2992_v55 }
0x106f   :  { %2996 = vrot.lane.b32.xlu0 %v2994_v49, %s3905_s6 }
0x1072   :  { %v2832_v30 = vpop.permute.xlu1 %2831 }
0x1073   :  { %3530 = vmatmul.msk.f32.gmra.mxu2 %vm110_vm0, %v2832_v30 }
0x10e1   :  { %v2997_v9 = vpop.permute.xlu0 %2996 }
0x10e2   :  { %3537 = vmatmul.msk.f32.vlgmr.msra.gmra.mxu3 %vm2929_vm9, %v2997_v9 }
0x10e3   :  { %3142 = vmatpush.msra.mxu3 %v5294_v17 }
0x10e5   :  { %3143 = vmatpush.msra.mxu3 %v5299_v2 }
0x10e7   :  { %3144 = vmatpush.msra.mxu3 %v5305_v61 }
0x10e9   :  { %3145 = vmatpush.msra.mxu3 %v5311_v19 }
0x10f6   :  { %v2874_v48 = vpop.f32.mrf.mxu2 }
0x10f7   :  { %v2875_v25 = vadd.f32 %v5282_v18, %v2874_v48 }
0x1165   :  { %v3017_v13 = vpop.f32.mrf.mxu3 }
0x1166   :  { %v3040_v36 = vadd.f32 %v3017_v13, %v5342_v28  ;;  %v3020_v40 = vadd.f32 %v3017_v13, %v2875_v25 }
0x1168   :  { %3042 = vrot.lane.b32.xlu2 %v3040_v36, %s3904_s13  ;;  %v3538_v24 = vmul.f32 -1.442695, %v3020_v40 }
0x116a   :  { %3844 = vpow2.f32 %v3538_v24 }
0x1170   :  { %2779 = vrot.lane.b32.xlu2 %v3843_v14, %s3904_s13  ;;  %v3845_v62 = vpop.eup %3844 }
0x1171   :  { %v3024_v50 = vadd.f32 1.0, %v3845_v62 }
0x1173   :  { %3846 = vrcp.f32 %v3024_v50  ;;  %v3036_v45 = vand.u32 2147483648, %v3024_v50  ;;  %vm3030_vm4 = vweird.f32 %v3024_v50  ;;  %v3034_v34 = vand.u32 2147483647, %v3024_v50 }
0x1175   :  { %v3037_v52 = vor.u32 1.1754944e-38, %v3036_v45  ;;  %vm3035_vm6 = vcmp.eq.f32.partialorder %v3034_v34, 8.507059e+37 }
0x1179   :  { %v3847_v4 = vpop.eup %3846 }
0x117a   :  { %v3026_v37 = vmul.f32 %v3847_v4, %v3024_v50  ;;  %vm3031_vm3 = vweird.f32 %v3847_v4 }
0x117b   :  { %vm3032_vm5 = vmor %vm3030_vm4, %vm3031_vm3 }
0x117c   :  { %v3027_v47 = vsub.f32 1.0, %v3026_v37  ;;  %v2765_v37 = vsub.f32 1.0, %v5268_v6 }
0x117e   :  { %v3028_v32 = vmul.f32 %v3847_v4, %v3027_v47 }
0x1180   :  { %v3029_v11 = vadd.f32 %v3847_v4, %v3028_v32  ;;  %v2801_v32 = vmul.f32 %v5268_v6, %v5170_v33 }
0x1182   :  { %v3033_v46 = vsel %vm3032_vm5, %v3847_v4, %v3029_v11 }
0x1183   :  { %v3038_v12 = vsel %vm3035_vm6, %v3037_v52, %v3033_v46 }
0x1184   :  { %v3052_v5 = vsub.f32 1.0, %v3038_v12  ;;  %v3058_v41 = vmul.f32 %v3038_v12, %v2994_v49 }
0x11c2   :  { %v3043_v0 = vpop.permute.xlu2 %3042 }
0x11c3   :  { %v3045_v15 = vmul.f32 %v3043_v0, %v3038_v12 }
0x11c5   :  { %3047 = vrot.lane.b32.xlu0 %v3045_v15, %s3904_s13 }
0x11ca   :  { %v2780_v54 = vpop.permute.xlu2 %2779 }
0x11cb   :  { %v2794_v60 = vmul.f32 %v2780_v54, %v2764_v38 }
0x11cd   :  { %v2806_v22 = vadd.f32 %v2800_v57, %v2794_v60 }
0x1237   :  { %v3048_v58 = vpop.permute.xlu0 %3047 }
0x1238   :  { %v3050_v21 = vadd.f32 %v3048_v58, %v2875_v25  ;;  %v413_v58 = vpop.f32.mrf.mxu0 }
0x1239   :  { %v414_v33 = vadd.f32 %v413_v58, %v4052_v23 }
0x123a   :  { %3848 = vtanh.f32 %v3050_v21 }
0x123b   :  { %3850 = vtanh.f32 %v2753_v43  ;;  %v2622_v6 = vadd.f32 %v5277_v27, %v414_v33  ;;  %v574_v27 = vpop.f32.mrf.mxu1 }
0x123c   :  { %v575_v63 = vadd.f32 %v574_v27, %v4057_v42  ;;  %v3263_v27 = vld [vmem:[%s5453_s9 + $0x18] sm:$0xff] }
0x123d   :  { %v3527_v21 = vmul.f32 -1.442695, %v2622_v6 }
0x1240   :  { %v3849_v1 = vpop.eup %3848 }
0x1241   :  { %3054 = vrot.lane.b32.xlu1 %v3849_v1, %s3905_s6  ;;  %v3851_v10 = vpop.eup %3850 }
0x1249   :  { %2833 = vrot.lane.b32.xlu1 %v2806_v22, %s3904_s13 }
0x12b3   :  { %v3055_v16 = vpop.permute.xlu1 %3054 }
0x12b4   :  { %v3057_v44 = vmul.f32 %v3055_v16, %v3052_v5 }
0x12b6   :  { %v3059_v20 = vadd.f32 %v3058_v41, %v3057_v44 }
0x12b8   :  { %3061 = vrot.lane.b32.xlu0 %v3059_v20, %s3905_s6 }
0x12bb   :  { %v2834_v7 = vpop.permute.xlu1 %2833 }
0x12bc   :  { %3531 = vmatmul.msk.f32.gmra.mxu2 %vm110_vm0, %v2834_v7  ;;  %v2742_v7 = vadd.f32 %v5337_v26, %v5332_v59 }
0x132a   :  { %v3062_v53 = vpop.permute.xlu0 %3061 }
0x132b   :  { %3539 = vmatmul.msk.f32.vlgmr.msrb.gmra.mxu3 %vm2929_vm9, %v3062_v53 }
0x132c   :  { %3207 = vmatpush.msrb.mxu3 %v5294_v17 }
0x132e   :  { %3208 = vmatpush.msrb.mxu3 %v5299_v2 }
0x1330   :  { %3209 = vmatpush.msrb.mxu3 %v5305_v61 }
0x1332   :  { %3210 = vmatpush.msrb.mxu3 %v5311_v19 }
0x133f   :  { %v2877_v17 = vpop.f32.mrf.mxu2 }
0x1340   :  { %v2878_v2 = vadd.f32 %v5282_v18, %v2877_v17 }
0x13ae   :  { %v3082_v51 = vpop.f32.mrf.mxu3 }
0x13af   :  { %v3105_v31 = vadd.f32 %v3082_v51, %v5342_v28  ;;  %v3085_v61 = vadd.f32 %v3082_v51, %v2878_v2 }
0x13b1   :  { %3107 = vrot.lane.b32.xlu2 %v3105_v31, %s3904_s13  ;;  %v3540_v55 = vmul.f32 -1.442695, %v3085_v61 }
0x13b3   :  { %3852 = vpow2.f32 %v3540_v55 }
0x13b9   :  { %2781 = vrot.lane.b32.xlu2 %v3851_v10, %s3904_s13  ;;  %v3853_v19 = vpop.eup %3852 }
0x13ba   :  { %v3089_v49 = vadd.f32 1.0, %v3853_v19 }
0x13bc   :  { %3854 = vrcp.f32 %v3089_v49  ;;  %v3101_v39 = vand.u32 2147483648, %v3089_v49  ;;  %vm3095_vm8 = vweird.f32 %v3089_v49  ;;  %v3099_v13 = vand.u32 2147483647, %v3089_v49 }
0x13be   :  { %v3102_v14 = vor.u32 1.1754944e-38, %v3101_v39  ;;  %vm3100_vm11 = vcmp.eq.f32.partialorder %v3099_v13, 8.507059e+37 }
0x13c2   :  { %v3855_v30 = vpop.eup %3854 }
0x13c3   :  { %v3091_v29 = vmul.f32 %v3855_v30, %v3089_v49  ;;  %vm3096_vm7 = vweird.f32 %v3855_v30 }
0x13c4   :  { %vm3097_vm10 = vmor %vm3095_vm8, %vm3096_vm7  ;;  %vm3290_vm8 = vcmask 97280  }
0x13c5   :  { %v3092_v9 = vsub.f32 1.0, %v3091_v29 }
0x13c7   :  { %v3093_v8 = vmul.f32 %v3855_v30, %v3092_v9 }
0x13c9   :  { %v3094_v3 = vadd.f32 %v3855_v30, %v3093_v8 }
0x13cb   :  { %v3098_v36 = vsel %vm3097_vm10, %v3855_v30, %v3094_v3 }
0x13cc   :  { %v3103_v25 = vsel %vm3100_vm11, %v3102_v14, %v3098_v36 }
0x13cd   :  { %v3117_v45 = vsub.f32 1.0, %v3103_v25  ;;  %v3123_v46 = vmul.f32 %v3103_v25, %v3059_v20 }
0x140b   :  { %v3108_v48 = vpop.permute.xlu2 %3107 }
0x140c   :  { %v3110_v40 = vmul.f32 %v3108_v48, %v3103_v25 }
0x140e   :  { %3112 = vrot.lane.b32.xlu0 %v3110_v40, %s3904_s13 }
0x1413   :  { %v2782_v4 = vpop.permute.xlu2 %2781 }
0x1414   :  { %v2795_v47 = vmul.f32 %v2782_v4, %v2765_v37 }
0x1416   :  { %v2807_v11 = vadd.f32 %v2801_v32, %v2795_v47 }
0x1480   :  { %v3113_v24 = vpop.permute.xlu0 %3112 }
0x1481   :  { %v3115_v62 = vadd.f32 %v3113_v24, %v2878_v2 }
0x1483   :  { %3856 = vtanh.f32 %v3115_v62 }
0x1484   :  { %3858 = vpow2.f32 %v3527_v21 }
0x1489   :  { %v3857_v50 = vpop.eup %3856 }
0x148a   :  { %3119 = vrot.lane.b32.xlu1 %v3857_v50, %s3905_s6  ;;  %v3859_v1 = vpop.eup %3858 }
0x148b   :  { %v2646_v54 = vadd.f32 1.0, %v3859_v1 }
0x148d   :  { %3860 = vrcp.f32 %v2646_v54  ;;  %v2733_v16 = vand.u32 2147483648, %v2646_v54  ;;  %vm2727_vm13 = vweird.f32 %v2646_v54  ;;  %v2731_v41 = vand.u32 2147483647, %v2646_v54 }
0x148f   :  { %v2734_v20 = vor.u32 1.1754944e-38, %v2733_v16  ;;  %vm2732_vm15 = vcmp.eq.f32.partialorder %v2731_v41, 8.507059e+37 }
0x1492   :  { %2835 = vrot.lane.b32.xlu1 %v2807_v11, %s3904_s13 }
0x1493   :  { %v3861_v38 = vpop.eup %3860 }
0x1494   :  { %v2723_v60 = vmul.f32 %v3861_v38, %v2646_v54  ;;  %vm2728_vm12 = vweird.f32 %v3861_v38 }
0x1495   :  { %vm2729_vm14 = vmor %vm2727_vm13, %vm2728_vm12 }
0x1496   :  { %v2724_v57 = vsub.f32 1.0, %v2723_v60 }
0x1498   :  { %v2725_v22 = vmul.f32 %v3861_v38, %v2724_v57 }
0x149a   :  { %v2726_v5 = vadd.f32 %v3861_v38, %v2725_v22 }
0x149c   :  { %v2730_v44 = vsel %vm2729_vm14, %v3861_v38, %v2726_v5 }
0x149d   :  { %v2735_v23 = vsel %vm2732_vm15, %v2734_v20, %v2730_v44 }
0x149e   :  { %v2748_v53 = vmul.f32 %v2742_v7, %v2735_v23  ;;  %v2766_v24 = vsub.f32 1.0, %v2735_v23  ;;  %v2802_v50 = vmul.f32 %v2735_v23, %v5192_v56  ;;  %v3262_v7 = vld [vmem:[%s5453_s9 + $0x10] sm:$0xff] }
0x14a0   :  { %v2754_v35 = vadd.f32 %v2748_v53, %v575_v63  ;;  %v3261_v53 = vld [vmem:[%s5453_s9 + $0x8] sm:$0xff]  ;;  %v3260_v63 = vld [vmem:[%s5453_s9] sm:$0xff] }
0x14a2   :  { %3862 = vtanh.f32 %v2754_v35 }
0x14a8   :  { %v3863_v31 = vpop.eup %3862 }
0x14fc   :  { %v3120_v34 = vpop.permute.xlu1 %3119 }
0x14fd   :  { %v3122_v52 = vmul.f32 %v3120_v34, %v3117_v45 }
0x14ff   :  { %v5391_v0 = vadd.f32 %v3123_v46, %v3122_v52 }
0x1501   :  { %3126 = vrot.lane.b32.xlu0 %v5391_v0, %s3905_s6 }
0x1504   :  { %v2836_v12 = vpop.permute.xlu1 %2835 }
0x1505   :  { %3532 = vmatmul.msk.f32.gmra.mxu2 %vm110_vm0, %v2836_v12 }
0x1573   :  { %v3127_v15 = vpop.permute.xlu0 %3126 }
0x1574   :  { %3541 = vmatmul.msk.f32.vlgmr.msra.gmra.mxu3 %vm2929_vm9, %v3127_v15 }
0x1575   :  { %3282 = vmatpush.msra.mxu3 %v3263_v27 }
0x1577   :  { %3283 = vmatpush.msra.mxu3 %v3262_v7 }
0x1579   :  { %3284 = vmatpush.msra.mxu3 %v3261_v53 }
0x157b   :  { %3285 = vmatpush.msra.mxu3 %v3260_v63 }
0x1588   :  { %v2880_v10 = vpop.f32.mrf.mxu2 }
0x1589   :  { %v2881_v17 = vadd.f32 %v5282_v18, %v2880_v10 }
0x15f7   :  { %v3147_v43 = vpop.f32.mrf.mxu3 }
0x15f8   :  { %v3170_v51 = vadd.f32 %v3147_v43, %v5342_v28  ;;  %v3150_v2 = vadd.f32 %v3147_v43, %v2881_v17 }
0x15fa   :  { %3172 = vrot.lane.b32.xlu2 %v3170_v51, %s3904_s13  ;;  %v3542_v61 = vmul.f32 -1.442695, %v3150_v2  ;;  %v3551_v2 = vld [vmem:[%s5452_s10] ss:$0 sm:$0xff] }
0x15fc   :  { %3864 = vpow2.f32 %v3542_v61 }
0x1602   :  { %2783 = vrot.lane.b32.xlu2 %v3863_v31, %s3904_s13  ;;  %v3865_v59 = vpop.eup %3864 }
0x1603   :  { %v3154_v26 = vadd.f32 1.0, %v3865_v59 }
0x1605   :  { %3866 = vrcp.f32 %v3154_v26  ;;  %v3166_v29 = vand.u32 2147483648, %v3154_v26  ;;  %vm3160_vm2 = vweird.f32 %v3154_v26  ;;  %v3164_v9 = vand.u32 2147483647, %v3154_v26 }
0x1607   :  { %v3167_v3 = vor.u32 1.1754944e-38, %v3166_v29  ;;  %vm3165_vm4 = vcmp.eq.f32.partialorder %v3164_v9, 8.507059e+37 }
0x160b   :  { %v3867_v42 = vpop.eup %3866 }
0x160c   :  { %v3156_v55 = vmul.f32 %v3867_v42, %v3154_v26  ;;  %vm3161_vm1 = vweird.f32 %v3867_v42 }
0x160d   :  { %vm3162_vm3 = vmor %vm3160_vm2, %vm3161_vm1 }
0x160e   :  { %v3157_v19 = vsub.f32 1.0, %v3156_v55 }
0x1610   :  { %v3158_v49 = vmul.f32 %v3867_v42, %v3157_v19 }
0x1612   :  { %v3159_v30 = vadd.f32 %v3867_v42, %v3158_v49 }
0x1614   :  { %v3163_v8 = vsel %vm3162_vm3, %v3867_v42, %v3159_v30 }
0x1615   :  { %v3168_v13 = vsel %vm3165_vm4, %v3167_v3, %v3163_v8 }
0x1616   :  { %v3182_v37 = vsub.f32 1.0, %v3168_v13  ;;  %v3188_v32 = vmul.f32 %v3168_v13, %v5391_v0 }
0x1654   :  { %v3173_v39 = vpop.permute.xlu2 %3172 }
0x1655   :  { %v3175_v36 = vmul.f32 %v3173_v39, %v3168_v13 }
0x1657   :  { %3177 = vrot.lane.b32.xlu0 %v3175_v36, %s3904_s13 }
0x165c   :  { %v2784_v40 = vpop.permute.xlu2 %2783 }
0x165d   :  { %v2796_v62 = vmul.f32 %v2784_v40, %v2766_v24 }
0x165f   :  { %v2808_v4 = vadd.f32 %v2802_v50, %v2796_v62 }
0x16c9   :  { %v3178_v14 = vpop.permute.xlu0 %3177 }
0x16ca   :  { %v3180_v48 = vadd.f32 %v3178_v14, %v2881_v17 }
0x16cc   :  { %3868 = vtanh.f32 %v3180_v48 }
0x16d2   :  { %v3869_v25 = vpop.eup %3868 }
0x16d3   :  { %3184 = vrot.lane.b32.xlu1 %v3869_v25, %s3905_s6 }
0x16db   :  { %2837 = vrot.lane.b32.xlu1 %v2808_v4, %s3904_s13 }
0x1745   :  { %v3185_v47 = vpop.permute.xlu1 %3184 }
0x1746   :  { %v3187_v11 = vmul.f32 %v3185_v47, %v3182_v37 }
0x1748   :  { %v3189_v45 = vadd.f32 %v3188_v32, %v3187_v11 }
0x174a   :  { %3191 = vrot.lane.b32.xlu0 %v3189_v45, %s3905_s6 }
0x174d   :  { %v2838_v34 = vpop.permute.xlu1 %2837 }
0x174e   :  { %3533 = vmatmul.msk.f32.gmra.mxu2 %vm110_vm0, %v2838_v34 }
0x17bc   :  { %v3192_v46 = vpop.permute.xlu0 %3191 }
0x17bd   :  { %3543 = vmatmul.msk.f32.vlgmr.msrb.gmra.mxu3 %vm2929_vm9, %v3192_v46 }
0x17d1   :  { %v2883_v12 = vpop.f32.mrf.mxu2 }
0x17d2   :  { %v2884_v15 = vadd.f32 %v5282_v18, %v2883_v12 }
0x1840   :  { %v3212_v52 = vpop.f32.mrf.mxu3 }
0x1841   :  { %v3235_v56 = vadd.f32 %v3212_v52, %v5342_v28  ;;  %v3215_v58 = vadd.f32 %v3212_v52, %v2884_v15 }
0x1843   :  { %3237 = vrot.lane.b32.xlu2 %v3235_v56, %s3904_s13  ;;  %v3544_v0 = vmul.f32 -1.442695, %v3215_v58 }
0x1845   :  { %3870 = vpow2.f32 %v3544_v0 }
0x184b   :  { %v3871_v33 = vpop.eup %3870 }
0x184c   :  { %v3219_v6 = vadd.f32 1.0, %v3871_v33 }
0x184e   :  { %3872 = vrcp.f32 %v3219_v6  ;;  %v3231_v57 = vand.u32 2147483648, %v3219_v6  ;;  %vm3225_vm5 = vweird.f32 %v3219_v6  ;;  %v3229_v28 = vand.u32 2147483647, %v3219_v6 }
0x1850   :  { %v3232_v5 = vor.u32 1.1754944e-38, %v3231_v57  ;;  %vm3230_vm7 = vcmp.eq.f32.partialorder %v3229_v28, 8.507059e+37 }
0x1854   :  { %v3873_v21 = vpop.eup %3872 }
0x1855   :  { %v3221_v1 = vmul.f32 %v3873_v21, %v3219_v6  ;;  %vm3226_vm0 = vweird.f32 %v3873_v21 }
0x1856   :  { %vm3227_vm6 = vmor %vm3225_vm5, %vm3226_vm0 }
0x1857   :  { %v3222_v54 = vsub.f32 1.0, %v3221_v1 }
0x1859   :  { %v3223_v38 = vmul.f32 %v3873_v21, %v3222_v54 }
0x185b   :  { %v3224_v60 = vadd.f32 %v3873_v21, %v3223_v38 }
0x185d   :  { %v3228_v22 = vsel %vm3227_vm6, %v3873_v21, %v3224_v60 }
0x185e   :  { %v3233_v18 = vsel %vm3230_vm7, %v3232_v5, %v3228_v22 }
0x185f   :  { %v3247_v35 = vsub.f32 1.0, %v3233_v18  ;;  %v3253_v51 = vmul.f32 %v3233_v18, %v3189_v45 }
0x189d   :  { %v3238_v16 = vpop.permute.xlu2 %3237 }
0x189e   :  { %v3240_v41 = vmul.f32 %v3238_v16, %v3233_v18 }
0x18a0   :  { %3242 = vrot.lane.b32.xlu0 %v3240_v41, %s3904_s13 }
0x1912   :  { %v3243_v44 = vpop.permute.xlu0 %3242 }
0x1913   :  { %v3245_v20 = vadd.f32 %v3243_v44, %v2884_v15 }
0x1915   :  { %3874 = vtanh.f32 %v3245_v20 }
0x191b   :  { %v3875_v23 = vpop.eup %3874 }
0x191c   :  { %3249 = vrot.lane.b32.xlu1 %v3875_v23, %s3905_s6 }
0x198e   :  { %v3250_v43 = vpop.permute.xlu1 %3249 }
0x198f   :  { %v3252_v31 = vmul.f32 %v3250_v43, %v3247_v35 }
0x1991   :  { %v3254_v10 = vadd.f32 %v3253_v51, %v3252_v31 }
0x1993   :  { %3256 = vrot.lane.b32.xlu2 %v3254_v10, %s3905_s6 }
0x19ed   :  { %v3257_v17 = vpop.permute.xlu2 %3256 }
0x19ee   :  { %3259 = vst.msk [vmem:[%s5454_s11] sm:$0xff] %vm2929_vm9, %v3257_v17  ;;  %3545 = vmatmul.msk.f32.vlgmr.msra.gmra.mxu3 %vm2929_vm9, %v3257_v17 }
0x1a71   :  { %v3287_v61 = vpop.f32.mrf.mxu3 }
0x1a72   :  { %v3288_v59 = vadd.f32 %v3551_v2, %v3287_v61 }
0x1a74   :  { %3291 = vst.msk [vmem:[%s5455_s12] sm:$0xff] %vm3290_vm8, %v3288_v59 }

</bundles_post_ra>
